<compile_context>
chip_gen: v7x
topology: tpu7x:2x2x1
jax: 0.10.0
libtpu: 0.0.40
codegen_flags: <defaults>
</compile_context>

<pallas_src>
import jax
import jax.numpy as jnp
from jax.experimental import pallas as pl
from jax.experimental.pallas import tpu as pltpu


def mlp_kernel(x_ref,
               w1_ref, b1_ref,
               w2_hbm, b2_ref,
               w3_hbm, b3_ref,
               w4_hbm, b4_ref,
               w5_ref, b5_ref,
               o_ref,
               w2_vmem, w3_vmem, w4_vmem, dma_sems):
    """Fused MLP forward with big weights streamed from HBM under compute."""
    # Issue all big-weight DMAs immediately: they proceed at full HBM bandwidth
    # while fc1 (and the already-arrived layers) compute on the MXU.
    cp2 = pltpu.make_async_copy(w2_hbm, w2_vmem, dma_sems.at[0])
    cp3 = pltpu.make_async_copy(w3_hbm, w3_vmem, dma_sems.at[1])
    cp4 = pltpu.make_async_copy(w4_hbm, w4_vmem, dma_sems.at[2])
    cp2.start()
    cp3.start()
    cp4.start()

    def linear(h_bf16, w_bf16, b_f32):
        acc = jnp.dot(h_bf16, w_bf16, preferred_element_type=jnp.float32)
        return acc + b_f32

    def relu_bf16(a_f32):
        # ReLU in f32 on the accumulator, single cast to bf16 for the next MXU op.
        return jnp.maximum(a_f32, 0.0).astype(jnp.bfloat16)

    h = x_ref[...].astype(jnp.bfloat16)                   # cast input once
    h = relu_bf16(linear(h, w1_ref[...], b1_ref[...]))    # fc1 + relu (dropout1 = id)

    cp2.wait()
    h = relu_bf16(linear(h, w2_vmem[...], b2_ref[...]))   # fc2 + relu (dropout2 = id)

    cp3.wait()
    h = relu_bf16(linear(h, w3_vmem[...], b3_ref[...]))   # fc3 + relu (dropout3 = id)

    cp4.wait()
    h = relu_bf16(linear(h, w4_vmem[...], b4_ref[...]))   # fc4 + relu (dropout4 = id)

    y = linear(h, w5_ref[...], b5_ref[...])               # fc5
    o_ref[...] = jax.nn.sigmoid(y).astype(o_ref.dtype)    # sigmoid (EUP, f32)


def dnn_forward(x, params):
    """params: list of (W, b); W: (fan_in, fan_out) bf16, b: (1, fan_out) f32."""
    (w1, b1), (w2, b2), (w3, b3), (w4, b4), (w5, b5) = params
    batch = x.shape[0]
    out_dim = w5.shape[1]

    vmem = pl.BlockSpec(memory_space=pltpu.MemorySpace.VMEM)
    hbm = pl.BlockSpec(memory_space=pl.ANY)   # leave big weights in HBM; DMA manually

    flops = 2 * batch * sum(int(w.shape[0]) * int(w.shape[1]) for w, _ in params)
    bytes_params = sum(int(w.size) * w.dtype.itemsize + int(b.size) * b.dtype.itemsize
                       for w, b in params)
    bytes_accessed = int(x.size) * x.dtype.itemsize + batch * out_dim * 4 + bytes_params

    kernel = pl.pallas_call(
        mlp_kernel,
        out_shape=jax.ShapeDtypeStruct((batch, out_dim), jnp.float32),
        in_specs=[vmem,          # x
                  vmem, vmem,    # w1 (small), b1
                  hbm, vmem,     # w2 (HBM, streamed), b2
                  hbm, vmem,     # w3 (HBM, streamed), b3
                  hbm, vmem,     # w4 (HBM, streamed), b4
                  vmem, vmem],   # w5 (tiny), b5
        out_specs=vmem,
        scratch_shapes=[
            pltpu.VMEM(w2.shape, w2.dtype),     # 1024x1024 bf16 = 2 MiB
            pltpu.VMEM(w3.shape, w3.dtype),     # 1024x512  bf16 = 1 MiB
            pltpu.VMEM(w4.shape, w4.dtype),     # 512x256   bf16 = 256 KiB
            pltpu.SemaphoreType.DMA((3,)),
        ],
        compiler_params=pltpu.CompilerParams(
            vmem_limit_bytes=16 * 1024 * 1024,  # right-sized; fits v7x's 64 MiB
        ),
        cost_estimate=pl.CostEstimate(
            flops=flops,
            transcendentals=batch * out_dim,    # sigmoid
            bytes_accessed=bytes_accessed,
        ),
    )
    # TODO(synk): for large-batch serving, add a parallel batch grid axis
    # (megacore on v7x) — at batch=8 a single block is the right shape.
    return kernel(x, w1, b1, w2, b2, w3, b3, w4, b4, w5, b5)


def init_params(key, input_size):
    """PyTorch nn.Linear-style init: U(-1/sqrt(fan_in), 1/sqrt(fan_in)).
    Weights stored bf16 (inference), biases f32."""
    sizes = [input_size, 1024, 1024, 512, 256, 2]
    params = []
    for fan_in, fan_out in zip(sizes[:-1], sizes[1:]):
        key, kw, kb = jax.random.split(key, 3)
        bound = 1.0 / float(fan_in) ** 0.5
        w = jax.random.uniform(kw, (fan_in, fan_out), jnp.float32, -bound, bound)
        b = jax.random.uniform(kb, (1, fan_out), jnp.float32, -bound, bound)
        params.append((w.astype(jnp.bfloat16), b))
    return params


def reference_forward(x, params):
    """Pure-JAX reference with the same numerics as the kernel:
    bf16 matmul inputs, f32 accumulation, f32 bias/relu/sigmoid."""
    h = x.astype(jnp.bfloat16)
    n = len(params)
    acc = None
    for i, (w, b) in enumerate(params):
        acc = jnp.dot(h, w, preferred_element_type=jnp.float32) + b
        if i < n - 1:
            h = jnp.maximum(acc, 0.0).astype(jnp.bfloat16)
    return jax.nn.sigmoid(acc)


if __name__ == "__main__":
    key = jax.random.PRNGKey(0)
    key, kx, kp = jax.random.split(key, 3)

    batch = 8
    input_size = 32
    x = jax.random.normal(kx, (batch, input_size), dtype=jnp.float32)
    params = init_params(kp, input_size)

    out = jax.block_until_ready(dnn_forward(x, params))
    ref = reference_forward(x, params)

    assert out.shape == (batch, 2)
    assert jnp.allclose(out, ref, atol=2e-3, rtol=2e-3), "mismatch vs JAX reference"

    print("KERNEL_OK")
</pallas_src>

<mosaic_0001>
module attributes {stable_mosaic.version = 11 : i64} {
  func.func @mlp_kernel(%arg0: memref<8x32xf32, #tpu.memory_space<vmem>>, %arg1: memref<32x1024xbf16, #tpu.memory_space<vmem>>, %arg2: memref<1x1024xf32, #tpu.memory_space<vmem>>, %arg3: memref<1024x1024xbf16, #tpu.memory_space<any>>, %arg4: memref<1x1024xf32, #tpu.memory_space<vmem>>, %arg5: memref<1024x512xbf16, #tpu.memory_space<any>>, %arg6: memref<1x512xf32, #tpu.memory_space<vmem>>, %arg7: memref<512x256xbf16, #tpu.memory_space<any>>, %arg8: memref<1x256xf32, #tpu.memory_space<vmem>>, %arg9: memref<256x2xbf16, #tpu.memory_space<vmem>>, %arg10: memref<1x2xf32, #tpu.memory_space<vmem>>, %arg11: memref<8x2xf32, #tpu.memory_space<vmem>>, %arg12: memref<1024x1024xbf16, #tpu.memory_space<vmem>>, %arg13: memref<1024x512xbf16, #tpu.memory_space<vmem>>, %arg14: memref<512x256xbf16, #tpu.memory_space<vmem>>, %arg15: memref<3x!tpu.dma_semaphore, #tpu.memory_space<semaphore_mem>>) attributes {dimension_semantics = [], scalar_prefetch = 0 : i64, scratch_operands = 4 : i64, tpu.core_type = #tpu.core_type<tc>} {
    %c0_i32 = arith.constant 0 : i32
    %0 = tpu.memref_slice %arg15[%c0_i32] : memref<3x!tpu.dma_semaphore, #tpu.memory_space<semaphore_mem>> -> memref<1x!tpu.dma_semaphore, #tpu.memory_space<semaphore_mem>>
    %1 = tpu.memref_squeeze %0 : memref<1x!tpu.dma_semaphore, #tpu.memory_space<semaphore_mem>> -> memref<!tpu.dma_semaphore, #tpu.memory_space<semaphore_mem>>
    tpu.enqueue_dma source(%arg3 : memref<1024x1024xbf16, #tpu.memory_space<any>>) target(%arg12 : memref<1024x1024xbf16, #tpu.memory_space<vmem>>) target_semaphore(%1 : memref<!tpu.dma_semaphore, #tpu.memory_space<semaphore_mem>>)
    %c1_i32 = arith.constant 1 : i32
    %2 = tpu.memref_slice %arg15[%c1_i32] : memref<3x!tpu.dma_semaphore, #tpu.memory_space<semaphore_mem>> -> memref<1x!tpu.dma_semaphore, #tpu.memory_space<semaphore_mem>>
    %3 = tpu.memref_squeeze %2 : memref<1x!tpu.dma_semaphore, #tpu.memory_space<semaphore_mem>> -> memref<!tpu.dma_semaphore, #tpu.memory_space<semaphore_mem>>
    tpu.enqueue_dma source(%arg5 : memref<1024x512xbf16, #tpu.memory_space<any>>) target(%arg13 : memref<1024x512xbf16, #tpu.memory_space<vmem>>) target_semaphore(%3 : memref<!tpu.dma_semaphore, #tpu.memory_space<semaphore_mem>>)
    %c2_i32 = arith.constant 2 : i32
    %4 = tpu.memref_slice %arg15[%c2_i32] : memref<3x!tpu.dma_semaphore, #tpu.memory_space<semaphore_mem>> -> memref<1x!tpu.dma_semaphore, #tpu.memory_space<semaphore_mem>>
    %5 = tpu.memref_squeeze %4 : memref<1x!tpu.dma_semaphore, #tpu.memory_space<semaphore_mem>> -> memref<!tpu.dma_semaphore, #tpu.memory_space<semaphore_mem>>
    tpu.enqueue_dma source(%arg7 : memref<512x256xbf16, #tpu.memory_space<any>>) target(%arg14 : memref<512x256xbf16, #tpu.memory_space<vmem>>) target_semaphore(%5 : memref<!tpu.dma_semaphore, #tpu.memory_space<semaphore_mem>>)
    %c0 = arith.constant 0 : index
    %c0_0 = arith.constant 0 : index
    %6 = vector.load %arg0[%c0, %c0_0] : memref<8x32xf32, #tpu.memory_space<vmem>>, vector<8x32xf32>
    %7 = arith.truncf %6 : vector<8x32xf32> to vector<8x32xbf16>
    %c0_1 = arith.constant 0 : index
    %c0_2 = arith.constant 0 : index
    %8 = vector.load %arg1[%c0_1, %c0_2] : memref<32x1024xbf16, #tpu.memory_space<vmem>>, vector<32x1024xbf16>
    %c0_3 = arith.constant 0 : index
    %c0_4 = arith.constant 0 : index
    %9 = vector.load %arg2[%c0_3, %c0_4] : memref<1x1024xf32, #tpu.memory_space<vmem>>, vector<1x1024xf32>
    %cst = arith.constant dense<0.000000e+00> : vector<8x1024xf32>
    %10 = tpu.matmul %7, %8, %cst {dimension_numbers = #tpu.dot_dimension_numbers<[1], [0], [0], [1], [0, 0, 1, 1], [], []>} : vector<8x32xbf16>, vector<32x1024xbf16>, vector<8x1024xf32> -> vector<8x1024xf32>
    %11 = vector.broadcast %9 : vector<1x1024xf32> to vector<8x1024xf32>
    %12 = arith.addf %10, %11 : vector<8x1024xf32>
    %cst_5 = arith.constant 0.000000e+00 : f32
    %13 = vector.broadcast %cst_5 : f32 to vector<8x1024xf32>
    %14 = arith.maximumf %12, %13 : vector<8x1024xf32>
    %15 = arith.truncf %14 : vector<8x1024xf32> to vector<8x1024xbf16>
    %c0_i32_6 = arith.constant 0 : i32
    %16 = tpu.memref_slice %arg15[%c0_i32_6] : memref<3x!tpu.dma_semaphore, #tpu.memory_space<semaphore_mem>> -> memref<1x!tpu.dma_semaphore, #tpu.memory_space<semaphore_mem>>
    %17 = tpu.memref_squeeze %16 : memref<1x!tpu.dma_semaphore, #tpu.memory_space<semaphore_mem>> -> memref<!tpu.dma_semaphore, #tpu.memory_space<semaphore_mem>>
    tpu.wait_dma2 semaphore(%17 : memref<!tpu.dma_semaphore, #tpu.memory_space<semaphore_mem>>) src(%arg3 : memref<1024x1024xbf16, #tpu.memory_space<any>>) dst(%arg12 : memref<1024x1024xbf16, #tpu.memory_space<vmem>>)
    %c0_7 = arith.constant 0 : index
    %c0_8 = arith.constant 0 : index
    %18 = vector.load %arg12[%c0_7, %c0_8] : memref<1024x1024xbf16, #tpu.memory_space<vmem>>, vector<1024x1024xbf16>
    %c0_9 = arith.constant 0 : index
    %c0_10 = arith.constant 0 : index
    %19 = vector.load %arg4[%c0_9, %c0_10] : memref<1x1024xf32, #tpu.memory_space<vmem>>, vector<1x1024xf32>
    %cst_11 = arith.constant dense<0.000000e+00> : vector<8x1024xf32>
    %20 = tpu.matmul %15, %18, %cst_11 {dimension_numbers = #tpu.dot_dimension_numbers<[1], [0], [0], [1], [0, 0, 1, 1], [], []>} : vector<8x1024xbf16>, vector<1024x1024xbf16>, vector<8x1024xf32> -> vector<8x1024xf32>
    %21 = vector.broadcast %19 : vector<1x1024xf32> to vector<8x1024xf32>
    %22 = arith.addf %20, %21 : vector<8x1024xf32>
    %cst_12 = arith.constant 0.000000e+00 : f32
    %23 = vector.broadcast %cst_12 : f32 to vector<8x1024xf32>
    %24 = arith.maximumf %22, %23 : vector<8x1024xf32>
    %25 = arith.truncf %24 : vector<8x1024xf32> to vector<8x1024xbf16>
    %c1_i32_13 = arith.constant 1 : i32
    %26 = tpu.memref_slice %arg15[%c1_i32_13] : memref<3x!tpu.dma_semaphore, #tpu.memory_space<semaphore_mem>> -> memref<1x!tpu.dma_semaphore, #tpu.memory_space<semaphore_mem>>
    %27 = tpu.memref_squeeze %26 : memref<1x!tpu.dma_semaphore, #tpu.memory_space<semaphore_mem>> -> memref<!tpu.dma_semaphore, #tpu.memory_space<semaphore_mem>>
    tpu.wait_dma2 semaphore(%27 : memref<!tpu.dma_semaphore, #tpu.memory_space<semaphore_mem>>) src(%arg5 : memref<1024x512xbf16, #tpu.memory_space<any>>) dst(%arg13 : memref<1024x512xbf16, #tpu.memory_space<vmem>>)
    %c0_14 = arith.constant 0 : index
    %c0_15 = arith.constant 0 : index
    %28 = vector.load %arg13[%c0_14, %c0_15] : memref<1024x512xbf16, #tpu.memory_space<vmem>>, vector<1024x512xbf16>
    %c0_16 = arith.constant 0 : index
    %c0_17 = arith.constant 0 : index
    %29 = vector.load %arg6[%c0_16, %c0_17] : memref<1x512xf32, #tpu.memory_space<vmem>>, vector<1x512xf32>
    %cst_18 = arith.constant dense<0.000000e+00> : vector<8x512xf32>
    %30 = tpu.matmul %25, %28, %cst_18 {dimension_numbers = #tpu.dot_dimension_numbers<[1], [0], [0], [1], [0, 0, 1, 1], [], []>} : vector<8x1024xbf16>, vector<1024x512xbf16>, vector<8x512xf32> -> vector<8x512xf32>
    %31 = vector.broadcast %29 : vector<1x512xf32> to vector<8x512xf32>
    %32 = arith.addf %30, %31 : vector<8x512xf32>
    %cst_19 = arith.constant 0.000000e+00 : f32
    %33 = vector.broadcast %cst_19 : f32 to vector<8x512xf32>
    %34 = arith.maximumf %32, %33 : vector<8x512xf32>
    %35 = arith.truncf %34 : vector<8x512xf32> to vector<8x512xbf16>
    %c2_i32_20 = arith.constant 2 : i32
    %36 = tpu.memref_slice %arg15[%c2_i32_20] : memref<3x!tpu.dma_semaphore, #tpu.memory_space<semaphore_mem>> -> memref<1x!tpu.dma_semaphore, #tpu.memory_space<semaphore_mem>>
    %37 = tpu.memref_squeeze %36 : memref<1x!tpu.dma_semaphore, #tpu.memory_space<semaphore_mem>> -> memref<!tpu.dma_semaphore, #tpu.memory_space<semaphore_mem>>
    tpu.wait_dma2 semaphore(%37 : memref<!tpu.dma_semaphore, #tpu.memory_space<semaphore_mem>>) src(%arg7 : memref<512x256xbf16, #tpu.memory_space<any>>) dst(%arg14 : memref<512x256xbf16, #tpu.memory_space<vmem>>)
    %c0_21 = arith.constant 0 : index
    %c0_22 = arith.constant 0 : index
    %38 = vector.load %arg14[%c0_21, %c0_22] : memref<512x256xbf16, #tpu.memory_space<vmem>>, vector<512x256xbf16>
    %c0_23 = arith.constant 0 : index
    %c0_24 = arith.constant 0 : index
    %39 = vector.load %arg8[%c0_23, %c0_24] : memref<1x256xf32, #tpu.memory_space<vmem>>, vector<1x256xf32>
    %cst_25 = arith.constant dense<0.000000e+00> : vector<8x256xf32>
    %40 = tpu.matmul %35, %38, %cst_25 {dimension_numbers = #tpu.dot_dimension_numbers<[1], [0], [0], [1], [0, 0, 1, 1], [], []>} : vector<8x512xbf16>, vector<512x256xbf16>, vector<8x256xf32> -> vector<8x256xf32>
    %41 = vector.broadcast %39 : vector<1x256xf32> to vector<8x256xf32>
    %42 = arith.addf %40, %41 : vector<8x256xf32>
    %cst_26 = arith.constant 0.000000e+00 : f32
    %43 = vector.broadcast %cst_26 : f32 to vector<8x256xf32>
    %44 = arith.maximumf %42, %43 : vector<8x256xf32>
    %45 = arith.truncf %44 : vector<8x256xf32> to vector<8x256xbf16>
    %c0_27 = arith.constant 0 : index
    %c0_28 = arith.constant 0 : index
    %46 = vector.load %arg9[%c0_27, %c0_28] : memref<256x2xbf16, #tpu.memory_space<vmem>>, vector<256x2xbf16>
    %c0_29 = arith.constant 0 : index
    %c0_30 = arith.constant 0 : index
    %47 = vector.load %arg10[%c0_29, %c0_30] : memref<1x2xf32, #tpu.memory_space<vmem>>, vector<1x2xf32>
    %cst_31 = arith.constant dense<0.000000e+00> : vector<8x2xf32>
    %48 = tpu.matmul %45, %46, %cst_31 {dimension_numbers = #tpu.dot_dimension_numbers<[1], [0], [0], [1], [0, 0, 1, 1], [], []>} : vector<8x256xbf16>, vector<256x2xbf16>, vector<8x2xf32> -> vector<8x2xf32>
    %49 = vector.broadcast %47 : vector<1x2xf32> to vector<8x2xf32>
    %50 = arith.addf %48, %49 : vector<8x2xf32>
    %51 = arith.negf %50 : vector<8x2xf32>
    %52 = math.exp %51 : vector<8x2xf32>
    %cst_32 = arith.constant 1.000000e+00 : f32
    %53 = vector.broadcast %cst_32 : f32 to vector<8x2xf32>
    %54 = arith.addf %53, %52 : vector<8x2xf32>
    %55 = arith.divf %53, %54 : vector<8x2xf32>
    %c0_33 = arith.constant 0 : index
    %c0_34 = arith.constant 0 : index
    %56 = vector.load %arg11[%c0_33, %c0_34] : memref<8x2xf32, #tpu.memory_space<vmem>>, vector<8x2xf32>
    tpu.vector_store %arg11[%c0_33, %c0_34], %55 {strides = array<i32>} : memref<8x2xf32, #tpu.memory_space<vmem>>, vector<8x2xf32>,
    return
  }
}

</mosaic_0001>

<bundles_post_ra>
// kernel: tpu_custom_call.1
= control target key start
LH: loop header
LB: loop body
LE: loop exit
PB: predicated region body
PF: predicated region fallthrough
CT: control target
= control target key end

     0   :  { %16 = vsyncpa [#allocation7], 0  ;;  %s3559_s0 = inlined_call_operand.hbm [shape: f32[8,32], index: 0, kind: input, shape index: {}]   ;;  %s3560_s1 = inlined_call_operand.hbm [shape: bf16[32,1024], index: 1, kind: input, shape index: {}]   ;;  %s3561_s2 = inlined_call_operand.hbm [shape: f32[1,1024], index: 2, kind: input, shape index: {}]   ;;  %s3562_s3 = inlined_call_operand.hbm [shape: bf16[1024,1024], index: 3, kind: input, shape index: {}]   ;;  %s3563_s4 = inlined_call_operand.hbm [shape: f32[1,1024], index: 4, kind: input, shape index: {}]   ;;  %s3564_s5 = inlined_call_operand.hbm [shape: bf16[1024,512], index: 5, kind: input, shape index: {}]   ;;  %s3565_s6 = inlined_call_operand.hbm [shape: f32[1,512], index: 6, kind: input, shape index: {}]   ;;  %s3566_s7 = inlined_call_operand.hbm [shape: bf16[512,256], index: 7, kind: input, shape index: {}]   ;;  %s3567_s8 = inlined_call_operand.hbm [shape: f32[1,256], index: 8, kind: input, shape index: {}]   ;;  %s3568_s9 = inlined_call_operand.vmem [shape: bf16[256,2], index: 9, kind: input, shape index: {}]   ;;  %s3569_s10 = inlined_call_operand.hbm [shape: f32[1,2], index: 10, kind: input, shape index: {}]   ;;  %s3570_s11 = inlined_call_operand.vmem [shape: f32[8,2], index: 11, kind: output, shape index: {}]  }
   0x1   :  { %17 = vsyncpa [#allocation9], 0 }
   0x2   :  { %18 = vsyncpa [#allocation12], 0 }
   0x3   :  { %19 = vsyncpa [#allocation15], 0  ;;  %s3140_s17 = smov [#allocation8]   ;;  %s2972_s21 = scalar_lea.hbm %s3560_s1, 2048 }
   0x4   :  { %s35_s18 = sshll.u32 %s3140_s17, 4  ;;  %p2973_p0 = scmp.ne.s32.totalorder %s3560_s1, %s2972_s21  ;;  %s36_s18 = int_to_ptr.vmem [resolvable:$true] %s35_s18 }
   0x5   :  { %p2976_p1 = scmp.lt.u32.totalorder %s2972_s21, %s3560_s1 }
   0x7   :  { %p2978_p2 = pnand %p2976_p1, %p2973_p0 }
   0x9   :  { %2981 = shalt.err (!%p2978_p2)
}
   0xa   :  { %s2982_s26 = scalar_lea.vmem %s36_s18, 2048  ;;  %p2987_p4 = scmp.lt.s32.totalorder %s36_s18, %s36_s18 }
   0xb   :  { %p2983_p3 = scmp.ne.s32.totalorder %s36_s18, %s2982_s26  ;;  %p2988_p5 = scmp.lt.s32.totalorder %s2982_s26, %s2982_s26 }
   0xd   :  { %p2989_p6 = por %p2988_p5, %p2987_p4 }
   0xf   :  { %p2990_p7 = pnand %p2989_p6, %p2983_p3 }
  0x11   :  { %2993 = shalt.err (!%p2990_p7)
}
  0x12   :  { %s3141_s27 = smov 512   ;;  %s3142_s28 = smov 32  }
  0x13   :  { %41 = dma.hbm_to_vmem [thread:$0]  %s3560_s1, 2048, %s36_s18, [#allocation9], %s3141_s27, %s3141_s27, %s3142_s28  }
  0x14   :  { %s3143_s12 = smov [#allocation11]   ;;  %s3144_s14 = smov [#allocation14]  }
  0x15   :  { %s58_s13 = sshll.u32 %s3143_s12, 4  ;;  %s78_s15 = sshll.u32 %s3144_s14, 4  ;;  %s59_s13 = int_to_ptr.vmem [resolvable:$true] %s58_s13  ;;  %s79_s15 = int_to_ptr.vmem [resolvable:$true] %s78_s15 }
  0x16   :  { %s2994_s19 = scalar_lea.hbm %s3563_s4, 128 }
  0x17   :  { %p2995_p8 = scmp.ne.s32.totalorder %s3563_s4, %s2994_s19  ;;  %p2998_p9 = scmp.lt.u32.totalorder %s2994_s19, %s3563_s4 }
  0x19   :  { %p3000_p10 = pnand %p2998_p9, %p2995_p8 }
  0x1b   :  { %3003 = shalt.err (!%p3000_p10)
}
  0x1c   :  { %s3004_s1 = scalar_lea.vmem %s59_s13, 128  ;;  %p3009_p12 = scmp.lt.s32.totalorder %s59_s13, %s59_s13 }
  0x1d   :  { %p3005_p11 = scmp.ne.s32.totalorder %s59_s13, %s3004_s1  ;;  %p3010_p13 = scmp.lt.s32.totalorder %s3004_s1, %s3004_s1 }
  0x1f   :  { %p3011_p0 = por %p3010_p13, %p3009_p12 }
  0x21   :  { %p3012_p1 = pnand %p3011_p0, %p3005_p11 }
  0x23   :  { %3015 = shalt.err (!%p3012_p1)
}
  0x24   :  { %61 = dma.hbm_to_vmem [thread:$0]  %s3563_s4, 128, %s59_s13, [#allocation12]  }
  0x25   :  { %s3016_s28 = scalar_lea.hbm %s3567_s8, 32 }
  0x26   :  { %p3017_p2 = scmp.ne.s32.totalorder %s3567_s8, %s3016_s28  ;;  %p3020_p3 = scmp.lt.u32.totalorder %s3016_s28, %s3567_s8 }
  0x28   :  { %p3022_p4 = pnand %p3020_p3, %p3017_p2 }
  0x2a   :  { %3025 = shalt.err (!%p3022_p4)
}
  0x2b   :  { %s3026_s16 = scalar_lea.vmem %s79_s15, 32  ;;  %p3031_p6 = scmp.lt.s32.totalorder %s79_s15, %s79_s15 }
  0x2c   :  { %p3027_p5 = scmp.ne.s32.totalorder %s79_s15, %s3026_s16  ;;  %p3032_p7 = scmp.lt.s32.totalorder %s3026_s16, %s3026_s16 }
  0x2e   :  { %p3033_p8 = por %p3032_p7, %p3031_p6 }
  0x30   :  { %p3034_p9 = pnand %p3033_p8, %p3027_p5 }
  0x32   :  { %3037 = shalt.err (!%p3034_p9)
}
  0x33   :  { %81 = dma.hbm_to_vmem [thread:$0]  %s3567_s8, 32, %s79_s15, [#allocation15]  }
  0x34   :  { %s3145_s17 = smov [#allocation6]   ;;  %s3146_s20 = smov [#allocation10]  }
  0x35   :  { %s26_s19 = sshll.u32 %s3145_s17, 4  ;;  %s48_s21 = sshll.u32 %s3146_s20, 4  ;;  %s27_s19 = int_to_ptr.vmem [resolvable:$true] %s26_s19  ;;  %s49_s21 = int_to_ptr.vmem [resolvable:$true] %s48_s21 }
  0x36   :  { %s3038_s1 = scalar_lea.hbm %s3559_s0, 128 }
  0x37   :  { %p3039_p10 = scmp.ne.s32.totalorder %s3559_s0, %s3038_s1  ;;  %p3042_p11 = scmp.lt.u32.totalorder %s3038_s1, %s3559_s0 }
  0x39   :  { %p3044_p12 = pnand %p3042_p11, %p3039_p10 }
  0x3b   :  { %3047 = shalt.err (!%p3044_p12)
}
  0x3c   :  { %s3048_s8 = scalar_lea.vmem %s27_s19, 128  ;;  %p3053_p0 = scmp.lt.s32.totalorder %s27_s19, %s27_s19 }
  0x3d   :  { %p3049_p13 = scmp.ne.s32.totalorder %s27_s19, %s3048_s8  ;;  %p3054_p1 = scmp.lt.s32.totalorder %s3048_s8, %s3048_s8 }
  0x3f   :  { %p3055_p2 = por %p3054_p1, %p3053_p0 }
  0x41   :  { %p3056_p3 = pnand %p3055_p2, %p3049_p13 }
  0x43   :  { %3059 = shalt.err (!%p3056_p3)
}
  0x44   :  { %29 = dma.hbm_to_vmem [thread:$0]  %s3559_s0, 128, %s27_s19, [#allocation7]  }
  0x45   :  { %s3060_s12 = scalar_lea.hbm %s3561_s2, 128 }
  0x46   :  { %p3061_p4 = scmp.ne.s32.totalorder %s3561_s2, %s3060_s12  ;;  %p3064_p5 = scmp.lt.u32.totalorder %s3060_s12, %s3561_s2 }
  0x48   :  { %p3066_p6 = pnand %p3064_p5, %p3061_p4 }
  0x4a   :  { %3069 = shalt.err (!%p3066_p6)
}
  0x4b   :  { %s3070_s17 = scalar_lea.vmem %s49_s21, 128  ;;  %p3075_p8 = scmp.lt.s32.totalorder %s49_s21, %s49_s21 }
  0x4c   :  { %p3071_p7 = scmp.ne.s32.totalorder %s49_s21, %s3070_s17  ;;  %p3076_p9 = scmp.lt.s32.totalorder %s3070_s17, %s3070_s17 }
  0x4e   :  { %p3077_p10 = por %p3076_p9, %p3075_p8 }
  0x50   :  { %p3078_p11 = pnand %p3077_p10, %p3071_p7 }
  0x52   :  { %3081 = shalt.err (!%p3078_p11)
}
  0x53   :  { %51 = dma.hbm_to_vmem [thread:$0]  %s3561_s2, 128, %s49_s21, [#allocation9]  }
  0x54   :  { %s3147_s20 = smov [#allocation13]   ;;  %s3148_s23 = smov [#allocation16]  }
  0x55   :  { %s68_s22 = sshll.u32 %s3147_s20, 4  ;;  %s90_s1 = sshll.u32 %s3148_s23, 4  ;;  %s69_s22 = int_to_ptr.vmem [resolvable:$true] %s68_s22  ;;  %s91_s1 = int_to_ptr.vmem [resolvable:$true] %s90_s1 }
  0x56   :  { %s3082_s25 = scalar_lea.hbm %s3565_s6, 64 }
  0x57   :  { %p3083_p12 = scmp.ne.s32.totalorder %s3565_s6, %s3082_s25  ;;  %p3086_p13 = scmp.lt.u32.totalorder %s3082_s25, %s3565_s6 }
  0x59   :  { %p3088_p0 = pnand %p3086_p13, %p3083_p12 }
  0x5b   :  { %3091 = shalt.err (!%p3088_p0)
}
  0x5c   :  { %s3092_s2 = scalar_lea.vmem %s69_s22, 64  ;;  %p3097_p2 = scmp.lt.s32.totalorder %s69_s22, %s69_s22 }
  0x5d   :  { %p3093_p1 = scmp.ne.s32.totalorder %s69_s22, %s3092_s2  ;;  %p3098_p3 = scmp.lt.s32.totalorder %s3092_s2, %s3092_s2 }
  0x5f   :  { %p3099_p4 = por %p3098_p3, %p3097_p2 }
  0x61   :  { %p3100_p5 = pnand %p3099_p4, %p3093_p1 }
  0x63   :  { %3103 = shalt.err (!%p3100_p5)
}
  0x64   :  { %71 = dma.hbm_to_vmem [thread:$0]  %s3565_s6, 64, %s69_s22, [#allocation12]  }
  0x65   :  { %s3104_s14 = scalar_lea.hbm %s3569_s10, 16 }
  0x66   :  { %p3105_p6 = scmp.ne.s32.totalorder %s3569_s10, %s3104_s14  ;;  %p3108_p7 = scmp.lt.u32.totalorder %s3104_s14, %s3569_s10 }
  0x68   :  { %p3110_p8 = pnand %p3108_p7, %p3105_p6 }
  0x6a   :  { %3113 = shalt.err (!%p3110_p8)
}
  0x6b   :  { %s3114_s0 = scalar_lea.vmem %s91_s1, 16  ;;  %s3118_s19 = scalar_lea.vmem %s91_s1, 32 }
  0x6c   :  { %p3115_p9 = scmp.ne.s32.totalorder %s91_s1, %s3114_s0  ;;  %p3119_p10 = scmp.lt.s32.totalorder %s91_s1, %s91_s1 }
  0x6d   :  { %p3120_p11 = scmp.lt.s32.totalorder %s3118_s19, %s3114_s0 }
  0x6f   :  { %p3121_p12 = por %p3120_p11, %p3119_p10 }
  0x71   :  { %p3122_p13 = pnand %p3121_p12, %p3115_p9 }
  0x73   :  { %3125 = shalt.err (!%p3122_p13)
}
  0x74   :  { %93 = dma.hbm_to_vmem [thread:$0]  %s3569_s10, 16, %s91_s1, [#allocation15]  }
  0x75   :  { %3126 = dma.done.wait [#allocation7], 128  }
  0x76   :  { %3127 = vsyncadd [#allocation7], 4294967168 }
  0x77   :  { %3128 = dma.done.wait [#allocation9], 2176  }
  0x78   :  { %3129 = vsyncadd [#allocation9], 4294965120 }
  0x79   :  { %3130 = dma.done.wait [#allocation12], 192  }
  0x7a   :  { %3131 = vsyncadd [#allocation12], 4294967104 }
  0x7b   :  { %3132 = dma.done.wait [#allocation15], 48  }
  0x7c   :  { %3133 = vsyncadd [#allocation15], 4294967248  ;;  %s120_s22 = sld [smem:[#allocation0]]   ;;  %s3149_s23 = smov 1024   ;;  %v3150_v0 = vmov 0   ;;  %vm361_vm0 = vcmask 261120   ;;  %v241_v35 = vlaneseq }
  0x7d   :  { %132 = sst [smem:[#allocation18]] %s3149_s23  ;;  %397 = vmatprep.mubr.bf16.mxu0 %v3150_v0  ;;  %s3151_s18 = smov 8  }
  0x7e   :  { %134 = sst [smem:[#allocation18 + $0x1]] %s3149_s23  ;;  %s3152_s24 = smov 64   ;;  %v3355_v36 = vshrl.u32 %v241_v35, 7 }
  0x7f   :  { %136 = sst [smem:[#allocation18 + $0x2]] %s3151_s18  ;;  %s3153_s10 = smov [#allocation2]  }
  0x80   :  { %138 = sst [smem:[#allocation18 + $0x3]] %s3152_s24  ;;  %s128_s1 = sshll.u32 %s3153_s10, 4  ;;  %v3358_v37 = vsub.s32 0, %v3355_v36  ;;  %v3361_v39 = vsub.s32 1, %v3355_v36  ;;  %v3366_v45 = vsub.s32 2, %v3355_v36  ;;  %v3369_v48 = vsub.s32 3, %v3355_v36  ;;  %s129_s1 = int_to_ptr.vmem [resolvable:$true] %s128_s1 }
  0x81   :  { %144 = sst [smem:[#allocation18 + $0x6]] %s3141_s27  ;;  %s3154_s26 = smov 128   ;;  %v259_v59 = vsub.s32 4, %v3355_v36  ;;  %v263_v62 = vsub.s32 5, %v3355_v36 }
  0x82   :  { %146 = sst [smem:[#allocation18 + $0x7]] %s3152_s24  ;;  %s2769_s25 = sshll.u32 %s120_s22, 26 }
  0x83   :  { %140 = sst [smem:[#allocation18 + $0x4]] %s3154_s26  ;;  %s3317_s8 = sadd.s32 134217728, %s2769_s25 }
  0x84   :  { %s3155_s15 = smov 2   ;;  %s3156_s28 = smov 4  }
  0x85   :  { %142 = sst [smem:[#allocation18 + $0x5]] %s3155_s15  ;;  %s3157_s2 = smov [#allocation5]  }
  0x86   :  { %148 = sst [smem:[#allocation18 + $0x8]] %s3156_s28  ;;  %s3158_s21 = smov [#allocation17]  }
  0x87   :  { %150 = dma.general %s3562_s3, 65536, %s129_s1, %s3157_s2, %s3158_s21, [#allocation18], %s3317_s8, 0  }
  0x88   :  { %167 = sst [smem:[#allocation20]] %s3141_s27  ;;  %s3159_s12 = smov [#allocation3]  }
  0x89   :  { %169 = sst [smem:[#allocation20 + $0x1]] %s3141_s27  ;;  %s163_s14 = sshll.u32 %s3159_s12, 4  ;;  %s164_s14 = int_to_ptr.vmem [resolvable:$true] %s163_s14 }
  0x8a   :  { %171 = sst [smem:[#allocation20 + $0x2]] %s3156_s28  ;;  %s3160_s16 = smov 256  }
  0x8b   :  { %173 = sst [smem:[#allocation20 + $0x3]] %s3152_s24  ;;  %s3161_s3 = smov [#allocation5 + $0x1]  }
  0x8c   :  { %175 = sst [smem:[#allocation20 + $0x4]] %s3154_s26  ;;  %s3162_s4 = smov [#allocation19]  }
  0x8d   :  { %177 = sst [smem:[#allocation20 + $0x5]] %s3155_s15  ;;  %s3163_s17 = smov [#allocation4]  }
  0x8e   :  { %179 = sst [smem:[#allocation20 + $0x6]] %s3160_s16  ;;  %s198_s0 = sshll.u32 %s3163_s17, 4  ;;  %s199_s0 = int_to_ptr.vmem [resolvable:$true] %s198_s0 }
  0x8f   :  { %181 = sst [smem:[#allocation20 + $0x7]] %s3152_s24  ;;  %s3165_s19 = smov [#allocation21]  }
  0x90   :  { %183 = sst [smem:[#allocation20 + $0x8]] %s3156_s28 }
  0x91   :  { %185 = dma.general %s3564_s5, 32768, %s164_s14, %s3161_s3, %s3162_s4, [#allocation20], %s3317_s8, 0  }
  0x92   :  { %202 = sst [smem:[#allocation22]] %s3160_s16  ;;  %s3164_s5 = smov [#allocation5 + $0x2]  }
  0x93   :  { %204 = sst [smem:[#allocation22 + $0x1]] %s3160_s16 }
  0x94   :  { %206 = sst [smem:[#allocation22 + $0x2]] %s3155_s15 }
  0x95   :  { %208 = sst [smem:[#allocation22 + $0x3]] %s3152_s24 }
  0x96   :  { %210 = sst [smem:[#allocation22 + $0x4]] %s3154_s26 }
  0x97   :  { %212 = sst [smem:[#allocation22 + $0x5]] %s3155_s15 }
  0x98   :  { %214 = sst [smem:[#allocation22 + $0x6]] %s3154_s26 }
  0x99   :  { %216 = sst [smem:[#allocation22 + $0x7]] %s3152_s24 }
  0x9a   :  { %218 = sst [smem:[#allocation22 + $0x8]] %s3156_s28 }
  0x9b   :  { %220 = dma.general %s3566_s7, 8192, %s199_s0, %s3164_s5, %s3165_s19, [#allocation22], %s3317_s8, 0  }
  0x9c   :  { %v223_v1 = vld [vmem:[#allocation8] sm:$0xff]  ;;  %v224_v8 = vld [vmem:[#allocation8 + $0x8] sm:$0xff]  ;;  %v221_v11 = vld [vmem:[#allocation6] sm:$0xff] }
  0x9d   :  { %v227_v2 = vld [vmem:[#allocation8 + $0x20] sm:$0xff]  ;;  %v228_v9 = vld [vmem:[#allocation8 + $0x28] sm:$0xff]  ;;  %v222_v15 = vpack.c.bf16 %v221_v11, %v221_v11  ;;  %v225_v18 = vld [vmem:[#allocation8 + $0x10] sm:$0xff] }
  0x9e   :  { %v231_v3 = vld [vmem:[#allocation8 + $0x40] sm:$0xff]  ;;  %v2776_v4 = vcombine.high %v223_v1, %v227_v2  ;;  %v2775_v5 = vcombine.low %v223_v1, %v227_v2  ;;  %v2778_v12 = vcombine.high %v224_v8, %v228_v9  ;;  %v232_v13 = vld [vmem:[#allocation8 + $0x48] sm:$0xff]  ;;  %v2777_v16 = vcombine.low %v224_v8, %v228_v9  ;;  %v229_v19 = vld [vmem:[#allocation8 + $0x30] sm:$0xff] }
  0x9f   :  { %v235_v6 = vld [vmem:[#allocation8 + $0x60] sm:$0xff]  ;;  %v236_v14 = vld [vmem:[#allocation8 + $0x68] sm:$0xff]  ;;  %v2780_v21 = vcombine.high %v225_v18, %v229_v19  ;;  %v233_v22 = vld [vmem:[#allocation8 + $0x50] sm:$0xff]  ;;  %v2779_v24 = vcombine.low %v225_v18, %v229_v19  ;;  %v267_v9 = vsub.s32 6, %v3355_v36 }
  0xa0   :  { %v2784_v7 = vcombine.high %v231_v3, %v235_v6  ;;  %365 = vmatprep.subr.bf16.mxu0 %v2776_v4  ;;  %v2783_v10 = vcombine.low %v231_v3, %v235_v6  ;;  %v2786_v17 = vcombine.high %v232_v13, %v236_v14  ;;  %v2785_v20 = vcombine.low %v232_v13, %v236_v14  ;;  %v237_v23 = vld [vmem:[#allocation8 + $0x70] sm:$0xff]  ;;  %v226_v26 = vld [vmem:[#allocation8 + $0x18] sm:$0xff]  ;;  %v239_v38 = vld [vmem:[#allocation10] sm:$0xff] }
  0xa1   :  { %366 = vmatpush1.bf16.msra.mxu0 %v2775_v5  ;;  %v2788_v25 = vcombine.high %v233_v22, %v237_v23  ;;  %v230_v27 = vld [vmem:[#allocation8 + $0x38] sm:$0xff]  ;;  %v2787_v28 = vcombine.low %v233_v22, %v237_v23  ;;  %v244_v40 = vrot.slane %v239_v38, %v3358_v37  ;;  %v248_v41 = vrot.slane %v239_v38, %v3361_v39 }
  0xa2   :  { %367 = vmatprep.subr.bf16.mxu0 %v2784_v7  ;;  %v2782_v29 = vcombine.high %v226_v26, %v230_v27  ;;  %v234_v30 = vld [vmem:[#allocation8 + $0x58] sm:$0xff]  ;;  %v2781_v32 = vcombine.low %v226_v26, %v230_v27  ;;  %v252_v53 = vrot.slane %v239_v38, %v3366_v45  ;;  %v256_v55 = vrot.slane %v239_v38, %v3369_v48 }
  0xa3   :  { %v238_v31 = vld [vmem:[#allocation8 + $0x78] sm:$0xff]  ;;  %v260_v3 = vrot.slane %v239_v38, %v259_v59  ;;  %v264_v5 = vrot.slane %v239_v38, %v263_v62 }
  0xa4   :  { %v2790_v33 = vcombine.high %v234_v30, %v238_v31  ;;  %v2789_v34 = vcombine.low %v234_v30, %v238_v31 }
  0xa5   :  { %368 = vmatpush1.bf16.msra.mxu0 %v2783_v10 }
  0xa6   :  { %406 = vmatprep.subr.bf16.mxu0 %v2778_v12  ;;  %v271_v12 = vsub.s32 7, %v3355_v36 }
  0xa8   :  { %2791 = vmatmul.mubr.msk.bf16.vlgmr.msra.gmra.mrb[0].mxu0 %vm361_vm0, %v222_v15  ;;  %v272_v19 = vrot.slane %v239_v38, %v271_v12 }
  0xa9   :  { %407 = vmatpush1.bf16.msra.mxu0 %v2777_v16  ;;  %438 = vmatprep.mubr.bf16.mxu0 %v3150_v0 }
  0xaa   :  { %408 = vmatprep.subr.bf16.mxu0 %v2786_v17  ;;  %v268_v17 = vrot.slane %v239_v38, %v267_v9 }
  0xad   :  { %409 = vmatpush1.bf16.msra.mxu0 %v2785_v20 }
  0xae   :  { %447 = vmatprep.subr.bf16.mxu0 %v2780_v21 }
  0xb0   :  { %2792 = vmatmul.mubr.msk.bf16.vlgmr.msra.gmra.mrb[4].mxu0 %vm361_vm0, %v222_v15 }
  0xb1   :  { %448 = vmatpush1.bf16.msra.mxu0 %v2779_v24  ;;  %479 = vmatprep.mubr.bf16.mxu0 %v3150_v0 }
  0xb2   :  { %449 = vmatprep.subr.bf16.mxu0 %v2788_v25 }
  0xb5   :  { %450 = vmatpush1.bf16.msra.mxu0 %v2787_v28 }
  0xb6   :  { %488 = vmatprep.subr.bf16.mxu0 %v2782_v29 }
  0xb8   :  { %2793 = vmatmul.mubr.msk.bf16.vlgmr.msra.gmra.mrb[8].mxu0 %vm361_vm0, %v222_v15 }
  0xb9   :  { %489 = vmatpush1.bf16.msra.mxu0 %v2781_v32  ;;  %520 = vmatprep.mubr.bf16.mxu0 %v3150_v0 }
  0xba   :  { %490 = vmatprep.subr.bf16.mxu0 %v2790_v33 }
  0xbd   :  { %491 = vmatpush1.bf16.msra.mxu0 %v2789_v34 }
  0xc0   :  { %2794 = vmatmul.mubr.msk.bf16.vlgmr.msra.gmra.mrb[12].mxu0 %vm361_vm0, %v222_v15 }
 0x17b   :  { %v399_v42 = vpop.f32.mrb[0].mxu0 }
 0x17c   :  { %v400_v43 = vadd.f32 %v399_v42, %v244_v40  ;;  %v401_v44 = vpop.f32.mrb[1].mxu0 }
 0x17d   :  { %v402_v46 = vadd.f32 %v401_v44, %v248_v41  ;;  %v403_v47 = vpop.f32.mrb[2].mxu0 }
 0x17e   :  { %v529_v49 = vmax.f32 %v400_v43, 0.0  ;;  %v404_v50 = vpop.f32.mrb[3].mxu0 }
 0x17f   :  { %v530_v51 = vmax.f32 %v402_v46, 0.0 }
 0x180   :  { %v3371_v52 = vpack.c.bf16 %v529_v49, %v529_v49 }
 0x181   :  { %v3374_v54 = vpack.c.bf16 %v530_v51, %v530_v51 }
 0x183   :  { %v440_v56 = vpop.f32.mrb[4].mxu0 }
 0x184   :  { %v441_v57 = vadd.f32 %v440_v56, %v252_v53  ;;  %v442_v58 = vpop.f32.mrb[5].mxu0 }
 0x185   :  { %v443_v60 = vadd.f32 %v442_v58, %v256_v55  ;;  %v444_v61 = vpop.f32.mrb[6].mxu0 }
 0x186   :  { %v531_v63 = vmax.f32 %v441_v57, 0.0  ;;  %v445_v0 = vpop.f32.mrb[7].mxu0 }
 0x187   :  { %v532_v1 = vmax.f32 %v443_v60, 0.0 }
 0x188   :  { %v3379_v2 = vpack.c.bf16 %v531_v63, %v531_v63 }
 0x189   :  { %v3383_v4 = vpack.c.bf16 %v532_v1, %v532_v1 }
 0x18b   :  { %v481_v6 = vpop.f32.mrb[8].mxu0 }
 0x18c   :  { %v482_v7 = vadd.f32 %v481_v6, %v260_v3  ;;  %v483_v8 = vpop.f32.mrb[9].mxu0 }
 0x18d   :  { %v484_v10 = vadd.f32 %v483_v8, %v264_v5  ;;  %v485_v11 = vpop.f32.mrb[10].mxu0 }
 0x18e   :  { %v533_v13 = vmax.f32 %v482_v7, 0.0  ;;  %v486_v14 = vpop.f32.mrb[11].mxu0 }
 0x18f   :  { %v534_v15 = vmax.f32 %v484_v10, 0.0 }
 0x190   :  { %v3389_v16 = vpack.c.bf16 %v533_v13, %v533_v13 }
 0x191   :  { %v3393_v18 = vpack.c.bf16 %v534_v15, %v534_v15 }
 0x193   :  { %v522_v20 = vpop.f32.mrb[12].mxu0 }
 0x194   :  { %v523_v21 = vadd.f32 %v522_v20, %v268_v17  ;;  %v524_v22 = vpop.f32.mrb[13].mxu0 }
 0x195   :  { %v525_v23 = vadd.f32 %v524_v22, %v272_v19  ;;  %v526_v24 = vpop.f32.mrb[14].mxu0 }
 0x196   :  { %v535_v25 = vmax.f32 %v523_v21, 0.0  ;;  %v527_v26 = vpop.f32.mrb[15].mxu0 }
 0x197   :  { %v536_v27 = vmax.f32 %v525_v23, 0.0 }
 0x198   :  { %v3397_v28 = vpack.c.bf16 %v535_v25, %v535_v25 }
 0x199   :  { %v3399_v29 = vpack.c.bf16 %v536_v27, %v536_v27 }
 0x19a   :  { %3134 = dma.done.wait [#allocation5], 65536 }
 0x19b   :  { %3135 = vsyncadd [#allocation5], 4294901760  ;;  %1135 = vmatprep.mubr.bf16.mxu1 %v3374_v54  ;;  %1176 = vmatprep.mubr.bf16.mxu0 %v3383_v4  ;;  %v550_v30 = vld [vmem:[#allocation2 + $0x8] sm:$0xff]  ;;  %v549_v32 = vld [vmem:[#allocation2] sm:$0xff] }
 0x19c   :  { %v678_v31 = vld [vmem:[#allocation2 + $0x408] sm:$0xff]  ;;  %1103 = vmatprep.subr.bf16.mxu1 %v550_v30  ;;  %v677_v33 = vld [vmem:[#allocation2 + $0x400] sm:$0xff] }
 0x19d   :  { %1144 = vmatprep.subr.bf16.mxu0 %v678_v31  ;;  %v558_v34 = vld [vmem:[#allocation2 + $0x48] sm:$0xff]  ;;  %1104 = vmatpush1.bf16.msra.mxu1 %v549_v32  ;;  %v557_v38 = vld [vmem:[#allocation2 + $0x40] sm:$0xff] }
 0x19e   :  { %v686_v35 = vld [vmem:[#allocation2 + $0x448] sm:$0xff]  ;;  %1145 = vmatpush1.bf16.msra.mxu0 %v677_v33  ;;  %1105 = vmatprep.subr.bf16.mxu1 %v558_v34  ;;  %v685_v40 = vld [vmem:[#allocation2 + $0x440] sm:$0xff] }
 0x19f   :  { %1146 = vmatprep.subr.bf16.mxu0 %v686_v35  ;;  %v566_v41 = vld [vmem:[#allocation2 + $0x88] sm:$0xff]  ;;  %v565_v43 = vld [vmem:[#allocation2 + $0x80] sm:$0xff] }
 0x1a0   :  { %v694_v42 = vld [vmem:[#allocation2 + $0x488] sm:$0xff]  ;;  %v693_v44 = vld [vmem:[#allocation2 + $0x480] sm:$0xff] }
 0x1a1   :  { %1106 = vmatpush1.bf16.msra.mxu1 %v557_v38  ;;  %v574_v46 = vld [vmem:[#allocation2 + $0xc8] sm:$0xff]  ;;  %v573_v49 = vld [vmem:[#allocation2 + $0xc0] sm:$0xff] }
 0x1a2   :  { %1147 = vmatpush1.bf16.msra.mxu0 %v685_v40  ;;  %1107 = vmatprep.subr.bf16.mxu1 %v566_v41  ;;  %v702_v47 = vld [vmem:[#allocation2 + $0x4c8] sm:$0xff]  ;;  %v701_v50 = vld [vmem:[#allocation2 + $0x4c0] sm:$0xff] }
 0x1a3   :  { %1148 = vmatprep.subr.bf16.mxu0 %v694_v42  ;;  %v582_v51 = vld [vmem:[#allocation2 + $0x108] sm:$0xff]  ;;  %v581_v55 = vld [vmem:[#allocation2 + $0x100] sm:$0xff] }
 0x1a4   :  { %v710_v53 = vld [vmem:[#allocation2 + $0x508] sm:$0xff]  ;;  %v709_v56 = vld [vmem:[#allocation2 + $0x500] sm:$0xff] }
 0x1a5   :  { %1108 = vmatpush1.bf16.msra.mxu1 %v565_v43  ;;  %v590_v57 = vld [vmem:[#allocation2 + $0x148] sm:$0xff]  ;;  %v589_v60 = vld [vmem:[#allocation2 + $0x140] sm:$0xff] }
 0x1a6   :  { %1149 = vmatpush1.bf16.msra.mxu0 %v693_v44  ;;  %1109 = vmatprep.subr.bf16.mxu1 %v574_v46  ;;  %v718_v58 = vld [vmem:[#allocation2 + $0x548] sm:$0xff]  ;;  %v717_v61 = vld [vmem:[#allocation2 + $0x540] sm:$0xff] }
 0x1a7   :  { %1150 = vmatprep.subr.bf16.mxu0 %v702_v47  ;;  %v598_v63 = vld [vmem:[#allocation2 + $0x188] sm:$0xff]  ;;  %v597_v1 = vld [vmem:[#allocation2 + $0x180] sm:$0xff] }
 0x1a8   :  { %v726_v0 = vld [vmem:[#allocation2 + $0x588] sm:$0xff]  ;;  %v725_v3 = vld [vmem:[#allocation2 + $0x580] sm:$0xff] }
 0x1a9   :  { %1110 = vmatpush1.bf16.msra.mxu1 %v573_v49  ;;  %v606_v5 = vld [vmem:[#allocation2 + $0x1c8] sm:$0xff]  ;;  %v605_v7 = vld [vmem:[#allocation2 + $0x1c0] sm:$0xff] }
 0x1aa   :  { %1151 = vmatpush1.bf16.msra.mxu0 %v701_v50  ;;  %1111 = vmatprep.subr.bf16.mxu1 %v582_v51  ;;  %v734_v6 = vld [vmem:[#allocation2 + $0x5c8] sm:$0xff]  ;;  %v733_v8 = vld [vmem:[#allocation2 + $0x5c0] sm:$0xff] }
 0x1ab   :  { %1152 = vmatprep.subr.bf16.mxu0 %v710_v53  ;;  %v614_v10 = vld [vmem:[#allocation2 + $0x208] sm:$0xff]  ;;  %v613_v13 = vld [vmem:[#allocation2 + $0x200] sm:$0xff] }
 0x1ac   :  { %v742_v11 = vld [vmem:[#allocation2 + $0x608] sm:$0xff]  ;;  %v741_v14 = vld [vmem:[#allocation2 + $0x600] sm:$0xff] }
 0x1ad   :  { %1112 = vmatpush1.bf16.msra.mxu1 %v581_v55  ;;  %v622_v15 = vld [vmem:[#allocation2 + $0x248] sm:$0xff]  ;;  %v621_v19 = vld [vmem:[#allocation2 + $0x240] sm:$0xff]  ;;  %v552_v55 = vld [vmem:[#allocation2 + $0x18] sm:$0xff] }
 0x1ae   :  { %1153 = vmatpush1.bf16.msra.mxu0 %v709_v56  ;;  %1113 = vmatprep.subr.bf16.mxu1 %v590_v57  ;;  %v750_v17 = vld [vmem:[#allocation2 + $0x648] sm:$0xff]  ;;  %v749_v20 = vld [vmem:[#allocation2 + $0x640] sm:$0xff]  ;;  %v551_v57 = vld [vmem:[#allocation2 + $0x10] sm:$0xff] }
 0x1af   :  { %1154 = vmatprep.subr.bf16.mxu0 %v718_v58  ;;  %v630_v21 = vld [vmem:[#allocation2 + $0x288] sm:$0xff]  ;;  %v629_v23 = vld [vmem:[#allocation2 + $0x280] sm:$0xff] }
 0x1b0   :  { %v758_v22 = vld [vmem:[#allocation2 + $0x688] sm:$0xff]  ;;  %v757_v24 = vld [vmem:[#allocation2 + $0x680] sm:$0xff] }
 0x1b1   :  { %1114 = vmatpush1.bf16.msra.mxu1 %v589_v60  ;;  %v638_v25 = vld [vmem:[#allocation2 + $0x2c8] sm:$0xff]  ;;  %v637_v27 = vld [vmem:[#allocation2 + $0x2c0] sm:$0xff]  ;;  %v560_v60 = vld [vmem:[#allocation2 + $0x58] sm:$0xff] }
 0x1b2   :  { %1155 = vmatpush1.bf16.msra.mxu0 %v717_v61  ;;  %1115 = vmatprep.subr.bf16.mxu1 %v598_v63  ;;  %v766_v26 = vld [vmem:[#allocation2 + $0x6c8] sm:$0xff]  ;;  %v765_v30 = vld [vmem:[#allocation2 + $0x6c0] sm:$0xff]  ;;  %v559_v63 = vld [vmem:[#allocation2 + $0x50] sm:$0xff] }
 0x1b3   :  { %1156 = vmatprep.subr.bf16.mxu0 %v726_v0  ;;  %v646_v31 = vld [vmem:[#allocation2 + $0x308] sm:$0xff]  ;;  %v645_v33 = vld [vmem:[#allocation2 + $0x300] sm:$0xff] }
 0x1b4   :  { %v774_v32 = vld [vmem:[#allocation2 + $0x708] sm:$0xff]  ;;  %v773_v34 = vld [vmem:[#allocation2 + $0x700] sm:$0xff] }
 0x1b5   :  { %1116 = vmatpush1.bf16.msra.mxu1 %v597_v1  ;;  %v654_v35 = vld [vmem:[#allocation2 + $0x348] sm:$0xff]  ;;  %v653_v40 = vld [vmem:[#allocation2 + $0x340] sm:$0xff]  ;;  %v568_v1 = vld [vmem:[#allocation2 + $0x98] sm:$0xff] }
 0x1b6   :  { %1157 = vmatpush1.bf16.msra.mxu0 %v725_v3  ;;  %1117 = vmatprep.subr.bf16.mxu1 %v606_v5  ;;  %v782_v38 = vld [vmem:[#allocation2 + $0x748] sm:$0xff]  ;;  %v781_v41 = vld [vmem:[#allocation2 + $0x740] sm:$0xff]  ;;  %v567_v5 = vld [vmem:[#allocation2 + $0x90] sm:$0xff] }
 0x1b7   :  { %1158 = vmatprep.subr.bf16.mxu0 %v734_v6  ;;  %v662_v42 = vld [vmem:[#allocation2 + $0x388] sm:$0xff]  ;;  %v661_v44 = vld [vmem:[#allocation2 + $0x380] sm:$0xff] }
 0x1b8   :  { %v790_v43 = vld [vmem:[#allocation2 + $0x788] sm:$0xff]  ;;  %v789_v46 = vld [vmem:[#allocation2 + $0x780] sm:$0xff] }
 0x1b9   :  { %1118 = vmatpush1.bf16.msra.mxu1 %v605_v7  ;;  %v670_v47 = vld [vmem:[#allocation2 + $0x3c8] sm:$0xff]  ;;  %v669_v50 = vld [vmem:[#allocation2 + $0x3c0] sm:$0xff]  ;;  %v576_v7 = vld [vmem:[#allocation2 + $0xd8] sm:$0xff] }
 0x1ba   :  { %1159 = vmatpush1.bf16.msra.mxu0 %v733_v8  ;;  %1119 = vmatprep.subr.bf16.mxu1 %v614_v10  ;;  %v798_v49 = vld [vmem:[#allocation2 + $0x7c8] sm:$0xff]  ;;  %v797_v51 = vld [vmem:[#allocation2 + $0x7c0] sm:$0xff]  ;;  %v575_v10 = vld [vmem:[#allocation2 + $0xd0] sm:$0xff] }
 0x1bb   :  { %1160 = vmatprep.subr.bf16.mxu0 %v742_v11  ;;  %v806_v53 = vld [vmem:[#allocation2 + $0x808] sm:$0xff]  ;;  %v805_v56 = vld [vmem:[#allocation2 + $0x800] sm:$0xff] }
 0x1bc   :  { %v814_v58 = vld [vmem:[#allocation2 + $0x848] sm:$0xff]  ;;  %v813_v61 = vld [vmem:[#allocation2 + $0x840] sm:$0xff] }
 0x1bd   :  { %1120 = vmatpush1.bf16.msra.mxu1 %v613_v13  ;;  %v822_v0 = vld [vmem:[#allocation2 + $0x888] sm:$0xff]  ;;  %v821_v3 = vld [vmem:[#allocation2 + $0x880] sm:$0xff]  ;;  %v584_v13 = vld [vmem:[#allocation2 + $0x118] sm:$0xff] }
 0x1be   :  { %1161 = vmatpush1.bf16.msra.mxu0 %v741_v14  ;;  %1121 = vmatprep.subr.bf16.mxu1 %v622_v15  ;;  %v830_v6 = vld [vmem:[#allocation2 + $0x8c8] sm:$0xff]  ;;  %v829_v8 = vld [vmem:[#allocation2 + $0x8c0] sm:$0xff]  ;;  %v583_v15 = vld [vmem:[#allocation2 + $0x110] sm:$0xff] }
 0x1bf   :  { %1162 = vmatprep.subr.bf16.mxu0 %v750_v17  ;;  %v838_v11 = vld [vmem:[#allocation2 + $0x908] sm:$0xff]  ;;  %v837_v14 = vld [vmem:[#allocation2 + $0x900] sm:$0xff] }
 0x1c0   :  { %v846_v17 = vld [vmem:[#allocation2 + $0x948] sm:$0xff] }
 0x1c1   :  { %1122 = vmatpush1.bf16.msra.mxu1 %v621_v19  ;;  %v592_v19 = vld [vmem:[#allocation2 + $0x158] sm:$0xff] }
 0x1c2   :  { %1163 = vmatpush1.bf16.msra.mxu0 %v749_v20  ;;  %1123 = vmatprep.subr.bf16.mxu1 %v630_v21  ;;  %v845_v20 = vld [vmem:[#allocation2 + $0x940] sm:$0xff]  ;;  %v591_v21 = vld [vmem:[#allocation2 + $0x150] sm:$0xff] }
 0x1c3   :  { %1164 = vmatprep.subr.bf16.mxu0 %v758_v22  ;;  %v854_v22 = vld [vmem:[#allocation2 + $0x988] sm:$0xff] }
 0x1c5   :  { %1124 = vmatpush1.bf16.msra.mxu1 %v629_v23  ;;  %v600_v23 = vld [vmem:[#allocation2 + $0x198] sm:$0xff] }
 0x1c6   :  { %1165 = vmatpush1.bf16.msra.mxu0 %v757_v24  ;;  %1125 = vmatprep.subr.bf16.mxu1 %v638_v25  ;;  %v853_v24 = vld [vmem:[#allocation2 + $0x980] sm:$0xff]  ;;  %v599_v25 = vld [vmem:[#allocation2 + $0x190] sm:$0xff] }
 0x1c7   :  { %1166 = vmatprep.subr.bf16.mxu0 %v766_v26  ;;  %v862_v26 = vld [vmem:[#allocation2 + $0x9c8] sm:$0xff] }
 0x1c9   :  { %1126 = vmatpush1.bf16.msra.mxu1 %v637_v27  ;;  %v608_v27 = vld [vmem:[#allocation2 + $0x1d8] sm:$0xff] }
 0x1ca   :  { %1167 = vmatpush1.bf16.msra.mxu0 %v765_v30  ;;  %1127 = vmatprep.subr.bf16.mxu1 %v646_v31  ;;  %v861_v30 = vld [vmem:[#allocation2 + $0x9c0] sm:$0xff]  ;;  %v607_v31 = vld [vmem:[#allocation2 + $0x1d0] sm:$0xff] }
 0x1cb   :  { %1168 = vmatprep.subr.bf16.mxu0 %v774_v32  ;;  %v870_v32 = vld [vmem:[#allocation2 + $0xa08] sm:$0xff] }
 0x1cd   :  { %1128 = vmatpush1.bf16.msra.mxu1 %v645_v33  ;;  %v616_v33 = vld [vmem:[#allocation2 + $0x218] sm:$0xff] }
 0x1ce   :  { %1169 = vmatpush1.bf16.msra.mxu0 %v773_v34  ;;  %1129 = vmatprep.subr.bf16.mxu1 %v654_v35  ;;  %v869_v34 = vld [vmem:[#allocation2 + $0xa00] sm:$0xff]  ;;  %v615_v35 = vld [vmem:[#allocation2 + $0x210] sm:$0xff] }
 0x1cf   :  { %1170 = vmatprep.subr.bf16.mxu0 %v782_v38  ;;  %v878_v38 = vld [vmem:[#allocation2 + $0xa48] sm:$0xff] }
 0x1d1   :  { %1130 = vmatpush1.bf16.msra.mxu1 %v653_v40  ;;  %v624_v40 = vld [vmem:[#allocation2 + $0x258] sm:$0xff] }
 0x1d2   :  { %1171 = vmatpush1.bf16.msra.mxu0 %v781_v41  ;;  %1131 = vmatprep.subr.bf16.mxu1 %v662_v42  ;;  %v877_v41 = vld [vmem:[#allocation2 + $0xa40] sm:$0xff]  ;;  %v623_v42 = vld [vmem:[#allocation2 + $0x250] sm:$0xff] }
 0x1d3   :  { %1172 = vmatprep.subr.bf16.mxu0 %v790_v43  ;;  %v886_v43 = vld [vmem:[#allocation2 + $0xa88] sm:$0xff] }
 0x1d5   :  { %1132 = vmatpush1.bf16.msra.mxu1 %v661_v44  ;;  %v632_v44 = vld [vmem:[#allocation2 + $0x298] sm:$0xff] }
 0x1d6   :  { %1173 = vmatpush1.bf16.msra.mxu0 %v789_v46  ;;  %1133 = vmatprep.subr.bf16.mxu1 %v670_v47  ;;  %v885_v46 = vld [vmem:[#allocation2 + $0xa80] sm:$0xff]  ;;  %v631_v47 = vld [vmem:[#allocation2 + $0x290] sm:$0xff] }
 0x1d7   :  { %1174 = vmatprep.subr.bf16.mxu0 %v798_v49  ;;  %v894_v49 = vld [vmem:[#allocation2 + $0xac8] sm:$0xff] }
 0x1d9   :  { %1134 = vmatpush1.bf16.msra.mxu1 %v669_v50  ;;  %v640_v50 = vld [vmem:[#allocation2 + $0x2d8] sm:$0xff] }
 0x1da   :  { %1175 = vmatpush1.bf16.msra.mxu0 %v797_v51  ;;  %1267 = vmatprep.subr.bf16.mxu1 %v552_v55  ;;  %v893_v51 = vld [vmem:[#allocation2 + $0xac0] sm:$0xff]  ;;  %v902_v55 = vld [vmem:[#allocation2 + $0xb08] sm:$0xff] }
 0x1db   :  { %1185 = vmatprep.subr.bf16.mxu0 %v806_v53  ;;  %v639_v53 = vld [vmem:[#allocation2 + $0x2d0] sm:$0xff] }
 0x1dc   :  { %1136 = vmatmul.mubr.bf16.vlgmr.msra.gmra.mrb[0].mxu1 %v3371_v52 }
 0x1dd   :  { %1177 = vmatmul.mubr.bf16.vlgmr.msra.gmra.mrb[16].mxu0 %v3379_v2  ;;  %1268 = vmatpush1.bf16.msra.mxu1 %v551_v57  ;;  %v901_v57 = vld [vmem:[#allocation2 + $0xb00] sm:$0xff] }
 0x1de   :  { %1186 = vmatpush1.bf16.msra.mxu0 %v805_v56  ;;  %1269 = vmatprep.subr.bf16.mxu1 %v560_v60  ;;  %v648_v56 = vld [vmem:[#allocation2 + $0x318] sm:$0xff]  ;;  %v910_v60 = vld [vmem:[#allocation2 + $0xb48] sm:$0xff] }
 0x1df   :  { %1187 = vmatprep.subr.bf16.mxu0 %v814_v58  ;;  %1217 = vmatprep.mubr.bf16.mxu0 %v3393_v18  ;;  %v647_v58 = vld [vmem:[#allocation2 + $0x310] sm:$0xff] }
 0x1e0   :  { %1299 = vmatprep.mubr.bf16.mxu1 %v3374_v54 }
 0x1e1   :  { %1270 = vmatpush1.bf16.msra.mxu1 %v559_v63  ;;  %v909_v63 = vld [vmem:[#allocation2 + $0xb40] sm:$0xff] }
 0x1e2   :  { %1188 = vmatpush1.bf16.msra.mxu0 %v813_v61  ;;  %1271 = vmatprep.subr.bf16.mxu1 %v568_v1  ;;  %v656_v61 = vld [vmem:[#allocation2 + $0x358] sm:$0xff]  ;;  %v918_v1 = vld [vmem:[#allocation2 + $0xb88] sm:$0xff] }
 0x1e3   :  { %1189 = vmatprep.subr.bf16.mxu0 %v822_v0  ;;  %v655_v0 = vld [vmem:[#allocation2 + $0x350] sm:$0xff] }
 0x1e5   :  { %1272 = vmatpush1.bf16.msra.mxu1 %v567_v5  ;;  %v917_v5 = vld [vmem:[#allocation2 + $0xb80] sm:$0xff] }
 0x1e6   :  { %1190 = vmatpush1.bf16.msra.mxu0 %v821_v3  ;;  %1273 = vmatprep.subr.bf16.mxu1 %v576_v7  ;;  %v664_v3 = vld [vmem:[#allocation2 + $0x398] sm:$0xff]  ;;  %v926_v7 = vld [vmem:[#allocation2 + $0xbc8] sm:$0xff] }
 0x1e7   :  { %1191 = vmatprep.subr.bf16.mxu0 %v830_v6  ;;  %v663_v6 = vld [vmem:[#allocation2 + $0x390] sm:$0xff] }
 0x1e9   :  { %1274 = vmatpush1.bf16.msra.mxu1 %v575_v10  ;;  %v925_v10 = vld [vmem:[#allocation2 + $0xbc0] sm:$0xff] }
 0x1ea   :  { %1192 = vmatpush1.bf16.msra.mxu0 %v829_v8  ;;  %1275 = vmatprep.subr.bf16.mxu1 %v584_v13  ;;  %v672_v8 = vld [vmem:[#allocation2 + $0x3d8] sm:$0xff]  ;;  %v934_v13 = vld [vmem:[#allocation2 + $0xc08] sm:$0xff] }
 0x1eb   :  { %1193 = vmatprep.subr.bf16.mxu0 %v838_v11  ;;  %v671_v11 = vld [vmem:[#allocation2 + $0x3d0] sm:$0xff] }
 0x1ed   :  { %1276 = vmatpush1.bf16.msra.mxu1 %v583_v15  ;;  %v933_v15 = vld [vmem:[#allocation2 + $0xc00] sm:$0xff] }
 0x1ee   :  { %1194 = vmatpush1.bf16.msra.mxu0 %v837_v14  ;;  %1277 = vmatprep.subr.bf16.mxu1 %v592_v19  ;;  %v680_v14 = vld [vmem:[#allocation2 + $0x418] sm:$0xff]  ;;  %v942_v19 = vld [vmem:[#allocation2 + $0xc48] sm:$0xff] }
 0x1ef   :  { %1195 = vmatprep.subr.bf16.mxu0 %v846_v17  ;;  %v679_v17 = vld [vmem:[#allocation2 + $0x410] sm:$0xff] }
 0x1f1   :  { %1278 = vmatpush1.bf16.msra.mxu1 %v591_v21  ;;  %v941_v21 = vld [vmem:[#allocation2 + $0xc40] sm:$0xff] }
 0x1f2   :  { %1196 = vmatpush1.bf16.msra.mxu0 %v845_v20  ;;  %1279 = vmatprep.subr.bf16.mxu1 %v600_v23  ;;  %v688_v20 = vld [vmem:[#allocation2 + $0x458] sm:$0xff]  ;;  %v950_v23 = vld [vmem:[#allocation2 + $0xc88] sm:$0xff] }
 0x1f3   :  { %1197 = vmatprep.subr.bf16.mxu0 %v854_v22  ;;  %v687_v22 = vld [vmem:[#allocation2 + $0x450] sm:$0xff] }
 0x1f5   :  { %1280 = vmatpush1.bf16.msra.mxu1 %v599_v25  ;;  %v949_v25 = vld [vmem:[#allocation2 + $0xc80] sm:$0xff] }
 0x1f6   :  { %1198 = vmatpush1.bf16.msra.mxu0 %v853_v24  ;;  %1281 = vmatprep.subr.bf16.mxu1 %v608_v27  ;;  %v696_v24 = vld [vmem:[#allocation2 + $0x498] sm:$0xff]  ;;  %v958_v27 = vld [vmem:[#allocation2 + $0xcc8] sm:$0xff] }
 0x1f7   :  { %1199 = vmatprep.subr.bf16.mxu0 %v862_v26  ;;  %v695_v26 = vld [vmem:[#allocation2 + $0x490] sm:$0xff] }
 0x1f9   :  { %1282 = vmatpush1.bf16.msra.mxu1 %v607_v31  ;;  %v957_v31 = vld [vmem:[#allocation2 + $0xcc0] sm:$0xff] }
 0x1fa   :  { %1200 = vmatpush1.bf16.msra.mxu0 %v861_v30  ;;  %1283 = vmatprep.subr.bf16.mxu1 %v616_v33  ;;  %v704_v30 = vld [vmem:[#allocation2 + $0x4d8] sm:$0xff]  ;;  %v966_v33 = vld [vmem:[#allocation2 + $0xd08] sm:$0xff] }
 0x1fb   :  { %1201 = vmatprep.subr.bf16.mxu0 %v870_v32  ;;  %v703_v32 = vld [vmem:[#allocation2 + $0x4d0] sm:$0xff] }
 0x1fd   :  { %1284 = vmatpush1.bf16.msra.mxu1 %v615_v35  ;;  %v965_v35 = vld [vmem:[#allocation2 + $0xd00] sm:$0xff] }
 0x1fe   :  { %1202 = vmatpush1.bf16.msra.mxu0 %v869_v34  ;;  %1285 = vmatprep.subr.bf16.mxu1 %v624_v40  ;;  %v712_v34 = vld [vmem:[#allocation2 + $0x518] sm:$0xff]  ;;  %v974_v40 = vld [vmem:[#allocation2 + $0xd48] sm:$0xff] }
 0x1ff   :  { %1203 = vmatprep.subr.bf16.mxu0 %v878_v38  ;;  %v711_v38 = vld [vmem:[#allocation2 + $0x510] sm:$0xff] }
 0x201   :  { %1286 = vmatpush1.bf16.msra.mxu1 %v623_v42  ;;  %v973_v42 = vld [vmem:[#allocation2 + $0xd40] sm:$0xff] }
 0x202   :  { %1204 = vmatpush1.bf16.msra.mxu0 %v877_v41  ;;  %1287 = vmatprep.subr.bf16.mxu1 %v632_v44  ;;  %v720_v41 = vld [vmem:[#allocation2 + $0x558] sm:$0xff]  ;;  %v982_v44 = vld [vmem:[#allocation2 + $0xd88] sm:$0xff] }
 0x203   :  { %1205 = vmatprep.subr.bf16.mxu0 %v886_v43  ;;  %v719_v43 = vld [vmem:[#allocation2 + $0x550] sm:$0xff] }
 0x205   :  { %1288 = vmatpush1.bf16.msra.mxu1 %v631_v47  ;;  %v981_v47 = vld [vmem:[#allocation2 + $0xd80] sm:$0xff] }
 0x206   :  { %1206 = vmatpush1.bf16.msra.mxu0 %v885_v46  ;;  %1289 = vmatprep.subr.bf16.mxu1 %v640_v50  ;;  %v728_v46 = vld [vmem:[#allocation2 + $0x598] sm:$0xff]  ;;  %v990_v50 = vld [vmem:[#allocation2 + $0xdc8] sm:$0xff] }
 0x207   :  { %1207 = vmatprep.subr.bf16.mxu0 %v894_v49  ;;  %v727_v49 = vld [vmem:[#allocation2 + $0x590] sm:$0xff] }
 0x209   :  { %1290 = vmatpush1.bf16.msra.mxu1 %v639_v53  ;;  %v989_v53 = vld [vmem:[#allocation2 + $0xdc0] sm:$0xff] }
 0x20a   :  { %1208 = vmatpush1.bf16.msra.mxu0 %v893_v51  ;;  %1291 = vmatprep.subr.bf16.mxu1 %v648_v56  ;;  %v736_v51 = vld [vmem:[#allocation2 + $0x5d8] sm:$0xff]  ;;  %v998_v56 = vld [vmem:[#allocation2 + $0xe08] sm:$0xff] }
 0x20b   :  { %1209 = vmatprep.subr.bf16.mxu0 %v902_v55  ;;  %v735_v55 = vld [vmem:[#allocation2 + $0x5d0] sm:$0xff] }
 0x20d   :  { %1292 = vmatpush1.bf16.msra.mxu1 %v647_v58  ;;  %v997_v58 = vld [vmem:[#allocation2 + $0xe00] sm:$0xff] }
 0x20e   :  { %1210 = vmatpush1.bf16.msra.mxu0 %v901_v57  ;;  %1293 = vmatprep.subr.bf16.mxu1 %v656_v61  ;;  %v744_v57 = vld [vmem:[#allocation2 + $0x618] sm:$0xff]  ;;  %v1006_v61 = vld [vmem:[#allocation2 + $0xe48] sm:$0xff] }
 0x20f   :  { %1211 = vmatprep.subr.bf16.mxu0 %v910_v60  ;;  %v743_v60 = vld [vmem:[#allocation2 + $0x610] sm:$0xff] }
 0x211   :  { %1294 = vmatpush1.bf16.msra.mxu1 %v655_v0  ;;  %v1005_v0 = vld [vmem:[#allocation2 + $0xe40] sm:$0xff] }
 0x212   :  { %1212 = vmatpush1.bf16.msra.mxu0 %v909_v63  ;;  %1295 = vmatprep.subr.bf16.mxu1 %v664_v3  ;;  %v752_v63 = vld [vmem:[#allocation2 + $0x658] sm:$0xff]  ;;  %v1014_v3 = vld [vmem:[#allocation2 + $0xe88] sm:$0xff] }
 0x213   :  { %1213 = vmatprep.subr.bf16.mxu0 %v918_v1  ;;  %v751_v1 = vld [vmem:[#allocation2 + $0x650] sm:$0xff] }
 0x215   :  { %1296 = vmatpush1.bf16.msra.mxu1 %v663_v6  ;;  %v1013_v6 = vld [vmem:[#allocation2 + $0xe80] sm:$0xff] }
 0x216   :  { %1214 = vmatpush1.bf16.msra.mxu0 %v917_v5  ;;  %1297 = vmatprep.subr.bf16.mxu1 %v672_v8  ;;  %v760_v5 = vld [vmem:[#allocation2 + $0x698] sm:$0xff]  ;;  %v1022_v8 = vld [vmem:[#allocation2 + $0xec8] sm:$0xff] }
 0x217   :  { %1215 = vmatprep.subr.bf16.mxu0 %v926_v7  ;;  %v759_v7 = vld [vmem:[#allocation2 + $0x690] sm:$0xff] }
 0x219   :  { %1298 = vmatpush1.bf16.msra.mxu1 %v671_v11  ;;  %v1021_v11 = vld [vmem:[#allocation2 + $0xec0] sm:$0xff] }
 0x21a   :  { %1216 = vmatpush1.bf16.msra.mxu0 %v925_v10  ;;  %1308 = vmatprep.subr.bf16.mxu1 %v680_v14  ;;  %v768_v10 = vld [vmem:[#allocation2 + $0x6d8] sm:$0xff]  ;;  %v1030_v14 = vld [vmem:[#allocation2 + $0xf08] sm:$0xff] }
 0x21b   :  { %1226 = vmatprep.subr.bf16.mxu0 %v934_v13  ;;  %v767_v13 = vld [vmem:[#allocation2 + $0x6d0] sm:$0xff] }
 0x21c   :  { %1300 = vmatmul.mubr.bf16.vlgmr.msra.gmra.mrb[4].mxu1 %v3371_v52 }
 0x21d   :  { %1218 = vmatmul.mubr.bf16.vlgmr.msra.gmra.mrb[16].mxu0 %v3389_v16  ;;  %1309 = vmatpush1.bf16.msra.mxu1 %v679_v17  ;;  %v1029_v17 = vld [vmem:[#allocation2 + $0xf00] sm:$0xff] }
 0x21e   :  { %1227 = vmatpush1.bf16.msra.mxu0 %v933_v15  ;;  %1310 = vmatprep.subr.bf16.mxu1 %v688_v20  ;;  %v776_v15 = vld [vmem:[#allocation2 + $0x718] sm:$0xff]  ;;  %v1038_v20 = vld [vmem:[#allocation2 + $0xf48] sm:$0xff] }
 0x21f   :  { %1228 = vmatprep.subr.bf16.mxu0 %v942_v19  ;;  %1258 = vmatprep.mubr.bf16.mxu0 %v3399_v29  ;;  %v775_v19 = vld [vmem:[#allocation2 + $0x710] sm:$0xff] }
 0x220   :  { %1340 = vmatprep.mubr.bf16.mxu1 %v3383_v4 }
 0x221   :  { %1311 = vmatpush1.bf16.msra.mxu1 %v687_v22  ;;  %v1037_v22 = vld [vmem:[#allocation2 + $0xf40] sm:$0xff] }
 0x222   :  { %1229 = vmatpush1.bf16.msra.mxu0 %v941_v21  ;;  %1312 = vmatprep.subr.bf16.mxu1 %v696_v24  ;;  %v784_v21 = vld [vmem:[#allocation2 + $0x758] sm:$0xff]  ;;  %v1046_v24 = vld [vmem:[#allocation2 + $0xf88] sm:$0xff] }
 0x223   :  { %1230 = vmatprep.subr.bf16.mxu0 %v950_v23  ;;  %v783_v23 = vld [vmem:[#allocation2 + $0x750] sm:$0xff] }
 0x225   :  { %1313 = vmatpush1.bf16.msra.mxu1 %v695_v26  ;;  %v1045_v26 = vld [vmem:[#allocation2 + $0xf80] sm:$0xff] }
 0x226   :  { %1231 = vmatpush1.bf16.msra.mxu0 %v949_v25  ;;  %1314 = vmatprep.subr.bf16.mxu1 %v704_v30  ;;  %v792_v25 = vld [vmem:[#allocation2 + $0x798] sm:$0xff]  ;;  %v1054_v30 = vld [vmem:[#allocation2 + $0xfc8] sm:$0xff] }
 0x227   :  { %1232 = vmatprep.subr.bf16.mxu0 %v958_v27  ;;  %v791_v27 = vld [vmem:[#allocation2 + $0x790] sm:$0xff] }
 0x229   :  { %1315 = vmatpush1.bf16.msra.mxu1 %v703_v32  ;;  %v1053_v32 = vld [vmem:[#allocation2 + $0xfc0] sm:$0xff] }
 0x22a   :  { %1233 = vmatpush1.bf16.msra.mxu0 %v957_v31  ;;  %1316 = vmatprep.subr.bf16.mxu1 %v712_v34  ;;  %v800_v31 = vld [vmem:[#allocation2 + $0x7d8] sm:$0xff] }
 0x22b   :  { %1234 = vmatprep.subr.bf16.mxu0 %v966_v33  ;;  %v799_v33 = vld [vmem:[#allocation2 + $0x7d0] sm:$0xff]  ;;  %v808_v34 = vld [vmem:[#allocation2 + $0x818] sm:$0xff] }
 0x22d   :  { %1317 = vmatpush1.bf16.msra.mxu1 %v711_v38  ;;  %v807_v38 = vld [vmem:[#allocation2 + $0x810] sm:$0xff] }
 0x22e   :  { %1235 = vmatpush1.bf16.msra.mxu0 %v965_v35  ;;  %1318 = vmatprep.subr.bf16.mxu1 %v720_v41  ;;  %v554_v35 = vld [vmem:[#allocation2 + $0x28] sm:$0xff]  ;;  %v816_v41 = vld [vmem:[#allocation2 + $0x858] sm:$0xff] }
 0x22f   :  { %1236 = vmatprep.subr.bf16.mxu0 %v974_v40  ;;  %v553_v40 = vld [vmem:[#allocation2 + $0x20] sm:$0xff] }
 0x231   :  { %1319 = vmatpush1.bf16.msra.mxu1 %v719_v43  ;;  %v815_v43 = vld [vmem:[#allocation2 + $0x850] sm:$0xff] }
 0x232   :  { %1237 = vmatpush1.bf16.msra.mxu0 %v973_v42  ;;  %1320 = vmatprep.subr.bf16.mxu1 %v728_v46  ;;  %v562_v42 = vld [vmem:[#allocation2 + $0x68] sm:$0xff]  ;;  %v824_v46 = vld [vmem:[#allocation2 + $0x898] sm:$0xff] }
 0x233   :  { %1238 = vmatprep.subr.bf16.mxu0 %v982_v44  ;;  %v561_v44 = vld [vmem:[#allocation2 + $0x60] sm:$0xff] }
 0x235   :  { %1321 = vmatpush1.bf16.msra.mxu1 %v727_v49  ;;  %v823_v49 = vld [vmem:[#allocation2 + $0x890] sm:$0xff] }
 0x236   :  { %1239 = vmatpush1.bf16.msra.mxu0 %v981_v47  ;;  %1322 = vmatprep.subr.bf16.mxu1 %v736_v51  ;;  %v570_v47 = vld [vmem:[#allocation2 + $0xa8] sm:$0xff]  ;;  %v832_v51 = vld [vmem:[#allocation2 + $0x8d8] sm:$0xff] }
 0x237   :  { %1240 = vmatprep.subr.bf16.mxu0 %v990_v50  ;;  %v569_v50 = vld [vmem:[#allocation2 + $0xa0] sm:$0xff] }
 0x239   :  { %1323 = vmatpush1.bf16.msra.mxu1 %v735_v55  ;;  %v831_v55 = vld [vmem:[#allocation2 + $0x8d0] sm:$0xff] }
 0x23a   :  { %1241 = vmatpush1.bf16.msra.mxu0 %v989_v53  ;;  %1324 = vmatprep.subr.bf16.mxu1 %v744_v57  ;;  %v578_v53 = vld [vmem:[#allocation2 + $0xe8] sm:$0xff]  ;;  %v840_v57 = vld [vmem:[#allocation2 + $0x918] sm:$0xff] }
 0x23b   :  { %1242 = vmatprep.subr.bf16.mxu0 %v998_v56  ;;  %v577_v56 = vld [vmem:[#allocation2 + $0xe0] sm:$0xff] }
 0x23d   :  { %1325 = vmatpush1.bf16.msra.mxu1 %v743_v60  ;;  %v839_v60 = vld [vmem:[#allocation2 + $0x910] sm:$0xff] }
 0x23e   :  { %1243 = vmatpush1.bf16.msra.mxu0 %v997_v58  ;;  %1326 = vmatprep.subr.bf16.mxu1 %v752_v63  ;;  %v586_v58 = vld [vmem:[#allocation2 + $0x128] sm:$0xff]  ;;  %v848_v63 = vld [vmem:[#allocation2 + $0x958] sm:$0xff] }
 0x23f   :  { %1244 = vmatprep.subr.bf16.mxu0 %v1006_v61  ;;  %v585_v61 = vld [vmem:[#allocation2 + $0x120] sm:$0xff] }
 0x241   :  { %1327 = vmatpush1.bf16.msra.mxu1 %v751_v1  ;;  %v847_v1 = vld [vmem:[#allocation2 + $0x950] sm:$0xff] }
 0x242   :  { %1245 = vmatpush1.bf16.msra.mxu0 %v1005_v0  ;;  %1328 = vmatprep.subr.bf16.mxu1 %v760_v5  ;;  %v594_v0 = vld [vmem:[#allocation2 + $0x168] sm:$0xff]  ;;  %v856_v5 = vld [vmem:[#allocation2 + $0x998] sm:$0xff] }
 0x243   :  { %1246 = vmatprep.subr.bf16.mxu0 %v1014_v3  ;;  %v593_v3 = vld [vmem:[#allocation2 + $0x160] sm:$0xff] }
 0x245   :  { %1329 = vmatpush1.bf16.msra.mxu1 %v759_v7  ;;  %v855_v7 = vld [vmem:[#allocation2 + $0x990] sm:$0xff] }
 0x246   :  { %1247 = vmatpush1.bf16.msra.mxu0 %v1013_v6  ;;  %1330 = vmatprep.subr.bf16.mxu1 %v768_v10  ;;  %v602_v6 = vld [vmem:[#allocation2 + $0x1a8] sm:$0xff]  ;;  %v864_v10 = vld [vmem:[#allocation2 + $0x9d8] sm:$0xff] }
 0x247   :  { %1248 = vmatprep.subr.bf16.mxu0 %v1022_v8  ;;  %v601_v8 = vld [vmem:[#allocation2 + $0x1a0] sm:$0xff] }
 0x249   :  { %1331 = vmatpush1.bf16.msra.mxu1 %v767_v13  ;;  %v863_v13 = vld [vmem:[#allocation2 + $0x9d0] sm:$0xff] }
 0x24a   :  { %1249 = vmatpush1.bf16.msra.mxu0 %v1021_v11  ;;  %1332 = vmatprep.subr.bf16.mxu1 %v776_v15  ;;  %v610_v11 = vld [vmem:[#allocation2 + $0x1e8] sm:$0xff]  ;;  %v872_v15 = vld [vmem:[#allocation2 + $0xa18] sm:$0xff] }
 0x24b   :  { %1250 = vmatprep.subr.bf16.mxu0 %v1030_v14  ;;  %v609_v14 = vld [vmem:[#allocation2 + $0x1e0] sm:$0xff] }
 0x24d   :  { %1333 = vmatpush1.bf16.msra.mxu1 %v775_v19  ;;  %v871_v19 = vld [vmem:[#allocation2 + $0xa10] sm:$0xff] }
 0x24e   :  { %1251 = vmatpush1.bf16.msra.mxu0 %v1029_v17  ;;  %1334 = vmatprep.subr.bf16.mxu1 %v784_v21  ;;  %v618_v17 = vld [vmem:[#allocation2 + $0x228] sm:$0xff]  ;;  %v880_v21 = vld [vmem:[#allocation2 + $0xa58] sm:$0xff] }
 0x24f   :  { %1252 = vmatprep.subr.bf16.mxu0 %v1038_v20  ;;  %v617_v20 = vld [vmem:[#allocation2 + $0x220] sm:$0xff] }
 0x251   :  { %1335 = vmatpush1.bf16.msra.mxu1 %v783_v23  ;;  %v879_v23 = vld [vmem:[#allocation2 + $0xa50] sm:$0xff] }
 0x252   :  { %1253 = vmatpush1.bf16.msra.mxu0 %v1037_v22  ;;  %1336 = vmatprep.subr.bf16.mxu1 %v792_v25  ;;  %v626_v22 = vld [vmem:[#allocation2 + $0x268] sm:$0xff]  ;;  %v888_v25 = vld [vmem:[#allocation2 + $0xa98] sm:$0xff] }
 0x253   :  { %1254 = vmatprep.subr.bf16.mxu0 %v1046_v24  ;;  %v625_v24 = vld [vmem:[#allocation2 + $0x260] sm:$0xff] }
 0x255   :  { %1337 = vmatpush1.bf16.msra.mxu1 %v791_v27  ;;  %v887_v27 = vld [vmem:[#allocation2 + $0xa90] sm:$0xff] }
 0x256   :  { %1255 = vmatpush1.bf16.msra.mxu0 %v1045_v26  ;;  %1338 = vmatprep.subr.bf16.mxu1 %v800_v31  ;;  %v634_v26 = vld [vmem:[#allocation2 + $0x2a8] sm:$0xff]  ;;  %v896_v31 = vld [vmem:[#allocation2 + $0xad8] sm:$0xff] }
 0x257   :  { %1256 = vmatprep.subr.bf16.mxu0 %v1054_v30  ;;  %v633_v30 = vld [vmem:[#allocation2 + $0x2a0] sm:$0xff] }
 0x259   :  { %1339 = vmatpush1.bf16.msra.mxu1 %v799_v33  ;;  %v895_v33 = vld [vmem:[#allocation2 + $0xad0] sm:$0xff] }
 0x25a   :  { %1257 = vmatpush1.bf16.msra.mxu0 %v1053_v32  ;;  %1349 = vmatprep.subr.bf16.mxu1 %v808_v34  ;;  %v642_v32 = vld [vmem:[#allocation2 + $0x2e8] sm:$0xff]  ;;  %v641_v34 = vld [vmem:[#allocation2 + $0x2e0] sm:$0xff] }
 0x25b   :  { %1431 = vmatprep.subr.bf16.mxu0 %v554_v35  ;;  %v904_v35 = vld [vmem:[#allocation2 + $0xb18] sm:$0xff] }
 0x25c   :  { %1341 = vmatmul.mubr.bf16.vlgmr.msra.gmra.mrb[4].mxu1 %v3379_v2 }
 0x25d   :  { %1259 = vmatmul.mubr.bf16.vlgmr.msra.gmra.mrb[16].mxu0 %v3397_v28  ;;  %1350 = vmatpush1.bf16.msra.mxu1 %v807_v38  ;;  %v650_v38 = vld [vmem:[#allocation2 + $0x328] sm:$0xff] }
 0x25e   :  { %1432 = vmatpush1.bf16.msra.mxu0 %v553_v40  ;;  %1351 = vmatprep.subr.bf16.mxu1 %v816_v41  ;;  %v903_v40 = vld [vmem:[#allocation2 + $0xb10] sm:$0xff]  ;;  %v649_v41 = vld [vmem:[#allocation2 + $0x320] sm:$0xff] }
 0x25f   :  { %1433 = vmatprep.subr.bf16.mxu0 %v562_v42  ;;  %1381 = vmatprep.mubr.bf16.mxu1 %v3393_v18  ;;  %v912_v42 = vld [vmem:[#allocation2 + $0xb58] sm:$0xff] }
 0x260   :  { %1463 = vmatprep.mubr.bf16.mxu0 %v3374_v54 }
 0x261   :  { %1352 = vmatpush1.bf16.msra.mxu1 %v815_v43  ;;  %v658_v43 = vld [vmem:[#allocation2 + $0x368] sm:$0xff] }
 0x262   :  { %1434 = vmatpush1.bf16.msra.mxu0 %v561_v44  ;;  %1353 = vmatprep.subr.bf16.mxu1 %v824_v46  ;;  %v911_v44 = vld [vmem:[#allocation2 + $0xb50] sm:$0xff]  ;;  %v657_v46 = vld [vmem:[#allocation2 + $0x360] sm:$0xff] }
 0x263   :  { %1435 = vmatprep.subr.bf16.mxu0 %v570_v47  ;;  %v920_v47 = vld [vmem:[#allocation2 + $0xb98] sm:$0xff] }
 0x265   :  { %1354 = vmatpush1.bf16.msra.mxu1 %v823_v49  ;;  %v666_v49 = vld [vmem:[#allocation2 + $0x3a8] sm:$0xff] }
 0x266   :  { %1436 = vmatpush1.bf16.msra.mxu0 %v569_v50  ;;  %1355 = vmatprep.subr.bf16.mxu1 %v832_v51  ;;  %v919_v50 = vld [vmem:[#allocation2 + $0xb90] sm:$0xff]  ;;  %v665_v51 = vld [vmem:[#allocation2 + $0x3a0] sm:$0xff] }
 0x267   :  { %1437 = vmatprep.subr.bf16.mxu0 %v578_v53  ;;  %v928_v53 = vld [vmem:[#allocation2 + $0xbd8] sm:$0xff] }
 0x269   :  { %1356 = vmatpush1.bf16.msra.mxu1 %v831_v55  ;;  %v674_v55 = vld [vmem:[#allocation2 + $0x3e8] sm:$0xff] }
 0x26a   :  { %1438 = vmatpush1.bf16.msra.mxu0 %v577_v56  ;;  %1357 = vmatprep.subr.bf16.mxu1 %v840_v57  ;;  %v927_v56 = vld [vmem:[#allocation2 + $0xbd0] sm:$0xff]  ;;  %v673_v57 = vld [vmem:[#allocation2 + $0x3e0] sm:$0xff] }
 0x26b   :  { %1439 = vmatprep.subr.bf16.mxu0 %v586_v58  ;;  %v936_v58 = vld [vmem:[#allocation2 + $0xc18] sm:$0xff] }
 0x26d   :  { %1358 = vmatpush1.bf16.msra.mxu1 %v839_v60  ;;  %v682_v60 = vld [vmem:[#allocation2 + $0x428] sm:$0xff] }
 0x26e   :  { %1440 = vmatpush1.bf16.msra.mxu0 %v585_v61  ;;  %1359 = vmatprep.subr.bf16.mxu1 %v848_v63  ;;  %v935_v61 = vld [vmem:[#allocation2 + $0xc10] sm:$0xff]  ;;  %v681_v63 = vld [vmem:[#allocation2 + $0x420] sm:$0xff] }
 0x26f   :  { %1441 = vmatprep.subr.bf16.mxu0 %v594_v0  ;;  %v944_v0 = vld [vmem:[#allocation2 + $0xc58] sm:$0xff] }
 0x271   :  { %1360 = vmatpush1.bf16.msra.mxu1 %v847_v1  ;;  %v690_v1 = vld [vmem:[#allocation2 + $0x468] sm:$0xff] }
 0x272   :  { %1442 = vmatpush1.bf16.msra.mxu0 %v593_v3  ;;  %1361 = vmatprep.subr.bf16.mxu1 %v856_v5  ;;  %v943_v3 = vld [vmem:[#allocation2 + $0xc50] sm:$0xff]  ;;  %v689_v5 = vld [vmem:[#allocation2 + $0x460] sm:$0xff] }
 0x273   :  { %1443 = vmatprep.subr.bf16.mxu0 %v602_v6  ;;  %v952_v6 = vld [vmem:[#allocation2 + $0xc98] sm:$0xff] }
 0x275   :  { %1362 = vmatpush1.bf16.msra.mxu1 %v855_v7  ;;  %v698_v7 = vld [vmem:[#allocation2 + $0x4a8] sm:$0xff] }
 0x276   :  { %1444 = vmatpush1.bf16.msra.mxu0 %v601_v8  ;;  %1363 = vmatprep.subr.bf16.mxu1 %v864_v10  ;;  %v951_v8 = vld [vmem:[#allocation2 + $0xc90] sm:$0xff]  ;;  %v697_v10 = vld [vmem:[#allocation2 + $0x4a0] sm:$0xff] }
 0x277   :  { %1445 = vmatprep.subr.bf16.mxu0 %v610_v11  ;;  %v960_v11 = vld [vmem:[#allocation2 + $0xcd8] sm:$0xff] }
 0x279   :  { %1364 = vmatpush1.bf16.msra.mxu1 %v863_v13  ;;  %v706_v13 = vld [vmem:[#allocation2 + $0x4e8] sm:$0xff] }
 0x27a   :  { %1446 = vmatpush1.bf16.msra.mxu0 %v609_v14  ;;  %1365 = vmatprep.subr.bf16.mxu1 %v872_v15  ;;  %v959_v14 = vld [vmem:[#allocation2 + $0xcd0] sm:$0xff]  ;;  %v705_v15 = vld [vmem:[#allocation2 + $0x4e0] sm:$0xff] }
 0x27b   :  { %1447 = vmatprep.subr.bf16.mxu0 %v618_v17  ;;  %v968_v17 = vld [vmem:[#allocation2 + $0xd18] sm:$0xff] }
 0x27d   :  { %1366 = vmatpush1.bf16.msra.mxu1 %v871_v19  ;;  %v714_v19 = vld [vmem:[#allocation2 + $0x528] sm:$0xff] }
 0x27e   :  { %1448 = vmatpush1.bf16.msra.mxu0 %v617_v20  ;;  %1367 = vmatprep.subr.bf16.mxu1 %v880_v21  ;;  %v967_v20 = vld [vmem:[#allocation2 + $0xd10] sm:$0xff]  ;;  %v713_v21 = vld [vmem:[#allocation2 + $0x520] sm:$0xff] }
 0x27f   :  { %1449 = vmatprep.subr.bf16.mxu0 %v626_v22  ;;  %v976_v22 = vld [vmem:[#allocation2 + $0xd58] sm:$0xff] }
 0x281   :  { %1368 = vmatpush1.bf16.msra.mxu1 %v879_v23  ;;  %v722_v23 = vld [vmem:[#allocation2 + $0x568] sm:$0xff] }
 0x282   :  { %1450 = vmatpush1.bf16.msra.mxu0 %v625_v24  ;;  %1369 = vmatprep.subr.bf16.mxu1 %v888_v25  ;;  %v975_v24 = vld [vmem:[#allocation2 + $0xd50] sm:$0xff]  ;;  %v721_v25 = vld [vmem:[#allocation2 + $0x560] sm:$0xff] }
 0x283   :  { %1451 = vmatprep.subr.bf16.mxu0 %v634_v26 }
 0x285   :  { %1370 = vmatpush1.bf16.msra.mxu1 %v887_v27  ;;  %v984_v27 = vld [vmem:[#allocation2 + $0xd98] sm:$0xff] }
 0x286   :  { %1452 = vmatpush1.bf16.msra.mxu0 %v633_v30  ;;  %1371 = vmatprep.subr.bf16.mxu1 %v896_v31  ;;  %v730_v30 = vld [vmem:[#allocation2 + $0x5a8] sm:$0xff] }
 0x287   :  { %1453 = vmatprep.subr.bf16.mxu0 %v642_v32 }
 0x289   :  { %1372 = vmatpush1.bf16.msra.mxu1 %v895_v33 }
 0x28a   :  { %1454 = vmatpush1.bf16.msra.mxu0 %v641_v34  ;;  %1373 = vmatprep.subr.bf16.mxu1 %v904_v35  ;;  %v983_v34 = vld [vmem:[#allocation2 + $0xd90] sm:$0xff]  ;;  %v729_v35 = vld [vmem:[#allocation2 + $0x5a0] sm:$0xff] }
 0x28b   :  { %1455 = vmatprep.subr.bf16.mxu0 %v650_v38  ;;  %v992_v38 = vld [vmem:[#allocation2 + $0xdd8] sm:$0xff] }
 0x28d   :  { %1374 = vmatpush1.bf16.msra.mxu1 %v903_v40  ;;  %v738_v40 = vld [vmem:[#allocation2 + $0x5e8] sm:$0xff] }
 0x28e   :  { %1456 = vmatpush1.bf16.msra.mxu0 %v649_v41  ;;  %1375 = vmatprep.subr.bf16.mxu1 %v912_v42  ;;  %v991_v41 = vld [vmem:[#allocation2 + $0xdd0] sm:$0xff]  ;;  %v737_v42 = vld [vmem:[#allocation2 + $0x5e0] sm:$0xff] }
 0x28f   :  { %1457 = vmatprep.subr.bf16.mxu0 %v658_v43  ;;  %v1000_v43 = vld [vmem:[#allocation2 + $0xe18] sm:$0xff] }
 0x291   :  { %1376 = vmatpush1.bf16.msra.mxu1 %v911_v44  ;;  %v746_v44 = vld [vmem:[#allocation2 + $0x628] sm:$0xff] }
 0x292   :  { %1458 = vmatpush1.bf16.msra.mxu0 %v657_v46  ;;  %1377 = vmatprep.subr.bf16.mxu1 %v920_v47  ;;  %v999_v46 = vld [vmem:[#allocation2 + $0xe10] sm:$0xff]  ;;  %v745_v47 = vld [vmem:[#allocation2 + $0x620] sm:$0xff] }
 0x293   :  { %1459 = vmatprep.subr.bf16.mxu0 %v666_v49  ;;  %v1008_v49 = vld [vmem:[#allocation2 + $0xe58] sm:$0xff] }
 0x295   :  { %1378 = vmatpush1.bf16.msra.mxu1 %v919_v50  ;;  %v754_v50 = vld [vmem:[#allocation2 + $0x668] sm:$0xff] }
 0x296   :  { %1460 = vmatpush1.bf16.msra.mxu0 %v665_v51  ;;  %1379 = vmatprep.subr.bf16.mxu1 %v928_v53  ;;  %v1007_v51 = vld [vmem:[#allocation2 + $0xe50] sm:$0xff]  ;;  %v753_v53 = vld [vmem:[#allocation2 + $0x660] sm:$0xff] }
 0x297   :  { %1461 = vmatprep.subr.bf16.mxu0 %v674_v55  ;;  %v1016_v55 = vld [vmem:[#allocation2 + $0xe98] sm:$0xff] }
 0x299   :  { %1380 = vmatpush1.bf16.msra.mxu1 %v927_v56  ;;  %v762_v56 = vld [vmem:[#allocation2 + $0x6a8] sm:$0xff] }
 0x29a   :  { %1462 = vmatpush1.bf16.msra.mxu0 %v673_v57  ;;  %1390 = vmatprep.subr.bf16.mxu1 %v936_v58  ;;  %v1015_v57 = vld [vmem:[#allocation2 + $0xe90] sm:$0xff]  ;;  %v761_v58 = vld [vmem:[#allocation2 + $0x6a0] sm:$0xff] }
 0x29b   :  { %1472 = vmatprep.subr.bf16.mxu0 %v682_v60  ;;  %v1024_v60 = vld [vmem:[#allocation2 + $0xed8] sm:$0xff] }
 0x29c   :  { %1382 = vmatmul.mubr.bf16.vlgmr.msra.gmra.mrb[4].mxu1 %v3389_v16 }
 0x29d   :  { %1464 = vmatmul.mubr.bf16.vlgmr.msra.gmra.mrb[20].mxu0 %v3371_v52  ;;  %1391 = vmatpush1.bf16.msra.mxu1 %v935_v61  ;;  %v770_v61 = vld [vmem:[#allocation2 + $0x6e8] sm:$0xff] }
 0x29e   :  { %1473 = vmatpush1.bf16.msra.mxu0 %v681_v63  ;;  %1392 = vmatprep.subr.bf16.mxu1 %v944_v0  ;;  %v1023_v63 = vld [vmem:[#allocation2 + $0xed0] sm:$0xff]  ;;  %v769_v0 = vld [vmem:[#allocation2 + $0x6e0] sm:$0xff] }
 0x29f   :  { %1474 = vmatprep.subr.bf16.mxu0 %v690_v1  ;;  %1422 = vmatprep.mubr.bf16.mxu1 %v3399_v29  ;;  %v1032_v1 = vld [vmem:[#allocation2 + $0xf18] sm:$0xff] }
 0x2a0   :  { %1504 = vmatprep.mubr.bf16.mxu0 %v3383_v4 }
 0x2a1   :  { %1393 = vmatpush1.bf16.msra.mxu1 %v943_v3  ;;  %v778_v3 = vld [vmem:[#allocation2 + $0x728] sm:$0xff] }
 0x2a2   :  { %1475 = vmatpush1.bf16.msra.mxu0 %v689_v5  ;;  %1394 = vmatprep.subr.bf16.mxu1 %v952_v6  ;;  %v1031_v5 = vld [vmem:[#allocation2 + $0xf10] sm:$0xff]  ;;  %v777_v6 = vld [vmem:[#allocation2 + $0x720] sm:$0xff] }
 0x2a3   :  { %1476 = vmatprep.subr.bf16.mxu0 %v698_v7  ;;  %v1040_v7 = vld [vmem:[#allocation2 + $0xf58] sm:$0xff] }
 0x2a5   :  { %1395 = vmatpush1.bf16.msra.mxu1 %v951_v8  ;;  %v786_v8 = vld [vmem:[#allocation2 + $0x768] sm:$0xff] }
 0x2a6   :  { %1477 = vmatpush1.bf16.msra.mxu0 %v697_v10  ;;  %1396 = vmatprep.subr.bf16.mxu1 %v960_v11  ;;  %v1039_v10 = vld [vmem:[#allocation2 + $0xf50] sm:$0xff]  ;;  %v785_v11 = vld [vmem:[#allocation2 + $0x760] sm:$0xff] }
 0x2a7   :  { %1478 = vmatprep.subr.bf16.mxu0 %v706_v13  ;;  %v1048_v13 = vld [vmem:[#allocation2 + $0xf98] sm:$0xff] }
 0x2a9   :  { %1397 = vmatpush1.bf16.msra.mxu1 %v959_v14  ;;  %v794_v14 = vld [vmem:[#allocation2 + $0x7a8] sm:$0xff] }
 0x2aa   :  { %1479 = vmatpush1.bf16.msra.mxu0 %v705_v15  ;;  %1398 = vmatprep.subr.bf16.mxu1 %v968_v17  ;;  %v1047_v15 = vld [vmem:[#allocation2 + $0xf90] sm:$0xff]  ;;  %v793_v17 = vld [vmem:[#allocation2 + $0x7a0] sm:$0xff] }
 0x2ab   :  { %1480 = vmatprep.subr.bf16.mxu0 %v714_v19  ;;  %v1056_v19 = vld [vmem:[#allocation2 + $0xfd8] sm:$0xff] }
 0x2ad   :  { %1399 = vmatpush1.bf16.msra.mxu1 %v967_v20  ;;  %v802_v20 = vld [vmem:[#allocation2 + $0x7e8] sm:$0xff] }
 0x2ae   :  { %1481 = vmatpush1.bf16.msra.mxu0 %v713_v21  ;;  %1400 = vmatprep.subr.bf16.mxu1 %v976_v22  ;;  %v1055_v21 = vld [vmem:[#allocation2 + $0xfd0] sm:$0xff]  ;;  %v801_v22 = vld [vmem:[#allocation2 + $0x7e0] sm:$0xff] }
 0x2af   :  { %1482 = vmatprep.subr.bf16.mxu0 %v722_v23  ;;  %v3419_v26 = vpop.f32.mrb[0].mxu1  ;;  %v810_v23 = vld [vmem:[#allocation2 + $0x828] sm:$0xff] }
 0x2b0   :  { %v3421_v31 = vpop.f32.mrb[1].mxu1 }
 0x2b1   :  { %v1141_v32 = vpop.f32.mrb[2].mxu1  ;;  %1401 = vmatpush1.bf16.msra.mxu1 %v975_v24  ;;  %v556_v24 = vld [vmem:[#allocation2 + $0x38] sm:$0xff] }
 0x2b2   :  { %1483 = vmatpush1.bf16.msra.mxu0 %v721_v25  ;;  %v1142_v33 = vpop.f32.mrb[3].mxu1  ;;  %1402 = vmatprep.subr.bf16.mxu1 %v984_v27  ;;  %v809_v25 = vld [vmem:[#allocation2 + $0x820] sm:$0xff]  ;;  %v555_v27 = vld [vmem:[#allocation2 + $0x30] sm:$0xff]  ;;  %v564_v32 = vld [vmem:[#allocation2 + $0x78] sm:$0xff] }
 0x2b3   :  { %1484 = vmatprep.subr.bf16.mxu0 %v730_v30  ;;  %v818_v30 = vld [vmem:[#allocation2 + $0x868] sm:$0xff]  ;;  %v817_v33 = vld [vmem:[#allocation2 + $0x860] sm:$0xff] }
 0x2b5   :  { %1403 = vmatpush1.bf16.msra.mxu1 %v983_v34  ;;  %v563_v34 = vld [vmem:[#allocation2 + $0x70] sm:$0xff] }
 0x2b6   :  { %1485 = vmatpush1.bf16.msra.mxu0 %v729_v35  ;;  %1404 = vmatprep.subr.bf16.mxu1 %v992_v38  ;;  %v826_v35 = vld [vmem:[#allocation2 + $0x8a8] sm:$0xff]  ;;  %v572_v38 = vld [vmem:[#allocation2 + $0xb8] sm:$0xff] }
 0x2b7   :  { %1486 = vmatprep.subr.bf16.mxu0 %v738_v40  ;;  %v825_v40 = vld [vmem:[#allocation2 + $0x8a0] sm:$0xff] }
 0x2b9   :  { %1405 = vmatpush1.bf16.msra.mxu1 %v991_v41  ;;  %v571_v41 = vld [vmem:[#allocation2 + $0xb0] sm:$0xff] }
 0x2ba   :  { %1487 = vmatpush1.bf16.msra.mxu0 %v737_v42  ;;  %1406 = vmatprep.subr.bf16.mxu1 %v1000_v43  ;;  %v834_v42 = vld [vmem:[#allocation2 + $0x8e8] sm:$0xff]  ;;  %v580_v43 = vld [vmem:[#allocation2 + $0xf8] sm:$0xff] }
 0x2bb   :  { %1488 = vmatprep.subr.bf16.mxu0 %v746_v44  ;;  %v833_v44 = vld [vmem:[#allocation2 + $0x8e0] sm:$0xff] }
 0x2bd   :  { %1407 = vmatpush1.bf16.msra.mxu1 %v999_v46  ;;  %v579_v46 = vld [vmem:[#allocation2 + $0xf0] sm:$0xff] }
 0x2be   :  { %1489 = vmatpush1.bf16.msra.mxu0 %v745_v47  ;;  %1408 = vmatprep.subr.bf16.mxu1 %v1008_v49  ;;  %v842_v47 = vld [vmem:[#allocation2 + $0x928] sm:$0xff]  ;;  %v588_v49 = vld [vmem:[#allocation2 + $0x138] sm:$0xff] }
 0x2bf   :  { %1490 = vmatprep.subr.bf16.mxu0 %v754_v50  ;;  %v587_v50 = vld [vmem:[#allocation2 + $0x130] sm:$0xff] }
 0x2c1   :  { %1409 = vmatpush1.bf16.msra.mxu1 %v1007_v51  ;;  %v850_v51 = vld [vmem:[#allocation2 + $0x968] sm:$0xff] }
 0x2c2   :  { %1491 = vmatpush1.bf16.msra.mxu0 %v753_v53  ;;  %1410 = vmatprep.subr.bf16.mxu1 %v1016_v55  ;;  %v596_v53 = vld [vmem:[#allocation2 + $0x178] sm:$0xff]  ;;  %v849_v55 = vld [vmem:[#allocation2 + $0x960] sm:$0xff] }
 0x2c3   :  { %1492 = vmatprep.subr.bf16.mxu0 %v762_v56  ;;  %v595_v56 = vld [vmem:[#allocation2 + $0x170] sm:$0xff] }
 0x2c5   :  { %1411 = vmatpush1.bf16.msra.mxu1 %v1015_v57  ;;  %v858_v57 = vld [vmem:[#allocation2 + $0x9a8] sm:$0xff] }
 0x2c6   :  { %1493 = vmatpush1.bf16.msra.mxu0 %v761_v58  ;;  %1412 = vmatprep.subr.bf16.mxu1 %v1024_v60  ;;  %v604_v58 = vld [vmem:[#allocation2 + $0x1b8] sm:$0xff]  ;;  %v857_v60 = vld [vmem:[#allocation2 + $0x9a0] sm:$0xff] }
 0x2c7   :  { %1494 = vmatprep.subr.bf16.mxu0 %v770_v61  ;;  %v603_v61 = vld [vmem:[#allocation2 + $0x1b0] sm:$0xff] }
 0x2c9   :  { %1413 = vmatpush1.bf16.msra.mxu1 %v1023_v63  ;;  %v866_v63 = vld [vmem:[#allocation2 + $0x9e8] sm:$0xff] }
 0x2ca   :  { %1495 = vmatpush1.bf16.msra.mxu0 %v769_v0  ;;  %1414 = vmatprep.subr.bf16.mxu1 %v1032_v1  ;;  %v612_v0 = vld [vmem:[#allocation2 + $0x1f8] sm:$0xff]  ;;  %v865_v1 = vld [vmem:[#allocation2 + $0x9e0] sm:$0xff] }
 0x2cb   :  { %1496 = vmatprep.subr.bf16.mxu0 %v778_v3  ;;  %v611_v3 = vld [vmem:[#allocation2 + $0x1f0] sm:$0xff] }
 0x2cd   :  { %1415 = vmatpush1.bf16.msra.mxu1 %v1031_v5  ;;  %v874_v5 = vld [vmem:[#allocation2 + $0xa28] sm:$0xff] }
 0x2ce   :  { %1497 = vmatpush1.bf16.msra.mxu0 %v777_v6  ;;  %1416 = vmatprep.subr.bf16.mxu1 %v1040_v7  ;;  %v620_v6 = vld [vmem:[#allocation2 + $0x238] sm:$0xff]  ;;  %v873_v7 = vld [vmem:[#allocation2 + $0xa20] sm:$0xff] }
 0x2cf   :  { %1498 = vmatprep.subr.bf16.mxu0 %v786_v8  ;;  %v619_v8 = vld [vmem:[#allocation2 + $0x230] sm:$0xff] }
 0x2d1   :  { %1417 = vmatpush1.bf16.msra.mxu1 %v1039_v10  ;;  %v882_v10 = vld [vmem:[#allocation2 + $0xa68] sm:$0xff] }
 0x2d2   :  { %1499 = vmatpush1.bf16.msra.mxu0 %v785_v11  ;;  %1418 = vmatprep.subr.bf16.mxu1 %v1048_v13  ;;  %v628_v11 = vld [vmem:[#allocation2 + $0x278] sm:$0xff]  ;;  %v881_v13 = vld [vmem:[#allocation2 + $0xa60] sm:$0xff] }
 0x2d3   :  { %1500 = vmatprep.subr.bf16.mxu0 %v794_v14  ;;  %v627_v14 = vld [vmem:[#allocation2 + $0x270] sm:$0xff] }
 0x2d5   :  { %1419 = vmatpush1.bf16.msra.mxu1 %v1047_v15  ;;  %v890_v15 = vld [vmem:[#allocation2 + $0xaa8] sm:$0xff] }
 0x2d6   :  { %1501 = vmatpush1.bf16.msra.mxu0 %v793_v17  ;;  %1420 = vmatprep.subr.bf16.mxu1 %v1056_v19  ;;  %v636_v17 = vld [vmem:[#allocation2 + $0x2b8] sm:$0xff]  ;;  %v889_v19 = vld [vmem:[#allocation2 + $0xaa0] sm:$0xff] }
 0x2d7   :  { %1502 = vmatprep.subr.bf16.mxu0 %v802_v20  ;;  %v635_v20 = vld [vmem:[#allocation2 + $0x2b0] sm:$0xff] }
 0x2d9   :  { %1421 = vmatpush1.bf16.msra.mxu1 %v1055_v21  ;;  %v898_v21 = vld [vmem:[#allocation2 + $0xae8] sm:$0xff] }
 0x2da   :  { %1503 = vmatpush1.bf16.msra.mxu0 %v801_v22  ;;  %1595 = vmatprep.subr.bf16.mxu1 %v556_v24  ;;  %v644_v22 = vld [vmem:[#allocation2 + $0x2f8] sm:$0xff]  ;;  %v643_v24 = vld [vmem:[#allocation2 + $0x2f0] sm:$0xff] }
 0x2db   :  { %1513 = vmatprep.subr.bf16.mxu0 %v810_v23  ;;  %v897_v23 = vld [vmem:[#allocation2 + $0xae0] sm:$0xff] }
 0x2dc   :  { %1423 = vmatmul.mubr.bf16.vlgmr.msra.gmra.mrb[4].mxu1 %v3397_v28 }
 0x2dd   :  { %1505 = vmatmul.mubr.bf16.vlgmr.msra.gmra.mrb[20].mxu0 %v3379_v2  ;;  %1596 = vmatpush1.bf16.msra.mxu1 %v555_v27  ;;  %v652_v27 = vld [vmem:[#allocation2 + $0x338] sm:$0xff] }
 0x2de   :  { %1514 = vmatpush1.bf16.msra.mxu0 %v809_v25  ;;  %1597 = vmatprep.subr.bf16.mxu1 %v564_v32  ;;  %v906_v25 = vld [vmem:[#allocation2 + $0xb28] sm:$0xff]  ;;  %v651_v32 = vld [vmem:[#allocation2 + $0x330] sm:$0xff] }
 0x2df   :  { %1515 = vmatprep.subr.bf16.mxu0 %v818_v30  ;;  %1545 = vmatprep.mubr.bf16.mxu0 %v3393_v18  ;;  %v905_v30 = vld [vmem:[#allocation2 + $0xb20] sm:$0xff] }
 0x2e0   :  { %1627 = vmatprep.mubr.bf16.mxu1 %v3374_v54  ;;  %v841_v54 = vld [vmem:[#allocation2 + $0x920] sm:$0xff] }
 0x2e1   :  { %1598 = vmatpush1.bf16.msra.mxu1 %v563_v34  ;;  %v660_v34 = vld [vmem:[#allocation2 + $0x378] sm:$0xff] }
 0x2e2   :  { %1516 = vmatpush1.bf16.msra.mxu0 %v817_v33  ;;  %1599 = vmatprep.subr.bf16.mxu1 %v572_v38  ;;  %v914_v33 = vld [vmem:[#allocation2 + $0xb68] sm:$0xff]  ;;  %v659_v38 = vld [vmem:[#allocation2 + $0x370] sm:$0xff] }
 0x2e3   :  { %1517 = vmatprep.subr.bf16.mxu0 %v826_v35  ;;  %v913_v35 = vld [vmem:[#allocation2 + $0xb60] sm:$0xff] }
 0x2e5   :  { %1600 = vmatpush1.bf16.msra.mxu1 %v571_v41  ;;  %v668_v41 = vld [vmem:[#allocation2 + $0x3b8] sm:$0xff] }
 0x2e6   :  { %1518 = vmatpush1.bf16.msra.mxu0 %v825_v40  ;;  %1601 = vmatprep.subr.bf16.mxu1 %v580_v43  ;;  %v922_v40 = vld [vmem:[#allocation2 + $0xba8] sm:$0xff]  ;;  %v667_v43 = vld [vmem:[#allocation2 + $0x3b0] sm:$0xff] }
 0x2e7   :  { %1519 = vmatprep.subr.bf16.mxu0 %v834_v42  ;;  %v921_v42 = vld [vmem:[#allocation2 + $0xba0] sm:$0xff] }
 0x2e9   :  { %1602 = vmatpush1.bf16.msra.mxu1 %v579_v46  ;;  %v676_v46 = vld [vmem:[#allocation2 + $0x3f8] sm:$0xff] }
 0x2ea   :  { %1520 = vmatpush1.bf16.msra.mxu0 %v833_v44  ;;  %1603 = vmatprep.subr.bf16.mxu1 %v588_v49  ;;  %v930_v44 = vld [vmem:[#allocation2 + $0xbe8] sm:$0xff]  ;;  %v675_v49 = vld [vmem:[#allocation2 + $0x3f0] sm:$0xff] }
 0x2eb   :  { %1521 = vmatprep.subr.bf16.mxu0 %v842_v47  ;;  %v929_v47 = vld [vmem:[#allocation2 + $0xbe0] sm:$0xff] }
 0x2ed   :  { %1604 = vmatpush1.bf16.msra.mxu1 %v587_v50  ;;  %v684_v50 = vld [vmem:[#allocation2 + $0x438] sm:$0xff] }
 0x2ee   :  { %1522 = vmatpush1.bf16.msra.mxu0 %v841_v54  ;;  %1605 = vmatprep.subr.bf16.mxu1 %v596_v53  ;;  %v938_v54 = vld [vmem:[#allocation2 + $0xc28] sm:$0xff]  ;;  %v683_v53 = vld [vmem:[#allocation2 + $0x430] sm:$0xff] }
 0x2ef   :  { %1523 = vmatprep.subr.bf16.mxu0 %v850_v51  ;;  %v937_v51 = vld [vmem:[#allocation2 + $0xc20] sm:$0xff] }
 0x2f1   :  { %1606 = vmatpush1.bf16.msra.mxu1 %v595_v56  ;;  %v692_v56 = vld [vmem:[#allocation2 + $0x478] sm:$0xff] }
 0x2f2   :  { %1524 = vmatpush1.bf16.msra.mxu0 %v849_v55  ;;  %1607 = vmatprep.subr.bf16.mxu1 %v604_v58  ;;  %v946_v55 = vld [vmem:[#allocation2 + $0xc68] sm:$0xff]  ;;  %v691_v58 = vld [vmem:[#allocation2 + $0x470] sm:$0xff] }
 0x2f3   :  { %1525 = vmatprep.subr.bf16.mxu0 %v858_v57  ;;  %v945_v57 = vld [vmem:[#allocation2 + $0xc60] sm:$0xff] }
 0x2f5   :  { %1608 = vmatpush1.bf16.msra.mxu1 %v603_v61  ;;  %v700_v61 = vld [vmem:[#allocation2 + $0x4b8] sm:$0xff] }
 0x2f6   :  { %1526 = vmatpush1.bf16.msra.mxu0 %v857_v60  ;;  %1609 = vmatprep.subr.bf16.mxu1 %v612_v0  ;;  %v954_v60 = vld [vmem:[#allocation2 + $0xca8] sm:$0xff]  ;;  %v699_v0 = vld [vmem:[#allocation2 + $0x4b0] sm:$0xff] }
 0x2f7   :  { %1527 = vmatprep.subr.bf16.mxu0 %v866_v63  ;;  %v953_v63 = vld [vmem:[#allocation2 + $0xca0] sm:$0xff] }
 0x2f9   :  { %1610 = vmatpush1.bf16.msra.mxu1 %v611_v3  ;;  %v961_v3 = vld [vmem:[#allocation2 + $0xce0] sm:$0xff] }
 0x2fa   :  { %1528 = vmatpush1.bf16.msra.mxu0 %v865_v1  ;;  %1611 = vmatprep.subr.bf16.mxu1 %v620_v6  ;;  %v962_v1 = vld [vmem:[#allocation2 + $0xce8] sm:$0xff]  ;;  %v3431_v6 = vld [vmem:[#allocation11] sm:$0xff] }
 0x2fb   :  { %1529 = vmatprep.subr.bf16.mxu0 %v874_v5  ;;  %v707_v5 = vld [vmem:[#allocation2 + $0x4f0] sm:$0xff] }
 0x2fd   :  { %1612 = vmatpush1.bf16.msra.mxu1 %v619_v8  ;;  %v716_v8 = vld [vmem:[#allocation2 + $0x538] sm:$0xff] }
 0x2fe   :  { %1530 = vmatpush1.bf16.msra.mxu0 %v873_v7  ;;  %1613 = vmatprep.subr.bf16.mxu1 %v628_v11  ;;  %v970_v7 = vld [vmem:[#allocation2 + $0xd28] sm:$0xff]  ;;  %v715_v11 = vld [vmem:[#allocation2 + $0x530] sm:$0xff] }
 0x2ff   :  { %1531 = vmatprep.subr.bf16.mxu0 %v882_v10  ;;  %v969_v10 = vld [vmem:[#allocation2 + $0xd20] sm:$0xff] }
 0x301   :  { %1614 = vmatpush1.bf16.msra.mxu1 %v627_v14  ;;  %v978_v14 = vld [vmem:[#allocation2 + $0xd68] sm:$0xff] }
 0x302   :  { %1532 = vmatpush1.bf16.msra.mxu0 %v881_v13  ;;  %1615 = vmatprep.subr.bf16.mxu1 %v636_v17  ;;  %v1070_v13 = vrot.slane %v3431_v6, %v3361_v39 }
 0x303   :  { %1533 = vmatprep.subr.bf16.mxu0 %v890_v15  ;;  %v724_v15 = vld [vmem:[#allocation2 + $0x578] sm:$0xff] }
 0x305   :  { %1616 = vmatpush1.bf16.msra.mxu1 %v635_v20  ;;  %v723_v20 = vld [vmem:[#allocation2 + $0x570] sm:$0xff] }
 0x306   :  { %1534 = vmatpush1.bf16.msra.mxu0 %v889_v19  ;;  %1617 = vmatprep.subr.bf16.mxu1 %v644_v22  ;;  %v977_v19 = vld [vmem:[#allocation2 + $0xd60] sm:$0xff] }
 0x307   :  { %1535 = vmatprep.subr.bf16.mxu0 %v898_v21  ;;  %v1140_v21 = vadd.f32 %v3421_v31, %v1070_v13  ;;  %v1050_v13 = vld [vmem:[#allocation2 + $0xfa8] sm:$0xff] }
 0x309   :  { %1618 = vmatpush1.bf16.msra.mxu1 %v643_v24  ;;  %v732_v24 = vld [vmem:[#allocation2 + $0x5b8] sm:$0xff] }
 0x30a   :  { %1536 = vmatpush1.bf16.msra.mxu0 %v897_v23  ;;  %1619 = vmatprep.subr.bf16.mxu1 %v652_v27  ;;  %v986_v23 = vld [vmem:[#allocation2 + $0xda8] sm:$0xff] }
 0x30b   :  { %1537 = vmatprep.subr.bf16.mxu0 %v906_v25 }
 0x30d   :  { %1620 = vmatpush1.bf16.msra.mxu1 %v651_v32 }
 0x30e   :  { %1538 = vmatpush1.bf16.msra.mxu0 %v905_v30  ;;  %1621 = vmatprep.subr.bf16.mxu1 %v660_v34 }
 0x30f   :  { %1539 = vmatprep.subr.bf16.mxu0 %v914_v33 }
 0x311   :  { %1622 = vmatpush1.bf16.msra.mxu1 %v659_v38 }
 0x312   :  { %1540 = vmatpush1.bf16.msra.mxu0 %v913_v35  ;;  %1623 = vmatprep.subr.bf16.mxu1 %v668_v41  ;;  %v731_v35 = vld [vmem:[#allocation2 + $0x5b0] sm:$0xff]  ;;  %v740_v41 = vld [vmem:[#allocation2 + $0x5f8] sm:$0xff] }
 0x313   :  { %1541 = vmatprep.subr.bf16.mxu0 %v922_v40  ;;  %v994_v40 = vld [vmem:[#allocation2 + $0xde8] sm:$0xff] }
 0x315   :  { %1624 = vmatpush1.bf16.msra.mxu1 %v667_v43  ;;  %v993_v43 = vld [vmem:[#allocation2 + $0xde0] sm:$0xff] }
 0x316   :  { %1542 = vmatpush1.bf16.msra.mxu0 %v921_v42  ;;  %1625 = vmatprep.subr.bf16.mxu1 %v676_v46  ;;  %v1002_v46 = vld [vmem:[#allocation2 + $0xe28] sm:$0xff] }
 0x317   :  { %1543 = vmatprep.subr.bf16.mxu0 %v930_v44  ;;  %v739_v44 = vld [vmem:[#allocation2 + $0x5f0] sm:$0xff] }
 0x319   :  { %1626 = vmatpush1.bf16.msra.mxu1 %v675_v49  ;;  %v1001_v49 = vld [vmem:[#allocation2 + $0xe20] sm:$0xff] }
 0x31a   :  { %1544 = vmatpush1.bf16.msra.mxu0 %v929_v47  ;;  %1636 = vmatprep.subr.bf16.mxu1 %v684_v50  ;;  %v748_v47 = vld [vmem:[#allocation2 + $0x638] sm:$0xff]  ;;  %v1010_v50 = vld [vmem:[#allocation2 + $0xe68] sm:$0xff] }
 0x31b   :  { %1554 = vmatprep.subr.bf16.mxu0 %v938_v54  ;;  %v747_v54 = vld [vmem:[#allocation2 + $0x630] sm:$0xff] }
 0x31c   :  { %1628 = vmatmul.mubr.bf16.vlgmr.msra.gmra.mrb[8].mxu1 %v3371_v52  ;;  %v708_v52 = vld [vmem:[#allocation2 + $0x4f8] sm:$0xff] }
 0x31d   :  { %1546 = vmatmul.mubr.bf16.vlgmr.msra.gmra.mrb[20].mxu0 %v3389_v16  ;;  %1637 = vmatpush1.bf16.msra.mxu1 %v683_v53  ;;  %v1009_v53 = vld [vmem:[#allocation2 + $0xe60] sm:$0xff] }
 0x31e   :  { %1555 = vmatpush1.bf16.msra.mxu0 %v937_v51  ;;  %1638 = vmatprep.subr.bf16.mxu1 %v692_v56  ;;  %v756_v51 = vld [vmem:[#allocation2 + $0x678] sm:$0xff]  ;;  %v1018_v56 = vld [vmem:[#allocation2 + $0xea8] sm:$0xff] }
 0x31f   :  { %1556 = vmatprep.subr.bf16.mxu0 %v946_v55  ;;  %1586 = vmatprep.mubr.bf16.mxu0 %v3399_v29  ;;  %v755_v55 = vld [vmem:[#allocation2 + $0x670] sm:$0xff] }
 0x320   :  { %1668 = vmatprep.mubr.bf16.mxu1 %v3383_v4  ;;  %v1066_v4 = vrot.slane %v3431_v6, %v3358_v37 }
 0x321   :  { %1639 = vmatpush1.bf16.msra.mxu1 %v691_v58  ;;  %v1017_v58 = vld [vmem:[#allocation2 + $0xea0] sm:$0xff] }
 0x322   :  { %1557 = vmatpush1.bf16.msra.mxu0 %v945_v57  ;;  %1640 = vmatprep.subr.bf16.mxu1 %v700_v61  ;;  %v1138_v17 = vadd.f32 %v3419_v26, %v1066_v4  ;;  %v985_v26 = vld [vmem:[#allocation2 + $0xda0] sm:$0xff]  ;;  %v764_v57 = vld [vmem:[#allocation2 + $0x6b8] sm:$0xff]  ;;  %v1026_v61 = vld [vmem:[#allocation2 + $0xee8] sm:$0xff] }
 0x323   :  { %1558 = vmatprep.subr.bf16.mxu0 %v954_v60  ;;  %v763_v60 = vld [vmem:[#allocation2 + $0x6b0] sm:$0xff]  ;;  %v788_v4 = vld [vmem:[#allocation2 + $0x778] sm:$0xff] }
 0x325   :  { %1641 = vmatpush1.bf16.msra.mxu1 %v699_v0  ;;  %v1025_v0 = vld [vmem:[#allocation2 + $0xee0] sm:$0xff] }
 0x326   :  { %1559 = vmatpush1.bf16.msra.mxu0 %v953_v63  ;;  %1642 = vmatprep.subr.bf16.mxu1 %v708_v52  ;;  %v772_v63 = vld [vmem:[#allocation2 + $0x6f8] sm:$0xff]  ;;  %v1034_v52 = vld [vmem:[#allocation2 + $0xf28] sm:$0xff] }
 0x327   :  { %1560 = vmatprep.subr.bf16.mxu0 %v962_v1  ;;  %v771_v1 = vld [vmem:[#allocation2 + $0x6f0] sm:$0xff] }
 0x329   :  { %1643 = vmatpush1.bf16.msra.mxu1 %v707_v5  ;;  %v1033_v5 = vld [vmem:[#allocation2 + $0xf20] sm:$0xff] }
 0x32a   :  { %1561 = vmatpush1.bf16.msra.mxu0 %v961_v3  ;;  %1644 = vmatprep.subr.bf16.mxu1 %v716_v8  ;;  %v780_v3 = vld [vmem:[#allocation2 + $0x738] sm:$0xff]  ;;  %v1042_v8 = vld [vmem:[#allocation2 + $0xf68] sm:$0xff] }
 0x32b   :  { %1562 = vmatprep.subr.bf16.mxu0 %v970_v7  ;;  %v779_v7 = vld [vmem:[#allocation2 + $0x730] sm:$0xff] }
 0x32d   :  { %1645 = vmatpush1.bf16.msra.mxu1 %v715_v11  ;;  %v787_v11 = vld [vmem:[#allocation2 + $0x770] sm:$0xff] }
 0x32e   :  { %1563 = vmatpush1.bf16.msra.mxu0 %v969_v10  ;;  %1646 = vmatprep.subr.bf16.mxu1 %v724_v15  ;;  %v1041_v10 = vld [vmem:[#allocation2 + $0xf60] sm:$0xff] }
 0x32f   :  { %1564 = vmatprep.subr.bf16.mxu0 %v978_v14  ;;  %v796_v14 = vld [vmem:[#allocation2 + $0x7b8] sm:$0xff]  ;;  %v1049_v15 = vld [vmem:[#allocation2 + $0xfa0] sm:$0xff] }
 0x330   :  { %v1260_v22 = vpop.f32.mrb[16].mxu0 }
 0x331   :  { %v2839_v25 = vadd.f32 %v1260_v22, %v1138_v17  ;;  %v1262_v27 = vpop.f32.mrb[17].mxu0  ;;  %1647 = vmatpush1.bf16.msra.mxu1 %v723_v20  ;;  %v795_v17 = vld [vmem:[#allocation2 + $0x7b0] sm:$0xff]  ;;  %v804_v20 = vld [vmem:[#allocation2 + $0x7f8] sm:$0xff] }
 0x332   :  { %v2841_v30 = vadd.f32 %v1262_v27, %v1140_v21  ;;  %v1264_v32 = vpop.f32.mrb[18].mxu0  ;;  %1565 = vmatpush1.bf16.msra.mxu0 %v977_v19  ;;  %1648 = vmatprep.subr.bf16.mxu1 %v732_v24  ;;  %v1058_v19 = vld [vmem:[#allocation2 + $0xfe8] sm:$0xff]  ;;  %v1057_v21 = vld [vmem:[#allocation2 + $0xfe0] sm:$0xff]  ;;  %v803_v22 = vld [vmem:[#allocation2 + $0x7f0] sm:$0xff] }
 0x333   :  { %v1759_v33 = vmax.f32 %v2839_v25, 0.0  ;;  %v1265_v34 = vpop.f32.mrb[19].mxu0  ;;  %1566 = vmatprep.subr.bf16.mxu0 %v986_v23  ;;  %v812_v23 = vld [vmem:[#allocation2 + $0x838] sm:$0xff]  ;;  %v811_v24 = vld [vmem:[#allocation2 + $0x830] sm:$0xff] }
 0x334   :  { %v1760_v38 = vmax.f32 %v2841_v30, 0.0  ;;  %v820_v25 = vld [vmem:[#allocation2 + $0x878] sm:$0xff]  ;;  %v819_v27 = vld [vmem:[#allocation2 + $0x870] sm:$0xff] }
 0x335   :  { %v3439_v42 = vpack.c.bf16 %v1759_v33, %v1759_v33  ;;  %1649 = vmatpush1.bf16.msra.mxu1 %v731_v35  ;;  %v828_v30 = vld [vmem:[#allocation2 + $0x8b8] sm:$0xff]  ;;  %v827_v32 = vld [vmem:[#allocation2 + $0x8b0] sm:$0xff] }
 0x336   :  { %v3441_v31 = vpack.c.bf16 %v1760_v38, %v1760_v38  ;;  %1567 = vmatpush1.bf16.msra.mxu0 %v985_v26  ;;  %1650 = vmatprep.subr.bf16.mxu1 %v740_v41  ;;  %v836_v33 = vld [vmem:[#allocation2 + $0x8f8] sm:$0xff]  ;;  %v835_v34 = vld [vmem:[#allocation2 + $0x8f0] sm:$0xff] }
 0x337   :  { %1568 = vmatprep.subr.bf16.mxu0 %v994_v40  ;;  %v844_v26 = vld [vmem:[#allocation2 + $0x938] sm:$0xff]  ;;  %v843_v35 = vld [vmem:[#allocation2 + $0x930] sm:$0xff] }
 0x338   :  { %v852_v38 = vld [vmem:[#allocation2 + $0x978] sm:$0xff] }
 0x339   :  { %1651 = vmatpush1.bf16.msra.mxu1 %v739_v44  ;;  %v860_v40 = vld [vmem:[#allocation2 + $0x9b8] sm:$0xff] }
 0x33a   :  { %1569 = vmatpush1.bf16.msra.mxu0 %v993_v43  ;;  %1652 = vmatprep.subr.bf16.mxu1 %v748_v47  ;;  %v868_v41 = vld [vmem:[#allocation2 + $0x9f8] sm:$0xff]  ;;  %v867_v43 = vld [vmem:[#allocation2 + $0x9f0] sm:$0xff] }
 0x33b   :  { %1570 = vmatprep.subr.bf16.mxu0 %v1002_v46  ;;  %v876_v44 = vld [vmem:[#allocation2 + $0xa38] sm:$0xff]  ;;  %v875_v46 = vld [vmem:[#allocation2 + $0xa30] sm:$0xff] }
 0x33c   :  { %v884_v47 = vld [vmem:[#allocation2 + $0xa78] sm:$0xff] }
 0x33d   :  { %1653 = vmatpush1.bf16.msra.mxu1 %v747_v54  ;;  %v892_v54 = vld [vmem:[#allocation2 + $0xab8] sm:$0xff] }
 0x33e   :  { %1571 = vmatpush1.bf16.msra.mxu0 %v1001_v49  ;;  %1654 = vmatprep.subr.bf16.mxu1 %v756_v51  ;;  %v883_v49 = vld [vmem:[#allocation2 + $0xa70] sm:$0xff]  ;;  %v900_v51 = vld [vmem:[#allocation2 + $0xaf8] sm:$0xff] }
 0x33f   :  { %1572 = vmatprep.subr.bf16.mxu0 %v1010_v50  ;;  %v891_v50 = vld [vmem:[#allocation2 + $0xab0] sm:$0xff] }
 0x341   :  { %1655 = vmatpush1.bf16.msra.mxu1 %v755_v55  ;;  %v908_v55 = vld [vmem:[#allocation2 + $0xb38] sm:$0xff] }
 0x342   :  { %1573 = vmatpush1.bf16.msra.mxu0 %v1009_v53  ;;  %1656 = vmatprep.subr.bf16.mxu1 %v764_v57  ;;  %v899_v53 = vld [vmem:[#allocation2 + $0xaf0] sm:$0xff]  ;;  %v916_v57 = vld [vmem:[#allocation2 + $0xb78] sm:$0xff] }
 0x343   :  { %1574 = vmatprep.subr.bf16.mxu0 %v1018_v56  ;;  %v907_v56 = vld [vmem:[#allocation2 + $0xb30] sm:$0xff] }
 0x345   :  { %1657 = vmatpush1.bf16.msra.mxu1 %v763_v60  ;;  %v924_v60 = vld [vmem:[#allocation2 + $0xbb8] sm:$0xff] }
 0x346   :  { %1575 = vmatpush1.bf16.msra.mxu0 %v1017_v58  ;;  %1658 = vmatprep.subr.bf16.mxu1 %v772_v63  ;;  %v915_v58 = vld [vmem:[#allocation2 + $0xb70] sm:$0xff]  ;;  %v932_v63 = vld [vmem:[#allocation2 + $0xbf8] sm:$0xff] }
 0x347   :  { %1576 = vmatprep.subr.bf16.mxu0 %v1026_v61  ;;  %v923_v61 = vld [vmem:[#allocation2 + $0xbb0] sm:$0xff] }
 0x349   :  { %1659 = vmatpush1.bf16.msra.mxu1 %v771_v1  ;;  %v940_v1 = vld [vmem:[#allocation2 + $0xc38] sm:$0xff] }
 0x34a   :  { %1577 = vmatpush1.bf16.msra.mxu0 %v1025_v0  ;;  %1660 = vmatprep.subr.bf16.mxu1 %v780_v3  ;;  %v931_v0 = vld [vmem:[#allocation2 + $0xbf0] sm:$0xff]  ;;  %v948_v3 = vld [vmem:[#allocation2 + $0xc78] sm:$0xff] }
 0x34b   :  { %1578 = vmatprep.subr.bf16.mxu0 %v1034_v52  ;;  %v939_v52 = vld [vmem:[#allocation2 + $0xc30] sm:$0xff] }
 0x34d   :  { %1661 = vmatpush1.bf16.msra.mxu1 %v779_v7  ;;  %v956_v7 = vld [vmem:[#allocation2 + $0xcb8] sm:$0xff] }
 0x34e   :  { %1579 = vmatpush1.bf16.msra.mxu0 %v1033_v5  ;;  %1662 = vmatprep.subr.bf16.mxu1 %v788_v4  ;;  %v947_v5 = vld [vmem:[#allocation2 + $0xc70] sm:$0xff]  ;;  %v964_v4 = vld [vmem:[#allocation2 + $0xcf8] sm:$0xff] }
 0x34f   :  { %1580 = vmatprep.subr.bf16.mxu0 %v1042_v8  ;;  %v955_v8 = vld [vmem:[#allocation2 + $0xcb0] sm:$0xff] }
 0x351   :  { %1663 = vmatpush1.bf16.msra.mxu1 %v787_v11  ;;  %v972_v11 = vld [vmem:[#allocation2 + $0xd38] sm:$0xff] }
 0x352   :  { %1581 = vmatpush1.bf16.msra.mxu0 %v1041_v10  ;;  %1664 = vmatprep.subr.bf16.mxu1 %v796_v14  ;;  %v963_v10 = vld [vmem:[#allocation2 + $0xcf0] sm:$0xff]  ;;  %v980_v14 = vld [vmem:[#allocation2 + $0xd78] sm:$0xff] }
 0x353   :  { %1582 = vmatprep.subr.bf16.mxu0 %v1050_v13  ;;  %v971_v13 = vld [vmem:[#allocation2 + $0xd30] sm:$0xff] }
 0x355   :  { %1665 = vmatpush1.bf16.msra.mxu1 %v795_v17 }
 0x356   :  { %1583 = vmatpush1.bf16.msra.mxu0 %v1049_v15  ;;  %1666 = vmatprep.subr.bf16.mxu1 %v804_v20  ;;  %v979_v15 = vld [vmem:[#allocation2 + $0xd70] sm:$0xff] }
 0x357   :  { %1584 = vmatprep.subr.bf16.mxu0 %v1058_v19  ;;  %v988_v19 = vld [vmem:[#allocation2 + $0xdb8] sm:$0xff] }
 0x359   :  { %1667 = vmatpush1.bf16.msra.mxu1 %v803_v22 }
 0x35a   :  { %1585 = vmatpush1.bf16.msra.mxu0 %v1057_v21  ;;  %1677 = vmatprep.subr.bf16.mxu1 %v812_v23 }
 0x35c   :  { %1669 = vmatmul.mubr.bf16.vlgmr.msra.gmra.mrb[8].mxu1 %v3379_v2  ;;  %v851_v2 = vld [vmem:[#allocation2 + $0x970] sm:$0xff] }
 0x35d   :  { %1587 = vmatmul.mubr.bf16.vlgmr.msra.gmra.mrb[20].mxu0 %v3397_v28  ;;  %1678 = vmatpush1.bf16.msra.mxu1 %v811_v24 }
 0x35e   :  { %1709 = vmatprep.mubr.bf16.mxu1 %v3393_v18  ;;  %1679 = vmatprep.subr.bf16.mxu1 %v820_v25  ;;  %v859_v18 = vld [vmem:[#allocation2 + $0x9b0] sm:$0xff] }
 0x361   :  { %1680 = vmatpush1.bf16.msra.mxu1 %v819_v27  ;;  %v987_v27 = vld [vmem:[#allocation2 + $0xdb0] sm:$0xff] }
 0x362   :  { %1681 = vmatprep.subr.bf16.mxu1 %v828_v30 }
 0x365   :  { %1682 = vmatpush1.bf16.msra.mxu1 %v827_v32  ;;  %v996_v32 = vld [vmem:[#allocation2 + $0xdf8] sm:$0xff] }
 0x366   :  { %1683 = vmatprep.subr.bf16.mxu1 %v836_v33 }
 0x369   :  { %1684 = vmatpush1.bf16.msra.mxu1 %v835_v34 }
 0x36a   :  { %1685 = vmatprep.subr.bf16.mxu1 %v844_v26  ;;  %v995_v26 = vld [vmem:[#allocation2 + $0xdf0] sm:$0xff] }
 0x36d   :  { %1686 = vmatpush1.bf16.msra.mxu1 %v843_v35  ;;  %v1004_v35 = vld [vmem:[#allocation2 + $0xe38] sm:$0xff] }
 0x36e   :  { %1687 = vmatprep.subr.bf16.mxu1 %v852_v38  ;;  %v1003_v38 = vld [vmem:[#allocation2 + $0xe30] sm:$0xff] }
 0x371   :  { %1688 = vmatpush1.bf16.msra.mxu1 %v851_v2  ;;  %v1012_v2 = vld [vmem:[#allocation2 + $0xe78] sm:$0xff] }
 0x372   :  { %1689 = vmatprep.subr.bf16.mxu1 %v860_v40  ;;  %v1011_v40 = vld [vmem:[#allocation2 + $0xe70] sm:$0xff] }
 0x375   :  { %1690 = vmatpush1.bf16.msra.mxu1 %v859_v18  ;;  %v1020_v18 = vld [vmem:[#allocation2 + $0xeb8] sm:$0xff] }
 0x376   :  { %1691 = vmatprep.subr.bf16.mxu1 %v868_v41  ;;  %v1019_v41 = vld [vmem:[#allocation2 + $0xeb0] sm:$0xff] }
 0x379   :  { %1692 = vmatpush1.bf16.msra.mxu1 %v867_v43  ;;  %v1028_v43 = vld [vmem:[#allocation2 + $0xef8] sm:$0xff] }
 0x37a   :  { %1693 = vmatprep.subr.bf16.mxu1 %v876_v44  ;;  %v1027_v44 = vld [vmem:[#allocation2 + $0xef0] sm:$0xff] }
 0x37d   :  { %1694 = vmatpush1.bf16.msra.mxu1 %v875_v46  ;;  %v1036_v46 = vld [vmem:[#allocation2 + $0xf38] sm:$0xff] }
 0x37e   :  { %1695 = vmatprep.subr.bf16.mxu1 %v884_v47  ;;  %v1035_v47 = vld [vmem:[#allocation2 + $0xf30] sm:$0xff] }
 0x381   :  { %1696 = vmatpush1.bf16.msra.mxu1 %v883_v49  ;;  %v1044_v49 = vld [vmem:[#allocation2 + $0xf78] sm:$0xff] }
 0x382   :  { %1697 = vmatprep.subr.bf16.mxu1 %v892_v54  ;;  %v1043_v54 = vld [vmem:[#allocation2 + $0xf70] sm:$0xff] }
 0x385   :  { %1698 = vmatpush1.bf16.msra.mxu1 %v891_v50  ;;  %v1052_v50 = vld [vmem:[#allocation2 + $0xfb8] sm:$0xff] }
 0x386   :  { %1699 = vmatprep.subr.bf16.mxu1 %v900_v51  ;;  %v1051_v51 = vld [vmem:[#allocation2 + $0xfb0] sm:$0xff] }
 0x389   :  { %1700 = vmatpush1.bf16.msra.mxu1 %v899_v53  ;;  %v1060_v53 = vld [vmem:[#allocation2 + $0xff8] sm:$0xff] }
 0x38a   :  { %1701 = vmatprep.subr.bf16.mxu1 %v908_v55  ;;  %v1059_v55 = vld [vmem:[#allocation2 + $0xff0] sm:$0xff] }
 0x38d   :  { %1702 = vmatpush1.bf16.msra.mxu1 %v907_v56  ;;  %v1082_v56 = vrot.slane %v3431_v6, %v259_v59  ;;  %v1090_v59 = vrot.slane %v3431_v6, %v267_v9 }
 0x38e   :  { %1703 = vmatprep.subr.bf16.mxu1 %v916_v57  ;;  %v1086_v57 = vrot.slane %v3431_v6, %v263_v62  ;;  %v1094_v62 = vrot.slane %v3431_v6, %v271_v12 }
 0x391   :  { %1704 = vmatpush1.bf16.msra.mxu1 %v915_v58 }
 0x392   :  { %1705 = vmatprep.subr.bf16.mxu1 %v924_v60 }
 0x395   :  { %1706 = vmatpush1.bf16.msra.mxu1 %v923_v61 }
 0x396   :  { %1707 = vmatprep.subr.bf16.mxu1 %v932_v63 }
 0x399   :  { %1708 = vmatpush1.bf16.msra.mxu1 %v931_v0 }
 0x39a   :  { %1718 = vmatprep.subr.bf16.mxu1 %v940_v1 }
 0x39c   :  { %1710 = vmatmul.mubr.bf16.vlgmr.msra.gmra.mrb[8].mxu1 %v3389_v16  ;;  %v1074_v16 = vrot.slane %v3431_v6, %v3366_v45 }
 0x39d   :  { %1719 = vmatpush1.bf16.msra.mxu1 %v939_v52  ;;  %1750 = vmatprep.mubr.bf16.mxu1 %v3399_v29  ;;  %v1078_v29 = vrot.slane %v3431_v6, %v3369_v48 }
 0x39e   :  { %1720 = vmatprep.subr.bf16.mxu1 %v948_v3 }
 0x3a1   :  { %1721 = vmatpush1.bf16.msra.mxu1 %v947_v5 }
 0x3a2   :  { %1722 = vmatprep.subr.bf16.mxu1 %v956_v7 }
 0x3a5   :  { %1723 = vmatpush1.bf16.msra.mxu1 %v955_v8 }
 0x3a6   :  { %1724 = vmatprep.subr.bf16.mxu1 %v964_v4 }
 0x3a9   :  { %1725 = vmatpush1.bf16.msra.mxu1 %v963_v10 }
 0x3aa   :  { %1726 = vmatprep.subr.bf16.mxu1 %v972_v11 }
 0x3ad   :  { %1727 = vmatpush1.bf16.msra.mxu1 %v971_v13 }
 0x3ae   :  { %1728 = vmatprep.subr.bf16.mxu1 %v980_v14 }
 0x3af   :  { %v1424_v17 = vpop.f32.mrb[4].mxu1 }
 0x3b0   :  { %v2842_v20 = vadd.f32 %v1424_v17, %v1074_v16  ;;  %v1426_v21 = vpop.f32.mrb[5].mxu1 }
 0x3b1   :  { %v2843_v22 = vadd.f32 %v1426_v21, %v1078_v29  ;;  %v1428_v23 = vpop.f32.mrb[6].mxu1  ;;  %1729 = vmatpush1.bf16.msra.mxu1 %v979_v15 }
 0x3b2   :  { %v1761_v24 = vmax.f32 %v2842_v20, 0.0  ;;  %v1429_v25 = vpop.f32.mrb[7].mxu1  ;;  %1730 = vmatprep.subr.bf16.mxu1 %v988_v19 }
 0x3b3   :  { %v1762_v30 = vmax.f32 %v2843_v22, 0.0 }
 0x3b4   :  { %v3452_v33 = vpack.c.bf16 %v1761_v24, %v1761_v24 }
 0x3b5   :  { %v3454_v34 = vpack.c.bf16 %v1762_v30, %v1762_v30  ;;  %1731 = vmatpush1.bf16.msra.mxu1 %v987_v27 }
 0x3b6   :  { %1732 = vmatprep.subr.bf16.mxu1 %v996_v32 }
 0x3b9   :  { %1733 = vmatpush1.bf16.msra.mxu1 %v995_v26 }
 0x3ba   :  { %1734 = vmatprep.subr.bf16.mxu1 %v1004_v35 }
 0x3bd   :  { %1735 = vmatpush1.bf16.msra.mxu1 %v1003_v38 }
 0x3be   :  { %1736 = vmatprep.subr.bf16.mxu1 %v1012_v2 }
 0x3c1   :  { %1737 = vmatpush1.bf16.msra.mxu1 %v1011_v40 }
 0x3c2   :  { %1738 = vmatprep.subr.bf16.mxu1 %v1020_v18 }
 0x3c5   :  { %1739 = vmatpush1.bf16.msra.mxu1 %v1019_v41 }
 0x3c6   :  { %1740 = vmatprep.subr.bf16.mxu1 %v1028_v43 }
 0x3c9   :  { %1741 = vmatpush1.bf16.msra.mxu1 %v1027_v44 }
 0x3ca   :  { %1742 = vmatprep.subr.bf16.mxu1 %v1036_v46 }
 0x3cd   :  { %1743 = vmatpush1.bf16.msra.mxu1 %v1035_v47 }
 0x3ce   :  { %1744 = vmatprep.subr.bf16.mxu1 %v1044_v49 }
 0x3d1   :  { %1745 = vmatpush1.bf16.msra.mxu1 %v1043_v54 }
 0x3d2   :  { %1746 = vmatprep.subr.bf16.mxu1 %v1052_v50 }
 0x3d5   :  { %1747 = vmatpush1.bf16.msra.mxu1 %v1051_v51 }
 0x3d6   :  { %1748 = vmatprep.subr.bf16.mxu1 %v1060_v53 }
 0x3d9   :  { %1749 = vmatpush1.bf16.msra.mxu1 %v1059_v55 }
 0x3dc   :  { %1751 = vmatmul.mubr.bf16.vlgmr.msra.gmra.mrb[8].mxu1 %v3397_v28 }
 0x430   :  { %v1588_v58 = vpop.f32.mrb[20].mxu0 }
 0x431   :  { %v2844_v60 = vadd.f32 %v1588_v58, %v1082_v56  ;;  %v1590_v61 = vpop.f32.mrb[21].mxu0 }
 0x432   :  { %v2845_v63 = vadd.f32 %v1590_v61, %v1086_v57  ;;  %v1592_v0 = vpop.f32.mrb[22].mxu0 }
 0x433   :  { %v1763_v1 = vmax.f32 %v2844_v60, 0.0  ;;  %v1593_v52 = vpop.f32.mrb[23].mxu0 }
 0x434   :  { %v1764_v3 = vmax.f32 %v2845_v63, 0.0 }
 0x435   :  { %v3463_v5 = vpack.c.bf16 %v1763_v1, %v1763_v1 }
 0x436   :  { %v3465_v7 = vpack.c.bf16 %v1764_v3, %v1764_v3 }
 0x4af   :  { %v1752_v28 = vpop.f32.mrb[8].mxu1 }
 0x4b0   :  { %v2846_v8 = vadd.f32 %v1752_v28, %v1090_v59  ;;  %v1754_v4 = vpop.f32.mrb[9].mxu1 }
 0x4b1   :  { %v2847_v10 = vadd.f32 %v1754_v4, %v1094_v62  ;;  %v1756_v11 = vpop.f32.mrb[10].mxu1 }
 0x4b2   :  { %v1765_v13 = vmax.f32 %v2846_v8, 0.0  ;;  %v1757_v14 = vpop.f32.mrb[11].mxu1 }
 0x4b3   :  { %v1766_v16 = vmax.f32 %v2847_v10, 0.0 }
 0x4b4   :  { %v3473_v29 = vpack.c.bf16 %v1765_v13, %v1765_v13 }
 0x4b5   :  { %v3475_v15 = vpack.c.bf16 %v1766_v16, %v1766_v16 }
 0x4b6   :  { %3136 = dma.done.wait [#allocation5 + $0x1], 32768 }
 0x4b7   :  { %3137 = vsyncadd [#allocation5 + $0x1], 4294934528  ;;  %2088 = vmatprep.mubr.bf16.mxu0 %v3441_v31  ;;  %2252 = vmatprep.mubr.bf16.mxu1 %v3441_v31  ;;  %v1779_v36 = vld [vmem:[#allocation3 + $0x8] sm:$0xff]  ;;  %v1781_v9 = vld [vmem:[#allocation3 + $0x18] sm:$0xff] }
 0x4b8   :  { %v1778_v12 = vld [vmem:[#allocation3] sm:$0xff]  ;;  %2056 = vmatprep.subr.bf16.mxu0 %v1779_v36  ;;  %2220 = vmatprep.subr.bf16.mxu1 %v1781_v9  ;;  %v1780_v6 = vld [vmem:[#allocation3 + $0x10] sm:$0xff]  ;;  %v1783_v17 = vld [vmem:[#allocation3 + $0x28] sm:$0xff] }
 0x4b9   :  { %v1785_v19 = vld [vmem:[#allocation3 + $0x38] sm:$0xff]  ;;  %2057 = vmatpush1.bf16.msra.mxu0 %v1778_v12  ;;  %2221 = vmatpush1.bf16.msra.mxu1 %v1780_v6  ;;  %v1782_v20 = vld [vmem:[#allocation3 + $0x20] sm:$0xff]  ;;  %v1784_v21 = vld [vmem:[#allocation3 + $0x30] sm:$0xff] }
 0x4ba   :  { %2058 = vmatprep.subr.bf16.mxu0 %v1783_v17  ;;  %2222 = vmatprep.subr.bf16.mxu1 %v1785_v19  ;;  %v1787_v22 = vld [vmem:[#allocation3 + $0x48] sm:$0xff]  ;;  %v1789_v23 = vld [vmem:[#allocation3 + $0x58] sm:$0xff]  ;;  %v1786_v31 = vld [vmem:[#allocation3 + $0x40] sm:$0xff] }
 0x4bb   :  { %v1788_v24 = vld [vmem:[#allocation3 + $0x50] sm:$0xff]  ;;  %v1791_v25 = vld [vmem:[#allocation3 + $0x68] sm:$0xff]  ;;  %v1793_v27 = vld [vmem:[#allocation3 + $0x78] sm:$0xff] }
 0x4bc   :  { %v1790_v30 = vld [vmem:[#allocation3 + $0x60] sm:$0xff]  ;;  %v1792_v32 = vld [vmem:[#allocation3 + $0x70] sm:$0xff]  ;;  %v1795_v26 = vld [vmem:[#allocation3 + $0x88] sm:$0xff] }
 0x4bd   :  { %2059 = vmatpush1.bf16.msra.mxu0 %v1782_v20  ;;  %2223 = vmatpush1.bf16.msra.mxu1 %v1784_v21  ;;  %v1797_v35 = vld [vmem:[#allocation3 + $0x98] sm:$0xff]  ;;  %v1794_v38 = vld [vmem:[#allocation3 + $0x80] sm:$0xff]  ;;  %v1796_v2 = vld [vmem:[#allocation3 + $0x90] sm:$0xff] }
 0x4be   :  { %2060 = vmatprep.subr.bf16.mxu0 %v1787_v22  ;;  %2224 = vmatprep.subr.bf16.mxu1 %v1789_v23  ;;  %v1799_v40 = vld [vmem:[#allocation3 + $0xa8] sm:$0xff]  ;;  %v1801_v18 = vld [vmem:[#allocation3 + $0xb8] sm:$0xff]  ;;  %v1798_v41 = vld [vmem:[#allocation3 + $0xa0] sm:$0xff] }
 0x4bf   :  { %v1800_v43 = vld [vmem:[#allocation3 + $0xb0] sm:$0xff]  ;;  %v1803_v44 = vld [vmem:[#allocation3 + $0xc8] sm:$0xff]  ;;  %v1805_v46 = vld [vmem:[#allocation3 + $0xd8] sm:$0xff] }
 0x4c0   :  { %v1802_v47 = vld [vmem:[#allocation3 + $0xc0] sm:$0xff]  ;;  %v1804_v49 = vld [vmem:[#allocation3 + $0xd0] sm:$0xff]  ;;  %v1807_v54 = vld [vmem:[#allocation3 + $0xe8] sm:$0xff] }
 0x4c1   :  { %2061 = vmatpush1.bf16.msra.mxu0 %v1786_v31  ;;  %2225 = vmatpush1.bf16.msra.mxu1 %v1788_v24  ;;  %v1809_v50 = vld [vmem:[#allocation3 + $0xf8] sm:$0xff]  ;;  %v1806_v51 = vld [vmem:[#allocation3 + $0xe0] sm:$0xff]  ;;  %v1808_v53 = vld [vmem:[#allocation3 + $0xf0] sm:$0xff] }
 0x4c2   :  { %2062 = vmatprep.subr.bf16.mxu0 %v1791_v25  ;;  %2226 = vmatprep.subr.bf16.mxu1 %v1793_v27  ;;  %v1811_v55 = vld [vmem:[#allocation3 + $0x108] sm:$0xff]  ;;  %v1813_v56 = vld [vmem:[#allocation3 + $0x118] sm:$0xff]  ;;  %v1810_v57 = vld [vmem:[#allocation3 + $0x100] sm:$0xff] }
 0x4c3   :  { %v1812_v58 = vld [vmem:[#allocation3 + $0x110] sm:$0xff]  ;;  %v1815_v60 = vld [vmem:[#allocation3 + $0x128] sm:$0xff]  ;;  %v1817_v61 = vld [vmem:[#allocation3 + $0x138] sm:$0xff] }
 0x4c4   :  { %v1814_v63 = vld [vmem:[#allocation3 + $0x120] sm:$0xff]  ;;  %v1816_v0 = vld [vmem:[#allocation3 + $0x130] sm:$0xff]  ;;  %v1819_v1 = vld [vmem:[#allocation3 + $0x148] sm:$0xff] }
 0x4c5   :  { %2063 = vmatpush1.bf16.msra.mxu0 %v1790_v30  ;;  %2227 = vmatpush1.bf16.msra.mxu1 %v1792_v32  ;;  %v1821_v52 = vld [vmem:[#allocation3 + $0x158] sm:$0xff]  ;;  %v1818_v3 = vld [vmem:[#allocation3 + $0x140] sm:$0xff]  ;;  %v1820_v59 = vld [vmem:[#allocation3 + $0x150] sm:$0xff] }
 0x4c6   :  { %2064 = vmatprep.subr.bf16.mxu0 %v1795_v26  ;;  %2228 = vmatprep.subr.bf16.mxu1 %v1797_v35  ;;  %v1823_v62 = vld [vmem:[#allocation3 + $0x168] sm:$0xff]  ;;  %v1825_v28 = vld [vmem:[#allocation3 + $0x178] sm:$0xff]  ;;  %v1822_v8 = vld [vmem:[#allocation3 + $0x160] sm:$0xff] }
 0x4c7   :  { %v1824_v4 = vld [vmem:[#allocation3 + $0x170] sm:$0xff]  ;;  %v1827_v10 = vld [vmem:[#allocation3 + $0x188] sm:$0xff]  ;;  %v1829_v11 = vld [vmem:[#allocation3 + $0x198] sm:$0xff] }
 0x4c8   :  { %v1826_v13 = vld [vmem:[#allocation3 + $0x180] sm:$0xff]  ;;  %v1828_v14 = vld [vmem:[#allocation3 + $0x190] sm:$0xff]  ;;  %v1831_v16 = vld [vmem:[#allocation3 + $0x1a8] sm:$0xff] }
 0x4c9   :  { %2065 = vmatpush1.bf16.msra.mxu0 %v1794_v38  ;;  %2229 = vmatpush1.bf16.msra.mxu1 %v1796_v2  ;;  %v1833_v36 = vld [vmem:[#allocation3 + $0x1b8] sm:$0xff]  ;;  %v1830_v9 = vld [vmem:[#allocation3 + $0x1a0] sm:$0xff]  ;;  %v1832_v12 = vld [vmem:[#allocation3 + $0x1b0] sm:$0xff] }
 0x4ca   :  { %2066 = vmatprep.subr.bf16.mxu0 %v1799_v40  ;;  %2230 = vmatprep.subr.bf16.mxu1 %v1801_v18  ;;  %v1835_v6 = vld [vmem:[#allocation3 + $0x1c8] sm:$0xff]  ;;  %v1837_v17 = vld [vmem:[#allocation3 + $0x1d8] sm:$0xff]  ;;  %v1834_v19 = vld [vmem:[#allocation3 + $0x1c0] sm:$0xff] }
 0x4cb   :  { %v1836_v20 = vld [vmem:[#allocation3 + $0x1d0] sm:$0xff]  ;;  %v1839_v21 = vld [vmem:[#allocation3 + $0x1e8] sm:$0xff]  ;;  %v1841_v22 = vld [vmem:[#allocation3 + $0x1f8] sm:$0xff] }
 0x4cc   :  { %v1838_v23 = vld [vmem:[#allocation3 + $0x1e0] sm:$0xff]  ;;  %v1840_v31 = vld [vmem:[#allocation3 + $0x1f0] sm:$0xff]  ;;  %v1843_v24 = vld [vmem:[#allocation3 + $0x208] sm:$0xff] }
 0x4cd   :  { %2067 = vmatpush1.bf16.msra.mxu0 %v1798_v41  ;;  %2231 = vmatpush1.bf16.msra.mxu1 %v1800_v43  ;;  %v1845_v25 = vld [vmem:[#allocation3 + $0x218] sm:$0xff]  ;;  %v1842_v27 = vld [vmem:[#allocation3 + $0x200] sm:$0xff]  ;;  %v1844_v30 = vld [vmem:[#allocation3 + $0x210] sm:$0xff] }
 0x4ce   :  { %2068 = vmatprep.subr.bf16.mxu0 %v1803_v44  ;;  %2232 = vmatprep.subr.bf16.mxu1 %v1805_v46  ;;  %v1847_v32 = vld [vmem:[#allocation3 + $0x228] sm:$0xff]  ;;  %v1849_v26 = vld [vmem:[#allocation3 + $0x238] sm:$0xff]  ;;  %v1846_v35 = vld [vmem:[#allocation3 + $0x220] sm:$0xff] }
 0x4cf   :  { %v1848_v38 = vld [vmem:[#allocation3 + $0x230] sm:$0xff]  ;;  %v1851_v2 = vld [vmem:[#allocation3 + $0x248] sm:$0xff]  ;;  %v1853_v40 = vld [vmem:[#allocation3 + $0x258] sm:$0xff] }
 0x4d0   :  { %v1850_v18 = vld [vmem:[#allocation3 + $0x240] sm:$0xff]  ;;  %v1852_v41 = vld [vmem:[#allocation3 + $0x250] sm:$0xff]  ;;  %v1855_v43 = vld [vmem:[#allocation3 + $0x268] sm:$0xff] }
 0x4d1   :  { %2069 = vmatpush1.bf16.msra.mxu0 %v1802_v47  ;;  %2233 = vmatpush1.bf16.msra.mxu1 %v1804_v49  ;;  %v1854_v44 = vld [vmem:[#allocation3 + $0x260] sm:$0xff]  ;;  %v1856_v46 = vld [vmem:[#allocation3 + $0x270] sm:$0xff]  ;;  %v1859_v47 = vld [vmem:[#allocation3 + $0x288] sm:$0xff] }
 0x4d2   :  { %2070 = vmatprep.subr.bf16.mxu0 %v1807_v54  ;;  %2234 = vmatprep.subr.bf16.mxu1 %v1809_v50  ;;  %v1861_v49 = vld [vmem:[#allocation3 + $0x298] sm:$0xff]  ;;  %v1860_v54 = vld [vmem:[#allocation3 + $0x290] sm:$0xff]  ;;  %v1863_v50 = vld [vmem:[#allocation3 + $0x2a8] sm:$0xff] }
 0x4d5   :  { %2071 = vmatpush1.bf16.msra.mxu0 %v1806_v51  ;;  %2235 = vmatpush1.bf16.msra.mxu1 %v1808_v53  ;;  %v1865_v51 = vld [vmem:[#allocation3 + $0x2b8] sm:$0xff]  ;;  %v1862_v53 = vld [vmem:[#allocation3 + $0x2a0] sm:$0xff] }
 0x4d6   :  { %2072 = vmatprep.subr.bf16.mxu0 %v1811_v55  ;;  %2236 = vmatprep.subr.bf16.mxu1 %v1813_v56  ;;  %v1864_v55 = vld [vmem:[#allocation3 + $0x2b0] sm:$0xff]  ;;  %v1867_v56 = vld [vmem:[#allocation3 + $0x2c8] sm:$0xff] }
 0x4d9   :  { %2073 = vmatpush1.bf16.msra.mxu0 %v1810_v57  ;;  %2237 = vmatpush1.bf16.msra.mxu1 %v1812_v58  ;;  %v1869_v57 = vld [vmem:[#allocation3 + $0x2d8] sm:$0xff]  ;;  %v1866_v58 = vld [vmem:[#allocation3 + $0x2c0] sm:$0xff] }
 0x4da   :  { %2074 = vmatprep.subr.bf16.mxu0 %v1815_v60  ;;  %2238 = vmatprep.subr.bf16.mxu1 %v1817_v61  ;;  %v1868_v60 = vld [vmem:[#allocation3 + $0x2d0] sm:$0xff]  ;;  %v1871_v61 = vld [vmem:[#allocation3 + $0x2e8] sm:$0xff] }
 0x4dd   :  { %2075 = vmatpush1.bf16.msra.mxu0 %v1814_v63  ;;  %2239 = vmatpush1.bf16.msra.mxu1 %v1816_v0  ;;  %v1873_v63 = vld [vmem:[#allocation3 + $0x2f8] sm:$0xff]  ;;  %v1870_v0 = vld [vmem:[#allocation3 + $0x2e0] sm:$0xff] }
 0x4de   :  { %2076 = vmatprep.subr.bf16.mxu0 %v1819_v1  ;;  %2240 = vmatprep.subr.bf16.mxu1 %v1821_v52  ;;  %v1872_v1 = vld [vmem:[#allocation3 + $0x2f0] sm:$0xff]  ;;  %v1875_v52 = vld [vmem:[#allocation3 + $0x308] sm:$0xff] }
 0x4e1   :  { %2077 = vmatpush1.bf16.msra.mxu0 %v1818_v3  ;;  %2241 = vmatpush1.bf16.msra.mxu1 %v1820_v59  ;;  %v1877_v3 = vld [vmem:[#allocation3 + $0x318] sm:$0xff]  ;;  %v1874_v59 = vld [vmem:[#allocation3 + $0x300] sm:$0xff] }
 0x4e2   :  { %2078 = vmatprep.subr.bf16.mxu0 %v1823_v62  ;;  %2242 = vmatprep.subr.bf16.mxu1 %v1825_v28  ;;  %v1876_v62 = vld [vmem:[#allocation3 + $0x310] sm:$0xff]  ;;  %v1879_v28 = vld [vmem:[#allocation3 + $0x328] sm:$0xff] }
 0x4e5   :  { %2079 = vmatpush1.bf16.msra.mxu0 %v1822_v8  ;;  %2243 = vmatpush1.bf16.msra.mxu1 %v1824_v4  ;;  %v1881_v8 = vld [vmem:[#allocation3 + $0x338] sm:$0xff]  ;;  %v1878_v4 = vld [vmem:[#allocation3 + $0x320] sm:$0xff] }
 0x4e6   :  { %2080 = vmatprep.subr.bf16.mxu0 %v1827_v10  ;;  %2244 = vmatprep.subr.bf16.mxu1 %v1829_v11  ;;  %v1880_v10 = vld [vmem:[#allocation3 + $0x330] sm:$0xff]  ;;  %v1883_v11 = vld [vmem:[#allocation3 + $0x348] sm:$0xff] }
 0x4e9   :  { %2081 = vmatpush1.bf16.msra.mxu0 %v1826_v13  ;;  %2245 = vmatpush1.bf16.msra.mxu1 %v1828_v14  ;;  %v1885_v13 = vld [vmem:[#allocation3 + $0x358] sm:$0xff]  ;;  %v1882_v14 = vld [vmem:[#allocation3 + $0x340] sm:$0xff] }
 0x4ea   :  { %2082 = vmatprep.subr.bf16.mxu0 %v1831_v16  ;;  %2246 = vmatprep.subr.bf16.mxu1 %v1833_v36  ;;  %v1884_v16 = vld [vmem:[#allocation3 + $0x350] sm:$0xff]  ;;  %v1887_v36 = vld [vmem:[#allocation3 + $0x368] sm:$0xff] }
 0x4ed   :  { %2083 = vmatpush1.bf16.msra.mxu0 %v1830_v9  ;;  %2247 = vmatpush1.bf16.msra.mxu1 %v1832_v12  ;;  %v1889_v9 = vld [vmem:[#allocation3 + $0x378] sm:$0xff]  ;;  %v1886_v12 = vld [vmem:[#allocation3 + $0x360] sm:$0xff] }
 0x4ee   :  { %2084 = vmatprep.subr.bf16.mxu0 %v1835_v6  ;;  %2248 = vmatprep.subr.bf16.mxu1 %v1837_v17  ;;  %v1888_v6 = vld [vmem:[#allocation3 + $0x370] sm:$0xff]  ;;  %v1891_v17 = vld [vmem:[#allocation3 + $0x388] sm:$0xff] }
 0x4f1   :  { %2085 = vmatpush1.bf16.msra.mxu0 %v1834_v19  ;;  %2249 = vmatpush1.bf16.msra.mxu1 %v1836_v20  ;;  %v1893_v19 = vld [vmem:[#allocation3 + $0x398] sm:$0xff]  ;;  %v1890_v20 = vld [vmem:[#allocation3 + $0x380] sm:$0xff] }
 0x4f2   :  { %2086 = vmatprep.subr.bf16.mxu0 %v1839_v21  ;;  %2250 = vmatprep.subr.bf16.mxu1 %v1841_v22  ;;  %v1892_v21 = vld [vmem:[#allocation3 + $0x390] sm:$0xff]  ;;  %v1895_v22 = vld [vmem:[#allocation3 + $0x3a8] sm:$0xff] }
 0x4f5   :  { %2087 = vmatpush1.bf16.msra.mxu0 %v1838_v23  ;;  %2251 = vmatpush1.bf16.msra.mxu1 %v1840_v31  ;;  %v1897_v23 = vld [vmem:[#allocation3 + $0x3b8] sm:$0xff]  ;;  %v1894_v31 = vld [vmem:[#allocation3 + $0x3a0] sm:$0xff] }
 0x4f6   :  { %2097 = vmatprep.subr.bf16.mxu0 %v1843_v24  ;;  %2261 = vmatprep.subr.bf16.mxu1 %v1845_v25  ;;  %v1896_v24 = vld [vmem:[#allocation3 + $0x3b0] sm:$0xff]  ;;  %v1899_v25 = vld [vmem:[#allocation3 + $0x3c8] sm:$0xff] }
 0x4f8   :  { %2089 = vmatmul.mubr.bf16.vlgmr.msra.gmra.mrb[24].mxu0 %v3439_v42  ;;  %2253 = vmatmul.mubr.bf16.vlgmr.msra.gmra.mrb[12].mxu1 %v3439_v42  ;;  %v1857_v42 = vld [vmem:[#allocation3 + $0x278] sm:$0xff] }
 0x4f9   :  { %2098 = vmatpush1.bf16.msra.mxu0 %v1842_v27  ;;  %2262 = vmatpush1.bf16.msra.mxu1 %v1844_v30  ;;  %v1901_v27 = vld [vmem:[#allocation3 + $0x3d8] sm:$0xff]  ;;  %v1898_v30 = vld [vmem:[#allocation3 + $0x3c0] sm:$0xff] }
 0x4fa   :  { %2099 = vmatprep.subr.bf16.mxu0 %v1847_v32  ;;  %2263 = vmatprep.subr.bf16.mxu1 %v1849_v26  ;;  %v1900_v32 = vld [vmem:[#allocation3 + $0x3d0] sm:$0xff]  ;;  %v1903_v26 = vld [vmem:[#allocation3 + $0x3e8] sm:$0xff] }
 0x4fb   :  { %2129 = vmatprep.mubr.bf16.mxu0 %v3454_v34  ;;  %2293 = vmatprep.mubr.bf16.mxu1 %v3454_v34  ;;  %v1858_v34 = vld [vmem:[#allocation3 + $0x280] sm:$0xff] }
 0x4fd   :  { %2100 = vmatpush1.bf16.msra.mxu0 %v1846_v35  ;;  %2264 = vmatpush1.bf16.msra.mxu1 %v1848_v38  ;;  %v1905_v35 = vld [vmem:[#allocation3 + $0x3f8] sm:$0xff]  ;;  %v1902_v38 = vld [vmem:[#allocation3 + $0x3e0] sm:$0xff] }
 0x4fe   :  { %2101 = vmatprep.subr.bf16.mxu0 %v1851_v2  ;;  %2265 = vmatprep.subr.bf16.mxu1 %v1853_v40  ;;  %v1904_v2 = vld [vmem:[#allocation3 + $0x3f0] sm:$0xff]  ;;  %v1907_v40 = vld [vmem:[#allocation3 + $0x408] sm:$0xff] }
 0x501   :  { %2102 = vmatpush1.bf16.msra.mxu0 %v1850_v18  ;;  %2266 = vmatpush1.bf16.msra.mxu1 %v1852_v41  ;;  %v1909_v18 = vld [vmem:[#allocation3 + $0x418] sm:$0xff]  ;;  %v1906_v41 = vld [vmem:[#allocation3 + $0x400] sm:$0xff] }
 0x502   :  { %2103 = vmatprep.subr.bf16.mxu0 %v1855_v43  ;;  %2267 = vmatprep.subr.bf16.mxu1 %v1857_v42  ;;  %v1908_v43 = vld [vmem:[#allocation3 + $0x410] sm:$0xff]  ;;  %v1911_v42 = vld [vmem:[#allocation3 + $0x428] sm:$0xff] }
 0x505   :  { %2104 = vmatpush1.bf16.msra.mxu0 %v1854_v44  ;;  %2268 = vmatpush1.bf16.msra.mxu1 %v1856_v46  ;;  %v1913_v44 = vld [vmem:[#allocation3 + $0x438] sm:$0xff]  ;;  %v1910_v46 = vld [vmem:[#allocation3 + $0x420] sm:$0xff] }
 0x506   :  { %2105 = vmatprep.subr.bf16.mxu0 %v1859_v47  ;;  %2269 = vmatprep.subr.bf16.mxu1 %v1861_v49  ;;  %v1912_v47 = vld [vmem:[#allocation3 + $0x430] sm:$0xff]  ;;  %v1915_v49 = vld [vmem:[#allocation3 + $0x448] sm:$0xff] }
 0x509   :  { %2106 = vmatpush1.bf16.msra.mxu0 %v1858_v34  ;;  %2270 = vmatpush1.bf16.msra.mxu1 %v1860_v54  ;;  %v1917_v34 = vld [vmem:[#allocation3 + $0x458] sm:$0xff]  ;;  %v1914_v54 = vld [vmem:[#allocation3 + $0x440] sm:$0xff] }
 0x50a   :  { %2107 = vmatprep.subr.bf16.mxu0 %v1863_v50  ;;  %2271 = vmatprep.subr.bf16.mxu1 %v1865_v51  ;;  %v1916_v50 = vld [vmem:[#allocation3 + $0x450] sm:$0xff]  ;;  %v1919_v51 = vld [vmem:[#allocation3 + $0x468] sm:$0xff] }
 0x50d   :  { %2108 = vmatpush1.bf16.msra.mxu0 %v1862_v53  ;;  %2272 = vmatpush1.bf16.msra.mxu1 %v1864_v55  ;;  %v1918_v53 = vld [vmem:[#allocation3 + $0x460] sm:$0xff]  ;;  %v1920_v55 = vld [vmem:[#allocation3 + $0x470] sm:$0xff] }
 0x50e   :  { %2109 = vmatprep.subr.bf16.mxu0 %v1867_v56  ;;  %2273 = vmatprep.subr.bf16.mxu1 %v1869_v57  ;;  %v1923_v56 = vld [vmem:[#allocation3 + $0x488] sm:$0xff]  ;;  %v1925_v57 = vld [vmem:[#allocation3 + $0x498] sm:$0xff] }
 0x511   :  { %2110 = vmatpush1.bf16.msra.mxu0 %v1866_v58  ;;  %2274 = vmatpush1.bf16.msra.mxu1 %v1868_v60  ;;  %v1924_v58 = vld [vmem:[#allocation3 + $0x490] sm:$0xff]  ;;  %v1927_v60 = vld [vmem:[#allocation3 + $0x4a8] sm:$0xff] }
 0x512   :  { %2111 = vmatprep.subr.bf16.mxu0 %v1871_v61  ;;  %2275 = vmatprep.subr.bf16.mxu1 %v1873_v63  ;;  %v1929_v61 = vld [vmem:[#allocation3 + $0x4b8] sm:$0xff]  ;;  %v1926_v63 = vld [vmem:[#allocation3 + $0x4a0] sm:$0xff] }
 0x515   :  { %2112 = vmatpush1.bf16.msra.mxu0 %v1870_v0  ;;  %2276 = vmatpush1.bf16.msra.mxu1 %v1872_v1  ;;  %v1928_v0 = vld [vmem:[#allocation3 + $0x4b0] sm:$0xff]  ;;  %v1931_v1 = vld [vmem:[#allocation3 + $0x4c8] sm:$0xff] }
 0x516   :  { %2113 = vmatprep.subr.bf16.mxu0 %v1875_v52  ;;  %2277 = vmatprep.subr.bf16.mxu1 %v1877_v3  ;;  %v1933_v52 = vld [vmem:[#allocation3 + $0x4d8] sm:$0xff]  ;;  %v1930_v3 = vld [vmem:[#allocation3 + $0x4c0] sm:$0xff] }
 0x519   :  { %2114 = vmatpush1.bf16.msra.mxu0 %v1874_v59  ;;  %2278 = vmatpush1.bf16.msra.mxu1 %v1876_v62  ;;  %v1932_v59 = vld [vmem:[#allocation3 + $0x4d0] sm:$0xff]  ;;  %v1935_v62 = vld [vmem:[#allocation3 + $0x4e8] sm:$0xff] }
 0x51a   :  { %2115 = vmatprep.subr.bf16.mxu0 %v1879_v28  ;;  %2279 = vmatprep.subr.bf16.mxu1 %v1881_v8  ;;  %v1937_v28 = vld [vmem:[#allocation3 + $0x4f8] sm:$0xff]  ;;  %v1934_v8 = vld [vmem:[#allocation3 + $0x4e0] sm:$0xff] }
 0x51d   :  { %2116 = vmatpush1.bf16.msra.mxu0 %v1878_v4  ;;  %2280 = vmatpush1.bf16.msra.mxu1 %v1880_v10  ;;  %v1936_v4 = vld [vmem:[#allocation3 + $0x4f0] sm:$0xff]  ;;  %v1939_v10 = vld [vmem:[#allocation3 + $0x508] sm:$0xff] }
 0x51e   :  { %2117 = vmatprep.subr.bf16.mxu0 %v1883_v11  ;;  %2281 = vmatprep.subr.bf16.mxu1 %v1885_v13  ;;  %v1941_v11 = vld [vmem:[#allocation3 + $0x518] sm:$0xff]  ;;  %v1938_v13 = vld [vmem:[#allocation3 + $0x500] sm:$0xff] }
 0x521   :  { %2118 = vmatpush1.bf16.msra.mxu0 %v1882_v14  ;;  %2282 = vmatpush1.bf16.msra.mxu1 %v1884_v16  ;;  %v1940_v14 = vld [vmem:[#allocation3 + $0x510] sm:$0xff]  ;;  %v1943_v16 = vld [vmem:[#allocation3 + $0x528] sm:$0xff] }
 0x522   :  { %2119 = vmatprep.subr.bf16.mxu0 %v1887_v36  ;;  %2283 = vmatprep.subr.bf16.mxu1 %v1889_v9  ;;  %v1945_v36 = vld [vmem:[#allocation3 + $0x538] sm:$0xff]  ;;  %v1942_v9 = vld [vmem:[#allocation3 + $0x520] sm:$0xff] }
 0x525   :  { %2120 = vmatpush1.bf16.msra.mxu0 %v1886_v12  ;;  %2284 = vmatpush1.bf16.msra.mxu1 %v1888_v6  ;;  %v1944_v12 = vld [vmem:[#allocation3 + $0x530] sm:$0xff]  ;;  %v1947_v6 = vld [vmem:[#allocation3 + $0x548] sm:$0xff] }
 0x526   :  { %2121 = vmatprep.subr.bf16.mxu0 %v1891_v17  ;;  %2285 = vmatprep.subr.bf16.mxu1 %v1893_v19  ;;  %v1949_v17 = vld [vmem:[#allocation3 + $0x558] sm:$0xff]  ;;  %v1946_v19 = vld [vmem:[#allocation3 + $0x540] sm:$0xff] }
 0x529   :  { %2122 = vmatpush1.bf16.msra.mxu0 %v1890_v20  ;;  %2286 = vmatpush1.bf16.msra.mxu1 %v1892_v21  ;;  %v1948_v20 = vld [vmem:[#allocation3 + $0x550] sm:$0xff]  ;;  %v1951_v21 = vld [vmem:[#allocation3 + $0x568] sm:$0xff] }
 0x52a   :  { %2123 = vmatprep.subr.bf16.mxu0 %v1895_v22  ;;  %2287 = vmatprep.subr.bf16.mxu1 %v1897_v23  ;;  %v1953_v22 = vld [vmem:[#allocation3 + $0x578] sm:$0xff]  ;;  %v1950_v23 = vld [vmem:[#allocation3 + $0x560] sm:$0xff] }
 0x52d   :  { %2124 = vmatpush1.bf16.msra.mxu0 %v1894_v31  ;;  %2288 = vmatpush1.bf16.msra.mxu1 %v1896_v24  ;;  %v1952_v31 = vld [vmem:[#allocation3 + $0x570] sm:$0xff]  ;;  %v1955_v24 = vld [vmem:[#allocation3 + $0x588] sm:$0xff] }
 0x52e   :  { %2125 = vmatprep.subr.bf16.mxu0 %v1899_v25  ;;  %2289 = vmatprep.subr.bf16.mxu1 %v1901_v27  ;;  %v1957_v25 = vld [vmem:[#allocation3 + $0x598] sm:$0xff]  ;;  %v1954_v27 = vld [vmem:[#allocation3 + $0x580] sm:$0xff] }
 0x531   :  { %2126 = vmatpush1.bf16.msra.mxu0 %v1898_v30  ;;  %2290 = vmatpush1.bf16.msra.mxu1 %v1900_v32  ;;  %v1956_v30 = vld [vmem:[#allocation3 + $0x590] sm:$0xff]  ;;  %v1959_v32 = vld [vmem:[#allocation3 + $0x5a8] sm:$0xff] }
 0x532   :  { %2127 = vmatprep.subr.bf16.mxu0 %v1903_v26  ;;  %2291 = vmatprep.subr.bf16.mxu1 %v1905_v35  ;;  %v1961_v26 = vld [vmem:[#allocation3 + $0x5b8] sm:$0xff]  ;;  %v1958_v35 = vld [vmem:[#allocation3 + $0x5a0] sm:$0xff] }
 0x535   :  { %2128 = vmatpush1.bf16.msra.mxu0 %v1902_v38  ;;  %2292 = vmatpush1.bf16.msra.mxu1 %v1904_v2  ;;  %v1960_v38 = vld [vmem:[#allocation3 + $0x5b0] sm:$0xff]  ;;  %v1963_v2 = vld [vmem:[#allocation3 + $0x5c8] sm:$0xff] }
 0x536   :  { %2138 = vmatprep.subr.bf16.mxu0 %v1907_v40  ;;  %2302 = vmatprep.subr.bf16.mxu1 %v1909_v18  ;;  %v1965_v40 = vld [vmem:[#allocation3 + $0x5d8] sm:$0xff]  ;;  %v1962_v18 = vld [vmem:[#allocation3 + $0x5c0] sm:$0xff] }
 0x538   :  { %2130 = vmatmul.mubr.bf16.vlgmr.msra.gmra.mrb[24].mxu0 %v3452_v33  ;;  %2294 = vmatmul.mubr.bf16.vlgmr.msra.gmra.mrb[12].mxu1 %v3452_v33  ;;  %v1921_v33 = vld [vmem:[#allocation3 + $0x478] sm:$0xff] }
 0x539   :  { %2139 = vmatpush1.bf16.msra.mxu0 %v1906_v41  ;;  %2303 = vmatpush1.bf16.msra.mxu1 %v1908_v43  ;;  %v1964_v41 = vld [vmem:[#allocation3 + $0x5d0] sm:$0xff]  ;;  %v1967_v43 = vld [vmem:[#allocation3 + $0x5e8] sm:$0xff] }
 0x53a   :  { %2140 = vmatprep.subr.bf16.mxu0 %v1911_v42  ;;  %2304 = vmatprep.subr.bf16.mxu1 %v1913_v44  ;;  %v1969_v42 = vld [vmem:[#allocation3 + $0x5f8] sm:$0xff]  ;;  %v1966_v44 = vld [vmem:[#allocation3 + $0x5e0] sm:$0xff] }
 0x53b   :  { %2170 = vmatprep.mubr.bf16.mxu0 %v3465_v7  ;;  %2334 = vmatprep.mubr.bf16.mxu1 %v3465_v7  ;;  %v1922_v7 = vld [vmem:[#allocation3 + $0x480] sm:$0xff] }
 0x53d   :  { %2141 = vmatpush1.bf16.msra.mxu0 %v1910_v46  ;;  %2305 = vmatpush1.bf16.msra.mxu1 %v1912_v47  ;;  %v1968_v46 = vld [vmem:[#allocation3 + $0x5f0] sm:$0xff]  ;;  %v1971_v47 = vld [vmem:[#allocation3 + $0x608] sm:$0xff] }
 0x53e   :  { %2142 = vmatprep.subr.bf16.mxu0 %v1915_v49  ;;  %2306 = vmatprep.subr.bf16.mxu1 %v1917_v34  ;;  %v1973_v49 = vld [vmem:[#allocation3 + $0x618] sm:$0xff]  ;;  %v1970_v34 = vld [vmem:[#allocation3 + $0x600] sm:$0xff] }
 0x541   :  { %2143 = vmatpush1.bf16.msra.mxu0 %v1914_v54  ;;  %2307 = vmatpush1.bf16.msra.mxu1 %v1916_v50  ;;  %v1972_v54 = vld [vmem:[#allocation3 + $0x610] sm:$0xff]  ;;  %v1975_v50 = vld [vmem:[#allocation3 + $0x628] sm:$0xff] }
 0x542   :  { %2144 = vmatprep.subr.bf16.mxu0 %v1919_v51  ;;  %2308 = vmatprep.subr.bf16.mxu1 %v1921_v33  ;;  %v1977_v51 = vld [vmem:[#allocation3 + $0x638] sm:$0xff]  ;;  %v1974_v33 = vld [vmem:[#allocation3 + $0x620] sm:$0xff] }
 0x545   :  { %2145 = vmatpush1.bf16.msra.mxu0 %v1918_v53  ;;  %2309 = vmatpush1.bf16.msra.mxu1 %v1920_v55  ;;  %v1976_v53 = vld [vmem:[#allocation3 + $0x630] sm:$0xff]  ;;  %v1979_v55 = vld [vmem:[#allocation3 + $0x648] sm:$0xff] }
 0x546   :  { %2146 = vmatprep.subr.bf16.mxu0 %v1923_v56  ;;  %2310 = vmatprep.subr.bf16.mxu1 %v1925_v57  ;;  %v1981_v56 = vld [vmem:[#allocation3 + $0x658] sm:$0xff]  ;;  %v1978_v57 = vld [vmem:[#allocation3 + $0x640] sm:$0xff] }
 0x549   :  { %2147 = vmatpush1.bf16.msra.mxu0 %v1922_v7  ;;  %2311 = vmatpush1.bf16.msra.mxu1 %v1924_v58  ;;  %v1980_v7 = vld [vmem:[#allocation3 + $0x650] sm:$0xff]  ;;  %v1983_v58 = vld [vmem:[#allocation3 + $0x668] sm:$0xff] }
 0x54a   :  { %2148 = vmatprep.subr.bf16.mxu0 %v1927_v60  ;;  %2312 = vmatprep.subr.bf16.mxu1 %v1929_v61  ;;  %v1982_v60 = vld [vmem:[#allocation3 + $0x660] sm:$0xff]  ;;  %v1984_v61 = vld [vmem:[#allocation3 + $0x670] sm:$0xff] }
 0x54d   :  { %2149 = vmatpush1.bf16.msra.mxu0 %v1926_v63  ;;  %2313 = vmatpush1.bf16.msra.mxu1 %v1928_v0  ;;  %v1987_v63 = vld [vmem:[#allocation3 + $0x688] sm:$0xff]  ;;  %v1989_v0 = vld [vmem:[#allocation3 + $0x698] sm:$0xff] }
 0x54e   :  { %2150 = vmatprep.subr.bf16.mxu0 %v1931_v1  ;;  %2314 = vmatprep.subr.bf16.mxu1 %v1933_v52  ;;  %v1988_v1 = vld [vmem:[#allocation3 + $0x690] sm:$0xff]  ;;  %v1991_v52 = vld [vmem:[#allocation3 + $0x6a8] sm:$0xff] }
 0x551   :  { %2151 = vmatpush1.bf16.msra.mxu0 %v1930_v3  ;;  %2315 = vmatpush1.bf16.msra.mxu1 %v1932_v59  ;;  %v1993_v3 = vld [vmem:[#allocation3 + $0x6b8] sm:$0xff]  ;;  %v1990_v59 = vld [vmem:[#allocation3 + $0x6a0] sm:$0xff] }
 0x552   :  { %2152 = vmatprep.subr.bf16.mxu0 %v1935_v62  ;;  %2316 = vmatprep.subr.bf16.mxu1 %v1937_v28  ;;  %v1992_v62 = vld [vmem:[#allocation3 + $0x6b0] sm:$0xff]  ;;  %v1995_v28 = vld [vmem:[#allocation3 + $0x6c8] sm:$0xff] }
 0x555   :  { %2153 = vmatpush1.bf16.msra.mxu0 %v1934_v8  ;;  %2317 = vmatpush1.bf16.msra.mxu1 %v1936_v4  ;;  %v1997_v8 = vld [vmem:[#allocation3 + $0x6d8] sm:$0xff]  ;;  %v1994_v4 = vld [vmem:[#allocation3 + $0x6c0] sm:$0xff] }
 0x556   :  { %2154 = vmatprep.subr.bf16.mxu0 %v1939_v10  ;;  %2318 = vmatprep.subr.bf16.mxu1 %v1941_v11  ;;  %v1996_v10 = vld [vmem:[#allocation3 + $0x6d0] sm:$0xff]  ;;  %v1999_v11 = vld [vmem:[#allocation3 + $0x6e8] sm:$0xff] }
 0x559   :  { %2155 = vmatpush1.bf16.msra.mxu0 %v1938_v13  ;;  %2319 = vmatpush1.bf16.msra.mxu1 %v1940_v14  ;;  %v2001_v13 = vld [vmem:[#allocation3 + $0x6f8] sm:$0xff]  ;;  %v1998_v14 = vld [vmem:[#allocation3 + $0x6e0] sm:$0xff] }
 0x55a   :  { %2156 = vmatprep.subr.bf16.mxu0 %v1943_v16  ;;  %2320 = vmatprep.subr.bf16.mxu1 %v1945_v36  ;;  %v2000_v16 = vld [vmem:[#allocation3 + $0x6f0] sm:$0xff]  ;;  %v2003_v36 = vld [vmem:[#allocation3 + $0x708] sm:$0xff] }
 0x55d   :  { %2157 = vmatpush1.bf16.msra.mxu0 %v1942_v9  ;;  %2321 = vmatpush1.bf16.msra.mxu1 %v1944_v12  ;;  %v2005_v9 = vld [vmem:[#allocation3 + $0x718] sm:$0xff]  ;;  %v2002_v12 = vld [vmem:[#allocation3 + $0x700] sm:$0xff] }
 0x55e   :  { %2158 = vmatprep.subr.bf16.mxu0 %v1947_v6  ;;  %2322 = vmatprep.subr.bf16.mxu1 %v1949_v17  ;;  %v2004_v6 = vld [vmem:[#allocation3 + $0x710] sm:$0xff]  ;;  %v2007_v17 = vld [vmem:[#allocation3 + $0x728] sm:$0xff] }
 0x561   :  { %2159 = vmatpush1.bf16.msra.mxu0 %v1946_v19  ;;  %2323 = vmatpush1.bf16.msra.mxu1 %v1948_v20  ;;  %v2009_v19 = vld [vmem:[#allocation3 + $0x738] sm:$0xff]  ;;  %v2006_v20 = vld [vmem:[#allocation3 + $0x720] sm:$0xff] }
 0x562   :  { %2160 = vmatprep.subr.bf16.mxu0 %v1951_v21  ;;  %2324 = vmatprep.subr.bf16.mxu1 %v1953_v22  ;;  %v2008_v21 = vld [vmem:[#allocation3 + $0x730] sm:$0xff]  ;;  %v2011_v22 = vld [vmem:[#allocation3 + $0x748] sm:$0xff] }
 0x565   :  { %2161 = vmatpush1.bf16.msra.mxu0 %v1950_v23  ;;  %2325 = vmatpush1.bf16.msra.mxu1 %v1952_v31  ;;  %v2013_v23 = vld [vmem:[#allocation3 + $0x758] sm:$0xff]  ;;  %v2010_v31 = vld [vmem:[#allocation3 + $0x740] sm:$0xff] }
 0x566   :  { %2162 = vmatprep.subr.bf16.mxu0 %v1955_v24  ;;  %2326 = vmatprep.subr.bf16.mxu1 %v1957_v25  ;;  %v2012_v24 = vld [vmem:[#allocation3 + $0x750] sm:$0xff]  ;;  %v2015_v25 = vld [vmem:[#allocation3 + $0x768] sm:$0xff] }
 0x569   :  { %2163 = vmatpush1.bf16.msra.mxu0 %v1954_v27  ;;  %2327 = vmatpush1.bf16.msra.mxu1 %v1956_v30  ;;  %v2017_v27 = vld [vmem:[#allocation3 + $0x778] sm:$0xff]  ;;  %v2014_v30 = vld [vmem:[#allocation3 + $0x760] sm:$0xff] }
 0x56a   :  { %2164 = vmatprep.subr.bf16.mxu0 %v1959_v32  ;;  %2328 = vmatprep.subr.bf16.mxu1 %v1961_v26  ;;  %v2016_v32 = vld [vmem:[#allocation3 + $0x770] sm:$0xff]  ;;  %v2019_v26 = vld [vmem:[#allocation3 + $0x788] sm:$0xff] }
 0x56d   :  { %2165 = vmatpush1.bf16.msra.mxu0 %v1958_v35  ;;  %2329 = vmatpush1.bf16.msra.mxu1 %v1960_v38  ;;  %v2021_v35 = vld [vmem:[#allocation3 + $0x798] sm:$0xff]  ;;  %v2018_v38 = vld [vmem:[#allocation3 + $0x780] sm:$0xff] }
 0x56e   :  { %2166 = vmatprep.subr.bf16.mxu0 %v1963_v2  ;;  %2330 = vmatprep.subr.bf16.mxu1 %v1965_v40  ;;  %v2020_v2 = vld [vmem:[#allocation3 + $0x790] sm:$0xff]  ;;  %v2023_v40 = vld [vmem:[#allocation3 + $0x7a8] sm:$0xff] }
 0x571   :  { %2167 = vmatpush1.bf16.msra.mxu0 %v1962_v18  ;;  %2331 = vmatpush1.bf16.msra.mxu1 %v1964_v41  ;;  %v2025_v18 = vld [vmem:[#allocation3 + $0x7b8] sm:$0xff]  ;;  %v2022_v41 = vld [vmem:[#allocation3 + $0x7a0] sm:$0xff] }
 0x572   :  { %2168 = vmatprep.subr.bf16.mxu0 %v1967_v43  ;;  %2332 = vmatprep.subr.bf16.mxu1 %v1969_v42  ;;  %v2024_v43 = vld [vmem:[#allocation3 + $0x7b0] sm:$0xff]  ;;  %v2027_v42 = vld [vmem:[#allocation3 + $0x7c8] sm:$0xff] }
 0x575   :  { %2169 = vmatpush1.bf16.msra.mxu0 %v1966_v44  ;;  %2333 = vmatpush1.bf16.msra.mxu1 %v1968_v46  ;;  %v2029_v44 = vld [vmem:[#allocation3 + $0x7d8] sm:$0xff]  ;;  %v2026_v46 = vld [vmem:[#allocation3 + $0x7c0] sm:$0xff] }
 0x576   :  { %2179 = vmatprep.subr.bf16.mxu0 %v1971_v47  ;;  %2343 = vmatprep.subr.bf16.mxu1 %v1973_v49  ;;  %v2028_v47 = vld [vmem:[#allocation3 + $0x7d0] sm:$0xff]  ;;  %v2031_v49 = vld [vmem:[#allocation3 + $0x7e8] sm:$0xff] }
 0x578   :  { %2171 = vmatmul.mubr.bf16.vlgmr.msra.gmra.mrb[24].mxu0 %v3463_v5  ;;  %2335 = vmatmul.mubr.bf16.vlgmr.msra.gmra.mrb[12].mxu1 %v3463_v5  ;;  %v1985_v5 = vld [vmem:[#allocation3 + $0x678] sm:$0xff] }
 0x579   :  { %2180 = vmatpush1.bf16.msra.mxu0 %v1970_v34  ;;  %2344 = vmatpush1.bf16.msra.mxu1 %v1972_v54  ;;  %v2033_v34 = vld [vmem:[#allocation3 + $0x7f8] sm:$0xff]  ;;  %v2030_v54 = vld [vmem:[#allocation3 + $0x7e0] sm:$0xff] }
 0x57a   :  { %2181 = vmatprep.subr.bf16.mxu0 %v1975_v50  ;;  %2345 = vmatprep.subr.bf16.mxu1 %v1977_v51  ;;  %v2032_v50 = vld [vmem:[#allocation3 + $0x7f0] sm:$0xff]  ;;  %v2034_v51 = vld [vmem:[#allocation13] sm:$0xf] }
 0x57b   :  { %2211 = vmatprep.mubr.bf16.mxu0 %v3475_v15  ;;  %2375 = vmatprep.mubr.bf16.mxu1 %v3475_v15  ;;  %v1986_v15 = vld [vmem:[#allocation3 + $0x680] sm:$0xff] }
 0x57d   :  { %2182 = vmatpush1.bf16.msra.mxu0 %v1974_v33  ;;  %2346 = vmatpush1.bf16.msra.mxu1 %v1976_v53  ;;  %v2039_v33 = vrot.slane %v2034_v51, %v3358_v37  ;;  %v2047_v53 = vrot.slane %v2034_v51, %v3366_v45 }
 0x57e   :  { %2183 = vmatprep.subr.bf16.mxu0 %v1979_v55  ;;  %2347 = vmatprep.subr.bf16.mxu1 %v1981_v56  ;;  %v2043_v55 = vrot.slane %v2034_v51, %v3361_v39  ;;  %v2051_v56 = vrot.slane %v2034_v51, %v3369_v48 }
 0x581   :  { %2184 = vmatpush1.bf16.msra.mxu0 %v1978_v57  ;;  %2348 = vmatpush1.bf16.msra.mxu1 %v1980_v7 }
 0x582   :  { %2185 = vmatprep.subr.bf16.mxu0 %v1983_v58  ;;  %2349 = vmatprep.subr.bf16.mxu1 %v1985_v5 }
 0x585   :  { %2186 = vmatpush1.bf16.msra.mxu0 %v1982_v60  ;;  %2350 = vmatpush1.bf16.msra.mxu1 %v1984_v61 }
 0x586   :  { %2187 = vmatprep.subr.bf16.mxu0 %v1987_v63  ;;  %2351 = vmatprep.subr.bf16.mxu1 %v1989_v0 }
 0x589   :  { %2188 = vmatpush1.bf16.msra.mxu0 %v1986_v15  ;;  %2352 = vmatpush1.bf16.msra.mxu1 %v1988_v1 }
 0x58a   :  { %2189 = vmatprep.subr.bf16.mxu0 %v1991_v52  ;;  %2353 = vmatprep.subr.bf16.mxu1 %v1993_v3 }
 0x58d   :  { %2190 = vmatpush1.bf16.msra.mxu0 %v1990_v59  ;;  %2354 = vmatpush1.bf16.msra.mxu1 %v1992_v62 }
 0x58e   :  { %2191 = vmatprep.subr.bf16.mxu0 %v1995_v28  ;;  %2355 = vmatprep.subr.bf16.mxu1 %v1997_v8 }
 0x591   :  { %2192 = vmatpush1.bf16.msra.mxu0 %v1994_v4  ;;  %2356 = vmatpush1.bf16.msra.mxu1 %v1996_v10 }
 0x592   :  { %2193 = vmatprep.subr.bf16.mxu0 %v1999_v11  ;;  %2357 = vmatprep.subr.bf16.mxu1 %v2001_v13 }
 0x595   :  { %2194 = vmatpush1.bf16.msra.mxu0 %v1998_v14  ;;  %2358 = vmatpush1.bf16.msra.mxu1 %v2000_v16 }
 0x596   :  { %2195 = vmatprep.subr.bf16.mxu0 %v2003_v36  ;;  %2359 = vmatprep.subr.bf16.mxu1 %v2005_v9 }
 0x599   :  { %2196 = vmatpush1.bf16.msra.mxu0 %v2002_v12  ;;  %2360 = vmatpush1.bf16.msra.mxu1 %v2004_v6 }
 0x59a   :  { %2197 = vmatprep.subr.bf16.mxu0 %v2007_v17  ;;  %2361 = vmatprep.subr.bf16.mxu1 %v2009_v19 }
 0x59d   :  { %2198 = vmatpush1.bf16.msra.mxu0 %v2006_v20  ;;  %2362 = vmatpush1.bf16.msra.mxu1 %v2008_v21 }
 0x59e   :  { %2199 = vmatprep.subr.bf16.mxu0 %v2011_v22  ;;  %2363 = vmatprep.subr.bf16.mxu1 %v2013_v23 }
 0x5a1   :  { %2200 = vmatpush1.bf16.msra.mxu0 %v2010_v31  ;;  %2364 = vmatpush1.bf16.msra.mxu1 %v2012_v24 }
 0x5a2   :  { %2201 = vmatprep.subr.bf16.mxu0 %v2015_v25  ;;  %2365 = vmatprep.subr.bf16.mxu1 %v2017_v27 }
 0x5a5   :  { %2202 = vmatpush1.bf16.msra.mxu0 %v2014_v30  ;;  %2366 = vmatpush1.bf16.msra.mxu1 %v2016_v32 }
 0x5a6   :  { %2203 = vmatprep.subr.bf16.mxu0 %v2019_v26  ;;  %2367 = vmatprep.subr.bf16.mxu1 %v2021_v35 }
 0x5a9   :  { %2204 = vmatpush1.bf16.msra.mxu0 %v2018_v38  ;;  %2368 = vmatpush1.bf16.msra.mxu1 %v2020_v2 }
 0x5aa   :  { %2205 = vmatprep.subr.bf16.mxu0 %v2023_v40  ;;  %2369 = vmatprep.subr.bf16.mxu1 %v2025_v18 }
 0x5ad   :  { %2206 = vmatpush1.bf16.msra.mxu0 %v2022_v41  ;;  %2370 = vmatpush1.bf16.msra.mxu1 %v2024_v43 }
 0x5ae   :  { %2207 = vmatprep.subr.bf16.mxu0 %v2027_v42  ;;  %2371 = vmatprep.subr.bf16.mxu1 %v2029_v44 }
 0x5b1   :  { %2208 = vmatpush1.bf16.msra.mxu0 %v2026_v46  ;;  %2372 = vmatpush1.bf16.msra.mxu1 %v2028_v47 }
 0x5b2   :  { %2209 = vmatprep.subr.bf16.mxu0 %v2031_v49  ;;  %2373 = vmatprep.subr.bf16.mxu1 %v2033_v34 }
 0x5b5   :  { %2210 = vmatpush1.bf16.msra.mxu0 %v2030_v54  ;;  %2374 = vmatpush1.bf16.msra.mxu1 %v2032_v50 }
 0x5b8   :  { %2212 = vmatmul.mubr.bf16.vlgmr.msra.gmra.mrb[24].mxu0 %v3473_v29  ;;  %2376 = vmatmul.mubr.bf16.vlgmr.msra.gmra.mrb[12].mxu1 %v3473_v29 }
 0x68b   :  { %v2213_v57 = vpop.f32.mrb[24].mxu0  ;;  %v2377_v7 = vpop.f32.mrb[12].mxu1 }
 0x68c   :  { %v2848_v58 = vadd.f32 %v2213_v57, %v2039_v33  ;;  %v2850_v5 = vadd.f32 %v2377_v7, %v2047_v53  ;;  %v2215_v60 = vpop.f32.mrb[25].mxu0  ;;  %v2379_v61 = vpop.f32.mrb[13].mxu1 }
 0x68d   :  { %v2849_v63 = vadd.f32 %v2215_v60, %v2043_v55  ;;  %v2851_v0 = vadd.f32 %v2379_v61, %v2051_v56  ;;  %v2217_v15 = vpop.f32.mrb[26].mxu0  ;;  %v2381_v1 = vpop.f32.mrb[14].mxu1 }
 0x68e   :  { %v2384_v29 = vmax.f32 %v2848_v58, 0.0  ;;  %v2386_v52 = vmax.f32 %v2850_v5, 0.0  ;;  %v2218_v3 = vpop.f32.mrb[27].mxu0  ;;  %v2382_v59 = vpop.f32.mrb[15].mxu1 }
 0x68f   :  { %v2385_v62 = vmax.f32 %v2849_v63, 0.0  ;;  %v2387_v45 = vmax.f32 %v2851_v0, 0.0 }
 0x690   :  { %v3497_v28 = vpack.c.bf16 %v2384_v29, %v2384_v29  ;;  %v3499_v8 = vpack.c.bf16 %v2386_v52, %v2386_v52 }
 0x691   :  { %v2389_v48 = vpack.c.bf16 %v2385_v62, %v2385_v62  ;;  %v3501_v4 = vpack.c.bf16 %v2387_v45, %v2387_v45 }
 0x692   :  { %3138 = dma.done.wait [#allocation5 + $0x2], 8192 }
 0x693   :  { %3139 = vsyncadd [#allocation5 + $0x2], 4294959104  ;;  %2504 = vmatprep.mubr.bf16.mxu0 %v2389_v48  ;;  %v2397_v10 = vld [vmem:[#allocation4 + $0x8] sm:$0xff]  ;;  %v2396_v11 = vld [vmem:[#allocation4] sm:$0xff]  ;;  %vm2739_vm1 = vcmask 15360  }
 0x694   :  { %v2399_v13 = vld [vmem:[#allocation4 + $0x18] sm:$0xff]  ;;  %2472 = vmatprep.subr.bf16.mxu0 %v2397_v10  ;;  %v2398_v14 = vld [vmem:[#allocation4 + $0x10] sm:$0xff]  ;;  %v2401_v16 = vld [vmem:[#allocation4 + $0x28] sm:$0xff] }
 0x695   :  { %2473 = vmatpush1.bf16.msra.mxu0 %v2396_v11  ;;  %v2400_v36 = vld [vmem:[#allocation4 + $0x20] sm:$0xff]  ;;  %v2403_v9 = vld [vmem:[#allocation4 + $0x38] sm:$0xff]  ;;  %v2402_v12 = vld [vmem:[#allocation4 + $0x30] sm:$0xff] }
 0x696   :  { %2474 = vmatprep.subr.bf16.mxu0 %v2399_v13  ;;  %v2405_v6 = vld [vmem:[#allocation4 + $0x48] sm:$0xff]  ;;  %v2404_v17 = vld [vmem:[#allocation4 + $0x40] sm:$0xff]  ;;  %v2407_v19 = vld [vmem:[#allocation4 + $0x58] sm:$0xff] }
 0x697   :  { %v2406_v20 = vld [vmem:[#allocation4 + $0x50] sm:$0xff]  ;;  %v2409_v21 = vld [vmem:[#allocation4 + $0x68] sm:$0xff]  ;;  %v2408_v22 = vld [vmem:[#allocation4 + $0x60] sm:$0xff] }
 0x698   :  { %v2411_v23 = vld [vmem:[#allocation4 + $0x78] sm:$0xff]  ;;  %v2952_v31 = vld [vmem:[%s3568_s9 + $0x40] sm:$0xff]   ;;  %v2954_v25 = vld [vmem:[%s3568_s9 + $0x48] sm:$0xff]  }
 0x699   :  { %2475 = vmatpush1.bf16.msra.mxu0 %v2398_v14  ;;  %v2953_v24 = vld [vmem:[%s3568_s9] sm:$0xff]   ;;  %2816 = vmatprep.subr.bf16.mxu1 %v2952_v31  ;;  %v2955_v27 = vld [vmem:[%s3568_s9 + $0x8] sm:$0xff]   ;;  %v2956_v30 = vld [vmem:[%s3568_s9 + $0x50] sm:$0xff]  }
 0x69a   :  { %2476 = vmatprep.subr.bf16.mxu0 %v2401_v16  ;;  %2817 = vmatpush3.bf16.msra.mxu1 %v2953_v24  ;;  %v2410_v32 = vld [vmem:[#allocation4 + $0x70] sm:$0xff]  ;;  %v2413_v26 = vld [vmem:[#allocation4 + $0x88] sm:$0xff]  ;;  %v2958_v38 = vld [vmem:[%s3568_s9 + $0x58] sm:$0xff]  }
 0x69b   :  { %2818 = vmatprep.subr.bf16.mxu1 %v2954_v25  ;;  %v2957_v35 = vld [vmem:[%s3568_s9 + $0x10] sm:$0xff]   ;;  %v2412_v2 = vld [vmem:[#allocation4 + $0x80] sm:$0xff]  ;;  %v2415_v40 = vld [vmem:[#allocation4 + $0x98] sm:$0xff] }
 0x69c   :  { %v2414_v18 = vld [vmem:[#allocation4 + $0x90] sm:$0xff]  ;;  %v2959_v41 = vld [vmem:[%s3568_s9 + $0x18] sm:$0xff]   ;;  %v2960_v43 = vld [vmem:[%s3568_s9 + $0x60] sm:$0xff]  }
 0x69d   :  { %2477 = vmatpush1.bf16.msra.mxu0 %v2400_v36  ;;  %v2417_v42 = vld [vmem:[#allocation4 + $0xa8] sm:$0xff]  ;;  %v2961_v44 = vld [vmem:[%s3568_s9 + $0x20] sm:$0xff]   ;;  %v2419_v49 = vld [vmem:[#allocation4 + $0xb8] sm:$0xff] }
 0x69e   :  { %2478 = vmatprep.subr.bf16.mxu0 %v2403_v9  ;;  %2819 = vmatpush3.bf16.msra.mxu1 %v2955_v27  ;;  %v2962_v46 = vld [vmem:[%s3568_s9 + $0x68] sm:$0xff]   ;;  %v2416_v47 = vld [vmem:[#allocation4 + $0xa0] sm:$0xff]  ;;  %v2418_v54 = vld [vmem:[#allocation4 + $0xb0] sm:$0xff] }
 0x69f   :  { %2820 = vmatprep.subr.bf16.mxu1 %v2956_v30  ;;  %v2963_v34 = vld [vmem:[%s3568_s9 + $0x28] sm:$0xff]   ;;  %v2420_v51 = vld [vmem:[#allocation4 + $0xc0] sm:$0xff]  ;;  %v2423_v33 = vld [vmem:[#allocation4 + $0xd8] sm:$0xff] }
 0x6a0   :  { %v2421_v50 = vld [vmem:[#allocation4 + $0xc8] sm:$0xff]  ;;  %v2422_v53 = vld [vmem:[#allocation4 + $0xd0] sm:$0xff]  ;;  %v2424_v56 = vld [vmem:[#allocation4 + $0xe0] sm:$0xff] }
 0x6a1   :  { %2479 = vmatpush1.bf16.msra.mxu0 %v2402_v12  ;;  %v2425_v55 = vld [vmem:[#allocation4 + $0xe8] sm:$0xff]  ;;  %v2427_v57 = vld [vmem:[#allocation4 + $0xf8] sm:$0xff]  ;;  %v2426_v7 = vld [vmem:[#allocation4 + $0xf0] sm:$0xff] }
 0x6a2   :  { %2480 = vmatprep.subr.bf16.mxu0 %v2405_v6  ;;  %2821 = vmatpush3.bf16.msra.mxu1 %v2957_v35  ;;  %v2429_v58 = vld [vmem:[#allocation4 + $0x108] sm:$0xff]  ;;  %v2428_v5 = vld [vmem:[#allocation4 + $0x100] sm:$0xff]  ;;  %v2431_v60 = vld [vmem:[#allocation4 + $0x118] sm:$0xff] }
 0x6a3   :  { %2822 = vmatprep.subr.bf16.mxu1 %v2958_v38  ;;  %v2430_v61 = vld [vmem:[#allocation4 + $0x110] sm:$0xff]  ;;  %v2433_v63 = vld [vmem:[#allocation4 + $0x128] sm:$0xff]  ;;  %v2432_v0 = vld [vmem:[#allocation4 + $0x120] sm:$0xff] }
 0x6a4   :  { %v2435_v15 = vld [vmem:[#allocation4 + $0x138] sm:$0xff]  ;;  %v2434_v1 = vld [vmem:[#allocation4 + $0x130] sm:$0xff]  ;;  %v2437_v29 = vld [vmem:[#allocation4 + $0x148] sm:$0xff] }
 0x6a5   :  { %2481 = vmatpush1.bf16.msra.mxu0 %v2404_v17  ;;  %v2436_v52 = vld [vmem:[#allocation4 + $0x140] sm:$0xff]  ;;  %v2439_v3 = vld [vmem:[#allocation4 + $0x158] sm:$0xff]  ;;  %v2438_v59 = vld [vmem:[#allocation4 + $0x150] sm:$0xff] }
 0x6a6   :  { %2482 = vmatprep.subr.bf16.mxu0 %v2407_v19  ;;  %2823 = vmatpush3.bf16.msra.mxu1 %v2959_v41  ;;  %v2441_v62 = vld [vmem:[#allocation4 + $0x168] sm:$0xff]  ;;  %v2440_v45 = vld [vmem:[#allocation4 + $0x160] sm:$0xff]  ;;  %v2442_v48 = vld [vmem:[#allocation4 + $0x170] sm:$0xff] }
 0x6a7   :  { %2824 = vmatprep.subr.bf16.mxu1 %v2960_v43  ;;  %v2444_v10 = vld [vmem:[#allocation4 + $0x180] sm:$0xff]  ;;  %v2447_v11 = vld [vmem:[#allocation4 + $0x198] sm:$0xff]  ;;  %v2446_v13 = vld [vmem:[#allocation4 + $0x190] sm:$0xff] }
 0x6a8   :  { %v2449_v14 = vld [vmem:[#allocation4 + $0x1a8] sm:$0xff]  ;;  %v2448_v16 = vld [vmem:[#allocation4 + $0x1a0] sm:$0xff]  ;;  %v2451_v36 = vld [vmem:[#allocation4 + $0x1b8] sm:$0xff] }
 0x6a9   :  { %2483 = vmatpush1.bf16.msra.mxu0 %v2406_v20  ;;  %v2450_v9 = vld [vmem:[#allocation4 + $0x1b0] sm:$0xff]  ;;  %v2453_v12 = vld [vmem:[#allocation4 + $0x1c8] sm:$0xff]  ;;  %v2452_v6 = vld [vmem:[#allocation4 + $0x1c0] sm:$0xff] }
 0x6aa   :  { %2484 = vmatprep.subr.bf16.mxu0 %v2409_v21  ;;  %2825 = vmatpush3.bf16.msra.mxu1 %v2961_v44  ;;  %v2455_v17 = vld [vmem:[#allocation4 + $0x1d8] sm:$0xff]  ;;  %v2454_v19 = vld [vmem:[#allocation4 + $0x1d0] sm:$0xff]  ;;  %v2457_v20 = vld [vmem:[#allocation4 + $0x1e8] sm:$0xff] }
 0x6ab   :  { %2826 = vmatprep.subr.bf16.mxu1 %v2962_v46  ;;  %v2456_v21 = vld [vmem:[#allocation4 + $0x1e0] sm:$0xff]  ;;  %v2964_v31 = vld [vmem:[%s3568_s9 + $0x70] sm:$0xff]   ;;  %v2966_v25 = vld [vmem:[%s3568_s9 + $0x78] sm:$0xff]  }
 0x6ac   :  { %v2965_v24 = vld [vmem:[%s3568_s9 + $0x30] sm:$0xff]   ;;  %v2967_v27 = vld [vmem:[%s3568_s9 + $0x38] sm:$0xff]  }
 0x6ad   :  { %2485 = vmatpush1.bf16.msra.mxu0 %v2408_v22  ;;  %v2459_v22 = vld [vmem:[#allocation4 + $0x1f8] sm:$0xff] }
 0x6ae   :  { %2486 = vmatprep.subr.bf16.mxu0 %v2411_v23  ;;  %2827 = vmatpush3.bf16.msra.mxu1 %v2963_v34  ;;  %v2458_v23 = vld [vmem:[#allocation4 + $0x1f0] sm:$0xff] }
 0x6af   :  { %2828 = vmatprep.subr.bf16.mxu1 %v2964_v31 }
 0x6b1   :  { %2487 = vmatpush1.bf16.msra.mxu0 %v2410_v32 }
 0x6b2   :  { %2488 = vmatprep.subr.bf16.mxu0 %v2413_v26  ;;  %2829 = vmatpush3.bf16.msra.mxu1 %v2965_v24 }
 0x6b3   :  { %2830 = vmatprep.subr.bf16.mxu1 %v2966_v25 }
 0x6b5   :  { %2489 = vmatpush1.bf16.msra.mxu0 %v2412_v2 }
 0x6b6   :  { %2490 = vmatprep.subr.bf16.mxu0 %v2415_v40  ;;  %2831 = vmatpush3.bf16.msra.mxu1 %v2967_v27 }
 0x6b9   :  { %2491 = vmatpush1.bf16.msra.mxu0 %v2414_v18 }
 0x6ba   :  { %2492 = vmatprep.subr.bf16.mxu0 %v2417_v42 }
 0x6bd   :  { %2493 = vmatpush1.bf16.msra.mxu0 %v2416_v47  ;;  %v2795_v47 = vld [vmem:[#allocation16] ss:$0 sm:$0xff] }
 0x6be   :  { %2494 = vmatprep.subr.bf16.mxu0 %v2419_v49 }
 0x6c1   :  { %2495 = vmatpush1.bf16.msra.mxu0 %v2418_v54 }
 0x6c2   :  { %2496 = vmatprep.subr.bf16.mxu0 %v2421_v50 }
 0x6c5   :  { %2497 = vmatpush1.bf16.msra.mxu0 %v2420_v51 }
 0x6c6   :  { %2498 = vmatprep.subr.bf16.mxu0 %v2423_v33 }
 0x6c9   :  { %2499 = vmatpush1.bf16.msra.mxu0 %v2422_v53 }
 0x6ca   :  { %2500 = vmatprep.subr.bf16.mxu0 %v2425_v55 }
 0x6cd   :  { %2501 = vmatpush1.bf16.msra.mxu0 %v2424_v56 }
 0x6ce   :  { %2502 = vmatprep.subr.bf16.mxu0 %v2427_v57 }
 0x6d1   :  { %2503 = vmatpush1.bf16.msra.mxu0 %v2426_v7 }
 0x6d2   :  { %2513 = vmatprep.subr.bf16.mxu0 %v2429_v58 }
 0x6d4   :  { %2505 = vmatmul.mubr.bf16.vlgmr.msra.gmra.mrb[28].mxu0 %v3497_v28  ;;  %v2443_v28 = vld [vmem:[#allocation4 + $0x178] sm:$0xff] }
 0x6d5   :  { %2514 = vmatpush1.bf16.msra.mxu0 %v2428_v5  ;;  %2545 = vmatprep.mubr.bf16.mxu0 %v3501_v4  ;;  %v2445_v4 = vld [vmem:[#allocation4 + $0x188] sm:$0xff] }
 0x6d6   :  { %2515 = vmatprep.subr.bf16.mxu0 %v2431_v60 }
 0x6d9   :  { %2516 = vmatpush1.bf16.msra.mxu0 %v2430_v61 }
 0x6da   :  { %2517 = vmatprep.subr.bf16.mxu0 %v2433_v63 }
 0x6dd   :  { %2518 = vmatpush1.bf16.msra.mxu0 %v2432_v0 }
 0x6de   :  { %2519 = vmatprep.subr.bf16.mxu0 %v2435_v15 }
 0x6e1   :  { %2520 = vmatpush1.bf16.msra.mxu0 %v2434_v1 }
 0x6e2   :  { %2521 = vmatprep.subr.bf16.mxu0 %v2437_v29 }
 0x6e5   :  { %2522 = vmatpush1.bf16.msra.mxu0 %v2436_v52 }
 0x6e6   :  { %2523 = vmatprep.subr.bf16.mxu0 %v2439_v3 }
 0x6e9   :  { %2524 = vmatpush1.bf16.msra.mxu0 %v2438_v59 }
 0x6ea   :  { %2525 = vmatprep.subr.bf16.mxu0 %v2441_v62 }
 0x6ed   :  { %2526 = vmatpush1.bf16.msra.mxu0 %v2440_v45 }
 0x6ee   :  { %2527 = vmatprep.subr.bf16.mxu0 %v2443_v28 }
 0x6f1   :  { %2528 = vmatpush1.bf16.msra.mxu0 %v2442_v48 }
 0x6f2   :  { %2529 = vmatprep.subr.bf16.mxu0 %v2445_v4 }
 0x6f5   :  { %2530 = vmatpush1.bf16.msra.mxu0 %v2444_v10 }
 0x6f6   :  { %2531 = vmatprep.subr.bf16.mxu0 %v2447_v11 }
 0x6f9   :  { %2532 = vmatpush1.bf16.msra.mxu0 %v2446_v13 }
 0x6fa   :  { %2533 = vmatprep.subr.bf16.mxu0 %v2449_v14 }
 0x6fd   :  { %2534 = vmatpush1.bf16.msra.mxu0 %v2448_v16 }
 0x6fe   :  { %2535 = vmatprep.subr.bf16.mxu0 %v2451_v36 }
 0x701   :  { %2536 = vmatpush1.bf16.msra.mxu0 %v2450_v9 }
 0x702   :  { %2537 = vmatprep.subr.bf16.mxu0 %v2453_v12 }
 0x705   :  { %2538 = vmatpush1.bf16.msra.mxu0 %v2452_v6 }
 0x706   :  { %2539 = vmatprep.subr.bf16.mxu0 %v2455_v17 }
 0x709   :  { %2540 = vmatpush1.bf16.msra.mxu0 %v2454_v19 }
 0x70a   :  { %2541 = vmatprep.subr.bf16.mxu0 %v2457_v20 }
 0x70d   :  { %2542 = vmatpush1.bf16.msra.mxu0 %v2456_v21 }
 0x70e   :  { %2543 = vmatprep.subr.bf16.mxu0 %v2459_v22 }
 0x711   :  { %2544 = vmatpush1.bf16.msra.mxu0 %v2458_v23 }
 0x714   :  { %2546 = vmatmul.mubr.bf16.vlgmr.msra.gmra.mrb[28].mxu0 %v3499_v8  ;;  %v2460_v8 = vld [vmem:[#allocation14] sm:$0x3] }
 0x715   :  { %v2465_v30 = vrot.slane %v2460_v8, %v3358_v37  ;;  %v2469_v32 = vrot.slane %v2460_v8, %v3361_v39 }
 0x7e7   :  { %v2547_v26 = vpop.f32.mrb[28].mxu0 }
 0x7e8   :  { %v2852_v35 = vadd.f32 %v2547_v26, %v2465_v30  ;;  %v2549_v38 = vpop.f32.mrb[29].mxu0 }
 0x7e9   :  { %v2853_v2 = vadd.f32 %v2549_v38, %v2469_v32  ;;  %v2551_v40 = vpop.f32.mrb[30].mxu0 }
 0x7ea   :  { %v2554_v18 = vmax.f32 %v2852_v35, 0.0  ;;  %v2552_v41 = vpop.f32.mrb[31].mxu0 }
 0x7eb   :  { %v2555_v43 = vmax.f32 %v2853_v2, 0.0 }
 0x7ec   :  { %v2556_v44 = vpack.c.bf16 %v2554_v18, %v2554_v18 }
 0x7ed   :  { %v2557_v42 = vpack.c.bf16 %v2555_v43, %v2555_v43 }
 0x7ef   :  { %2725 = vmatprep.mubr.bf16.mxu1 %v2557_v42 }
 0x7f0   :  { %2726 = vmatmul.mubr.bf16.vlgmr.msra.gmra.mrb[16].mxu1 %v2556_v44 }
 0x8c3   :  { %v2832_v46 = vpop.f32.mrb[16].mxu1 }
 0x8c4   :  { %v2833_v49 = vpop.f32.mrb[17].mxu1 }
 0x8c5   :  { %v2834_v34 = vadd.f32 %v2833_v49, %v2832_v46  ;;  %v2835_v54 = vpop.f32.mrb[18].mxu1 }
 0x8c6   :  { %v2836_v37 = vpop.f32.mrb[19].mxu1 }
 0x8c7   :  { %v2728_v50 = vadd.f32 %v2834_v34, %v2795_v47 }
 0x8c9   :  { %v2812_v39 = vmul.f32 -1.442695, %v2728_v50 }
 0x8cb   :  { %2968 = vpow2.f32 %v2812_v39 }
 0x8d5   :  { %v2969_v51 = vpop.eup %2968 }
 0x8d6   :  { %v2736_v33 = vadd.f32 1.0, %v2969_v51 }
 0x8d8   :  { %2970 = vrcp.f32 %v2736_v33 }
 0x8e2   :  { %v2971_v53 = vpop.eup %2970 }
 0x8e3   :  { %2740 = vst.msk [vmem:[%s3570_s11] sm:$0xff] %vm2739_vm1, %v2971_v53 }
 0x8e4   :  { %2745 = vsyncpa [#allocation7], 1 }
 0x8e5   :  { %2746 = vsyncpa [#allocation9], 1 }
 0x8e6   :  { %2747 = vsyncpa [#allocation12], 1 }
 0x8e7   :  { %2748 = vsyncpa [#allocation15], 1 }
 0x8e8   :  { %2749 = vsyncmov [#allocation5] }
 0x8eb   :  { %s2750_s24 = vpop.sfrf %2749 }
 0x8ec   :  { %p2813_p0 = scmp.ne.s32.totalorder %s2750_s24, 0 }
 0x8ee   :  { %2754 = shalt.err (%p2813_p0)  }
 0x8ef   :  { %2756 = vsyncmov [#allocation5 + $0x1] }
 0x8f2   :  { %s2757_s10 = vpop.sfrf %2756 }
 0x8f3   :  { %p2814_p1 = scmp.ne.s32.totalorder %s2757_s10, 0 }
 0x8f5   :  { %2761 = shalt.err (%p2814_p1)  }
 0x8f6   :  { %2763 = vsyncmov [#allocation5 + $0x2] }
 0x8f9   :  { %s2764_s1 = vpop.sfrf %2763 }
 0x8fa   :  { %p2815_p2 = scmp.ne.s32.totalorder %s2764_s1, 0 }
 0x8fc   :  { %2768 = shalt.err (%p2815_p2)  }

</bundles_post_ra>
